<compile_context>
chip_gen: v7x
topology: tpu7x:2x2x1
jax: 0.10.0
libtpu: 0.0.40
codegen_flags: <defaults>
</compile_context>

<pallas_src>
import functools

import jax
import jax.numpy as jnp
from jax.experimental import pallas as pl
from jax.experimental.pallas import tpu as pltpu


def _round_up(x, m):
    return (x + m - 1) // m * m


def _sigmoid(v):
    # tanh-form sigmoid: single EUP transcendental per element (vs exp+recip).
    return 0.5 * jnp.tanh(0.5 * v) + 0.5


def _apply_activation(y, activation):
    if activation == "relu":
        return jnp.maximum(y, 0.0)
    if activation == "leaky_relu":
        return jnp.where(y > 0, y, 0.01 * y)
    if activation == "selu":
        alpha = 1.6732632423543772
        scale = 1.0507009873554805
        return scale * jnp.where(y > 0, y, alpha * (jnp.exp(y) - 1.0))
    if activation == "none":
        return y
    raise ValueError(f"unknown activation: {activation}")


# ---------------------------------------------------------------------------
# One-time weight preparation (padding / bf16 cast / dense1 split)
# ---------------------------------------------------------------------------
def prepare_params(params):
    """Call once at model init; the per-forward path does no weight preprocessing."""
    H = params["whh_t"].shape[0]                       # 128
    G4 = 4 * H
    D_z = params["wih_t"].shape[0]                     # 208
    HID = params["w2_t"].shape[0]                      # 512
    OUT = params["w6_t"].shape[1]                      # 1
    D_x = params["w1_t"].shape[0] - H                  # 559
    D_z_pad = _round_up(D_z, 128)                      # 256
    D_x_pad = _round_up(D_x, 128)                      # 640
    OUT_pad = _round_up(OUT, 128)                      # 128

    bf = lambda a: a.astype(jnp.bfloat16)
    prep = {
        # LSTM (PyTorch gate order i,f,g,o assumed in wih_t/whh_t/b_lstm).
        "wih": bf(jnp.pad(params["wih_t"], ((0, D_z_pad - D_z), (0, 0)))),
        "whh": bf(params["whh_t"]),
        "b_lstm": params["b_lstm"].reshape(1, G4).astype(jnp.float32),
        # dense1 split: rows [:H] act on lstm_out, rows [H:] act on x.
        "w1a": bf(params["w1_t"][:H]),
        "w1b": bf(jnp.pad(params["w1_t"][H:], ((0, D_x_pad - D_x), (0, 0)))),
        "b1": params["b1"].reshape(1, HID).astype(jnp.float32),
        # value head, columns padded to 128 lanes for lane-dense stores.
        "w6": bf(jnp.pad(params["w6_t"], ((0, 0), (0, OUT_pad - OUT)))),
        "b6": jnp.pad(params["b6"], (0, OUT_pad - OUT)).reshape(1, OUT_pad)
                 .astype(jnp.float32),
    }
    for i in (2, 3, 4, 5):
        prep[f"w{i}"] = bf(params[f"w{i}_t"])
        prep[f"b{i}"] = params[f"b{i}"].reshape(1, HID).astype(jnp.float32)
    return prep


# ---------------------------------------------------------------------------
# Fused kernel: LSTM (last h) + dense1 + 4 residual blocks + value head
# ---------------------------------------------------------------------------
def _fused_forward_kernel(z_ref, x_ref, wih_ref, whh_ref, bl_ref,
                          w1a_ref, w1b_ref, b1_ref,
                          w2_ref, b2_ref, w3_ref, b3_ref,
                          w4_ref, b4_ref, w5_ref, b5_ref,
                          w6_ref, b6_ref, out_ref, *, seq_len, activation):
    cdt = wih_ref.dtype                                # bf16 MXU operand dtype
    H = whh_ref.shape[0]
    bm = out_ref.shape[0]

    # ---- Input projection for ALL timesteps of this batch tile in one MXU
    # call (rows ordered t-major: row t*bm + b).  Off the serial chain.
    proj = jnp.dot(z_ref[...], wih_ref[...],
                   preferred_element_type=jnp.float32) + bl_ref[...]

    # ---- Recurrence (statically unrolled; only h @ W_hh is serial).
    h = jnp.zeros((bm, H), jnp.float32)
    c = jnp.zeros((bm, H), jnp.float32)
    for t in range(seq_len):
        gates = proj[t * bm:(t + 1) * bm, :] + jnp.dot(
            h.astype(cdt), whh_ref[...], preferred_element_type=jnp.float32)
        i_g = _sigmoid(gates[:, 0 * H:1 * H])
        f_g = _sigmoid(gates[:, 1 * H:2 * H])
        g_g = jnp.tanh(gates[:, 2 * H:3 * H])
        o_g = _sigmoid(gates[:, 3 * H:4 * H])
        c = f_g * c + i_g * g_g
        h = o_g * jnp.tanh(c)

    # ---- dense1 via split weights: no concat([lstm_out, x]) anywhere.
    hd = (jnp.dot(h.astype(cdt), w1a_ref[...], preferred_element_type=jnp.float32)
          + jnp.dot(x_ref[...], w1b_ref[...], preferred_element_type=jnp.float32)
          + b1_ref[...])

    # ---- 4 residual blocks: y = W h + b + h ; h = act(y)   (f32 epilogue)
    for w_ref, b_ref in ((w2_ref, b2_ref), (w3_ref, b3_ref),
                         (w4_ref, b4_ref), (w5_ref, b5_ref)):
        y = jnp.dot(hd.astype(cdt), w_ref[...],
                    preferred_element_type=jnp.float32) + b_ref[...] + hd
        hd = _apply_activation(y, activation)

    # ---- value head (columns padded to 128 lanes)
    v = jnp.dot(hd.astype(cdt), w6_ref[...],
                preferred_element_type=jnp.float32) + b6_ref[...]
    out_ref[...] = v.astype(out_ref.dtype)


def _forward_values(z, x, prep, activation, block_m):
    B, T, D_z = z.shape
    _, D_x = x.shape
    D_z_pad, G4 = prep["wih"].shape
    H = prep["whh"].shape[0]
    D_x_pad, HID = prep["w1b"].shape
    OUT_pad = prep["w6"].shape[1]

    # Batch tiling: >= 2 "parallel" tiles whenever B >= 16 (v7x megacore),
    # capped at block_m (256 fills v6e's MXU; multiple of 128 fine for v5e).
    B8 = _round_up(B, 8)
    bm = min(block_m, max(8, _round_up(pl.cdiv(B8, 2), 8)))
    B_pad = _round_up(B, bm)
    n_tiles = B_pad // bm

    # Per-tile time-major flat z slab: rows within a tile ordered t*bm + b.
    z_p = jnp.pad(z, ((0, B_pad - B), (0, 0), (0, D_z_pad - D_z)))
    z2 = (z_p.reshape(n_tiles, bm, T, D_z_pad)
              .transpose(0, 2, 1, 3)
              .reshape(n_tiles * T * bm, D_z_pad)
              .astype(jnp.bfloat16))
    x_p = jnp.pad(x, ((0, B_pad - B), (0, D_x_pad - D_x))).astype(jnp.bfloat16)

    weight_bytes = sum(int(a.size) * a.dtype.itemsize for a in prep.values())
    cost = pl.CostEstimate(
        flops=2 * B_pad * (T * D_z_pad * G4 + T * H * G4
                           + H * HID + D_x_pad * HID
                           + 4 * HID * HID + HID * OUT_pad),
        transcendentals=5 * T * B_pad * H,
        bytes_accessed=(int(z2.size) * 2 + int(x_p.size) * 2
                        + weight_bytes + B_pad * OUT_pad * 4),
    )

    resident = lambda i: (0, 0)        # weights/biases: DMA once, stay in VMEM

    out = pl.pallas_call(
        functools.partial(_fused_forward_kernel, seq_len=T, activation=activation),
        out_shape=jax.ShapeDtypeStruct((B_pad, OUT_pad), jnp.float32),
        grid_spec=pltpu.PrefetchScalarGridSpec(
            num_scalar_prefetch=0,
            grid=(n_tiles,),
            in_specs=[
                pl.BlockSpec((T * bm, D_z_pad), lambda i: (i, 0)),   # z slab (tile)
                pl.BlockSpec((bm, D_x_pad), lambda i: (i, 0)),       # x tile
                pl.BlockSpec((D_z_pad, G4), resident),               # W_ih^T
                pl.BlockSpec((H, G4), resident),                     # W_hh^T
                pl.BlockSpec((1, G4), resident),                     # lstm bias
                pl.BlockSpec((H, HID), resident),                    # w1 (lstm part)
                pl.BlockSpec((D_x_pad, HID), resident),              # w1 (x part)
                pl.BlockSpec((1, HID), resident),                    # b1
                pl.BlockSpec((HID, HID), resident),                  # dense2
                pl.BlockSpec((1, HID), resident),
                pl.BlockSpec((HID, HID), resident),                  # dense3
                pl.BlockSpec((1, HID), resident),
                pl.BlockSpec((HID, HID), resident),                  # dense4
                pl.BlockSpec((1, HID), resident),
                pl.BlockSpec((HID, HID), resident),                  # dense5
                pl.BlockSpec((1, HID), resident),
                pl.BlockSpec((HID, OUT_pad), resident),              # dense6
                pl.BlockSpec((1, OUT_pad), resident),
            ],
            out_specs=pl.BlockSpec((bm, OUT_pad), lambda i: (i, 0)),
        ),
        compiler_params=pltpu.CompilerParams(
            dimension_semantics=("parallel",),     # batch tiles -> megacore on v7x
        ),
        cost_estimate=cost,
    )(z2, x_p, prep["wih"], prep["whh"], prep["b_lstm"],
      prep["w1a"], prep["w1b"], prep["b1"],
      prep["w2"], prep["b2"], prep["w3"], prep["b3"],
      prep["w4"], prep["b4"], prep["w5"], prep["b5"],
      prep["w6"], prep["b6"])

    return out[:B, :1]                 # dense6 out_features == 1 in the module


# ---------------------------------------------------------------------------
# Full forward (mirrors Big2ModelResNet.forward)
# ---------------------------------------------------------------------------
@functools.partial(jax.jit,
                   static_argnames=("activation", "return_value", "block_m"))
def big2_model_resnet_forward(z, x, prep, activation="relu",
                              return_value=False, block_m=256):
    values = _forward_values(z, x, prep, activation, block_m)     # (B, 1)
    if return_value:
        return dict(values=values)
    # TODO(synk): epsilon-greedy exploration branch (host-side np.random +
    # flags) is not ported; greedy argmax only.
    return dict(action=jnp.argmax(values[:, 0], axis=0))


# ---------------------------------------------------------------------------
# Pure-JAX reference (same math / same bf16 operand casts / same w1 split)
# ---------------------------------------------------------------------------
def reference_forward(z, x, p, activation="relu"):
    def mm(a, w):
        return jnp.dot(a.astype(jnp.bfloat16), w.astype(jnp.bfloat16),
                       preferred_element_type=jnp.float32)

    B, T, _ = z.shape
    H = p["whh_t"].shape[0]
    h = jnp.zeros((B, H), jnp.float32)
    c = jnp.zeros((B, H), jnp.float32)
    b = p["b_lstm"].astype(jnp.float32)
    for t in range(T):
        gates = mm(z[:, t, :], p["wih_t"]) + mm(h, p["whh_t"]) + b
        i = _sigmoid(gates[:, 0 * H:1 * H])
        f = _sigmoid(gates[:, 1 * H:2 * H])
        g = jnp.tanh(gates[:, 2 * H:3 * H])
        o = _sigmoid(gates[:, 3 * H:4 * H])
        c = f * c + i * g
        h = o * jnp.tanh(c)

    hd = mm(h, p["w1_t"][:H]) + mm(x, p["w1_t"][H:]) + p["b1"][None, :]
    for i in (2, 3, 4, 5):
        y = mm(hd, p[f"w{i}_t"]) + p[f"b{i}"][None, :] + hd
        hd = _apply_activation(y, activation)
    return mm(hd, p["w6_t"]) + p["b6"][None, :]


# ---------------------------------------------------------------------------
if __name__ == "__main__":
    B, T = 8, 6
    D_Z, D_X, H, HID = 208, 559, 128, 512

    key = jax.random.PRNGKey(0)
    ks = jax.random.split(key, 18)

    z = jax.random.normal(ks[0], (B, T, D_Z), dtype=jnp.float32)
    x = jax.random.normal(ks[1], (B, D_X), dtype=jnp.float32)

    def _init_linear(kw, kb, fan_in, fan_out):
        s = 1.0 / (fan_in ** 0.5)
        w_t = jax.random.uniform(kw, (fan_in, fan_out), jnp.float32, -s, s)
        b = jax.random.uniform(kb, (fan_out,), jnp.float32, -s, s)
        return w_t, b

    params = {}
    params["wih_t"], b_ih = _init_linear(ks[2], ks[3], D_Z, 4 * H)
    params["whh_t"], b_hh = _init_linear(ks[4], ks[5], H, 4 * H)
    params["b_lstm"] = b_ih + b_hh
    params["w1_t"], params["b1"] = _init_linear(ks[6], ks[7], H + D_X, HID)
    params["w2_t"], params["b2"] = _init_linear(ks[8], ks[9], HID, HID)
    params["w3_t"], params["b3"] = _init_linear(ks[10], ks[11], HID, HID)
    params["w4_t"], params["b4"] = _init_linear(ks[12], ks[13], HID, HID)
    params["w5_t"], params["b5"] = _init_linear(ks[14], ks[15], HID, HID)
    params["w6_t"], params["b6"] = _init_linear(ks[16], ks[17], HID, 1)

    prep = prepare_params(params)      # one-time pad / cast / split

    out = big2_model_resnet_forward(z, x, prep, return_value=True)
    values = out["values"]
    jax.block_until_ready(values)
    assert values.shape == (B, 1), values.shape

    ref = reference_forward(z, x, params)
    assert jnp.allclose(values, ref, atol=2e-2, rtol=2e-2), (
        "mismatch vs reference, max abs diff = "
        f"{float(jnp.max(jnp.abs(values - ref)))}")

    # exercise the greedy action branch too
    act = big2_model_resnet_forward(z, x, prep, return_value=False)["action"]
    jax.block_until_ready(act)

    print("KERNEL_OK")
</pallas_src>

<mosaic_0001>
module attributes {stable_mosaic.version = 11 : i64} {
  func.func @_fused_forward_kernel(%arg0: i32, %arg1: memref<48x256xbf16, #tpu.memory_space<vmem>>, %arg2: memref<8x640xbf16, #tpu.memory_space<vmem>>, %arg3: memref<256x512xbf16, #tpu.memory_space<vmem>>, %arg4: memref<128x512xbf16, #tpu.memory_space<vmem>>, %arg5: memref<1x512xf32, #tpu.memory_space<vmem>>, %arg6: memref<128x512xbf16, #tpu.memory_space<vmem>>, %arg7: memref<640x512xbf16, #tpu.memory_space<vmem>>, %arg8: memref<1x512xf32, #tpu.memory_space<vmem>>, %arg9: memref<512x512xbf16, #tpu.memory_space<vmem>>, %arg10: memref<1x512xf32, #tpu.memory_space<vmem>>, %arg11: memref<512x512xbf16, #tpu.memory_space<vmem>>, %arg12: memref<1x512xf32, #tpu.memory_space<vmem>>, %arg13: memref<512x512xbf16, #tpu.memory_space<vmem>>, %arg14: memref<1x512xf32, #tpu.memory_space<vmem>>, %arg15: memref<512x512xbf16, #tpu.memory_space<vmem>>, %arg16: memref<1x512xf32, #tpu.memory_space<vmem>>, %arg17: memref<512x128xbf16, #tpu.memory_space<vmem>>, %arg18: memref<1x128xf32, #tpu.memory_space<vmem>>, %arg19: memref<8x128xf32, #tpu.memory_space<vmem>>) attributes {dimension_semantics = [#tpu.dimension_semantics<parallel>], iteration_bounds = array<i64: 1>, scalar_prefetch = 0 : i64, scratch_operands = 0 : i64, tpu.core_type = #tpu.core_type<tc>, window_params = [{transform_indices = @transform_0, window_bounds = array<i64: 48, 256>}, {transform_indices = @transform_1, window_bounds = array<i64: 8, 640>}, {pipeline_mode = #tpu.pipeline_mode<synchronous>, transform_indices = @transform_2, window_bounds = array<i64: 256, 512>}, {pipeline_mode = #tpu.pipeline_mode<synchronous>, transform_indices = @transform_3, window_bounds = array<i64: 128, 512>}, {pipeline_mode = #tpu.pipeline_mode<synchronous>, transform_indices = @transform_4, window_bounds = array<i64: 1, 512>}, {pipeline_mode = #tpu.pipeline_mode<synchronous>, transform_indices = @transform_5, window_bounds = array<i64: 128, 512>}, {pipeline_mode = #tpu.pipeline_mode<synchronous>, transform_indices = @transform_6, window_bounds = array<i64: 640, 512>}, {pipeline_mode = #tpu.pipeline_mode<synchronous>, transform_indices = @transform_7, window_bounds = array<i64: 1, 512>}, {pipeline_mode = #tpu.pipeline_mode<synchronous>, transform_indices = @transform_8, window_bounds = array<i64: 512, 512>}, {pipeline_mode = #tpu.pipeline_mode<synchronous>, transform_indices = @transform_9, window_bounds = array<i64: 1, 512>}, {pipeline_mode = #tpu.pipeline_mode<synchronous>, transform_indices = @transform_10, window_bounds = array<i64: 512, 512>}, {pipeline_mode = #tpu.pipeline_mode<synchronous>, transform_indices = @transform_11, window_bounds = array<i64: 1, 512>}, {pipeline_mode = #tpu.pipeline_mode<synchronous>, transform_indices = @transform_12, window_bounds = array<i64: 512, 512>}, {pipeline_mode = #tpu.pipeline_mode<synchronous>, transform_indices = @transform_13, window_bounds = array<i64: 1, 512>}, {pipeline_mode = #tpu.pipeline_mode<synchronous>, transform_indices = @transform_14, window_bounds = array<i64: 512, 512>}, {pipeline_mode = #tpu.pipeline_mode<synchronous>, transform_indices = @transform_15, window_bounds = array<i64: 1, 512>}, {pipeline_mode = #tpu.pipeline_mode<synchronous>, transform_indices = @transform_16, window_bounds = array<i64: 512, 128>}, {pipeline_mode = #tpu.pipeline_mode<synchronous>, transform_indices = @transform_17, window_bounds = array<i64: 1, 128>}, {transform_indices = @transform_18, window_bounds = array<i64: 8, 128>}]} {
    %c0 = arith.constant 0 : index
    %c0_0 = arith.constant 0 : index
    %0 = vector.load %arg1[%c0, %c0_0] : memref<48x256xbf16, #tpu.memory_space<vmem>>, vector<48x256xbf16>
    %c0_1 = arith.constant 0 : index
    %c0_2 = arith.constant 0 : index
    %1 = vector.load %arg3[%c0_1, %c0_2] : memref<256x512xbf16, #tpu.memory_space<vmem>>, vector<256x512xbf16>
    %cst = arith.constant dense<0.000000e+00> : vector<48x512xf32>
    %2 = tpu.matmul %0, %1, %cst {dimension_numbers = #tpu.dot_dimension_numbers<[1], [0], [0], [1], [0, 0, 1, 1], [], []>} : vector<48x256xbf16>, vector<256x512xbf16>, vector<48x512xf32> -> vector<48x512xf32>
    %c0_3 = arith.constant 0 : index
    %c0_4 = arith.constant 0 : index
    %3 = vector.load %arg5[%c0_3, %c0_4] : memref<1x512xf32, #tpu.memory_space<vmem>>, vector<1x512xf32>
    %4 = vector.broadcast %3 : vector<1x512xf32> to vector<48x512xf32>
    %5 = arith.addf %2, %4 : vector<48x512xf32>
    %cst_5 = arith.constant 0.000000e+00 : f32
    %6 = vector.broadcast %cst_5 : f32 to vector<8x128xf32>
    %cst_6 = arith.constant 0.000000e+00 : f32
    %7 = vector.broadcast %cst_6 : f32 to vector<8x128xf32>
    %8 = vector.extract_strided_slice %5 {offsets = [0, 0], sizes = [8, 512], strides = [1, 1]} : vector<48x512xf32> to vector<8x512xf32>
    %9 = arith.truncf %6 : vector<8x128xf32> to vector<8x128xbf16>
    %c0_7 = arith.constant 0 : index
    %c0_8 = arith.constant 0 : index
    %10 = vector.load %arg4[%c0_7, %c0_8] : memref<128x512xbf16, #tpu.memory_space<vmem>>, vector<128x512xbf16>
    %cst_9 = arith.constant dense<0.000000e+00> : vector<8x512xf32>
    %11 = tpu.matmul %9, %10, %cst_9 {dimension_numbers = #tpu.dot_dimension_numbers<[1], [0], [0], [1], [0, 0, 1, 1], [], []>} : vector<8x128xbf16>, vector<128x512xbf16>, vector<8x512xf32> -> vector<8x512xf32>
    %12 = arith.addf %8, %11 : vector<8x512xf32>
    %13 = vector.extract_strided_slice %12 {offsets = [0, 0], sizes = [8, 128], strides = [1, 1]} : vector<8x512xf32> to vector<8x128xf32>
    %cst_10 = arith.constant 5.000000e-01 : f32
    %14 = vector.broadcast %cst_10 : f32 to vector<8x128xf32>
    %15 = arith.mulf %14, %13 : vector<8x128xf32>
    %16 = math.tanh %15 : vector<8x128xf32>
    %cst_11 = arith.constant 5.000000e-01 : f32
    %17 = vector.broadcast %cst_11 : f32 to vector<8x128xf32>
    %18 = arith.mulf %17, %16 : vector<8x128xf32>
    %cst_12 = arith.constant 5.000000e-01 : f32
    %19 = vector.broadcast %cst_12 : f32 to vector<8x128xf32>
    %20 = arith.addf %18, %19 : vector<8x128xf32>
    %21 = vector.extract_strided_slice %12 {offsets = [0, 128], sizes = [8, 128], strides = [1, 1]} : vector<8x512xf32> to vector<8x128xf32>
    %cst_13 = arith.constant 5.000000e-01 : f32
    %22 = vector.broadcast %cst_13 : f32 to vector<8x128xf32>
    %23 = arith.mulf %22, %21 : vector<8x128xf32>
    %24 = math.tanh %23 : vector<8x128xf32>
    %cst_14 = arith.constant 5.000000e-01 : f32
    %25 = vector.broadcast %cst_14 : f32 to vector<8x128xf32>
    %26 = arith.mulf %25, %24 : vector<8x128xf32>
    %cst_15 = arith.constant 5.000000e-01 : f32
    %27 = vector.broadcast %cst_15 : f32 to vector<8x128xf32>
    %28 = arith.addf %26, %27 : vector<8x128xf32>
    %29 = vector.extract_strided_slice %12 {offsets = [0, 256], sizes = [8, 128], strides = [1, 1]} : vector<8x512xf32> to vector<8x128xf32>
    %30 = math.tanh %29 : vector<8x128xf32>
    %31 = vector.extract_strided_slice %12 {offsets = [0, 384], sizes = [8, 128], strides = [1, 1]} : vector<8x512xf32> to vector<8x128xf32>
    %cst_16 = arith.constant 5.000000e-01 : f32
    %32 = vector.broadcast %cst_16 : f32 to vector<8x128xf32>
    %33 = arith.mulf %32, %31 : vector<8x128xf32>
    %34 = math.tanh %33 : vector<8x128xf32>
    %cst_17 = arith.constant 5.000000e-01 : f32
    %35 = vector.broadcast %cst_17 : f32 to vector<8x128xf32>
    %36 = arith.mulf %35, %34 : vector<8x128xf32>
    %cst_18 = arith.constant 5.000000e-01 : f32
    %37 = vector.broadcast %cst_18 : f32 to vector<8x128xf32>
    %38 = arith.addf %36, %37 : vector<8x128xf32>
    %39 = arith.mulf %28, %7 : vector<8x128xf32>
    %40 = arith.mulf %20, %30 : vector<8x128xf32>
    %41 = arith.addf %39, %40 : vector<8x128xf32>
    %42 = math.tanh %41 : vector<8x128xf32>
    %43 = arith.mulf %38, %42 : vector<8x128xf32>
    %44 = vector.extract_strided_slice %5 {offsets = [8, 0], sizes = [8, 512], strides = [1, 1]} : vector<48x512xf32> to vector<8x512xf32>
    %45 = arith.truncf %43 : vector<8x128xf32> to vector<8x128xbf16>
    %c0_19 = arith.constant 0 : index
    %c0_20 = arith.constant 0 : index
    %46 = vector.load %arg4[%c0_19, %c0_20] : memref<128x512xbf16, #tpu.memory_space<vmem>>, vector<128x512xbf16>
    %cst_21 = arith.constant dense<0.000000e+00> : vector<8x512xf32>
    %47 = tpu.matmul %45, %46, %cst_21 {dimension_numbers = #tpu.dot_dimension_numbers<[1], [0], [0], [1], [0, 0, 1, 1], [], []>} : vector<8x128xbf16>, vector<128x512xbf16>, vector<8x512xf32> -> vector<8x512xf32>
    %48 = arith.addf %44, %47 : vector<8x512xf32>
    %49 = vector.extract_strided_slice %48 {offsets = [0, 0], sizes = [8, 128], strides = [1, 1]} : vector<8x512xf32> to vector<8x128xf32>
    %cst_22 = arith.constant 5.000000e-01 : f32
    %50 = vector.broadcast %cst_22 : f32 to vector<8x128xf32>
    %51 = arith.mulf %50, %49 : vector<8x128xf32>
    %52 = math.tanh %51 : vector<8x128xf32>
    %cst_23 = arith.constant 5.000000e-01 : f32
    %53 = vector.broadcast %cst_23 : f32 to vector<8x128xf32>
    %54 = arith.mulf %53, %52 : vector<8x128xf32>
    %cst_24 = arith.constant 5.000000e-01 : f32
    %55 = vector.broadcast %cst_24 : f32 to vector<8x128xf32>
    %56 = arith.addf %54, %55 : vector<8x128xf32>
    %57 = vector.extract_strided_slice %48 {offsets = [0, 128], sizes = [8, 128], strides = [1, 1]} : vector<8x512xf32> to vector<8x128xf32>
    %cst_25 = arith.constant 5.000000e-01 : f32
    %58 = vector.broadcast %cst_25 : f32 to vector<8x128xf32>
    %59 = arith.mulf %58, %57 : vector<8x128xf32>
    %60 = math.tanh %59 : vector<8x128xf32>
    %cst_26 = arith.constant 5.000000e-01 : f32
    %61 = vector.broadcast %cst_26 : f32 to vector<8x128xf32>
    %62 = arith.mulf %61, %60 : vector<8x128xf32>
    %cst_27 = arith.constant 5.000000e-01 : f32
    %63 = vector.broadcast %cst_27 : f32 to vector<8x128xf32>
    %64 = arith.addf %62, %63 : vector<8x128xf32>
    %65 = vector.extract_strided_slice %48 {offsets = [0, 256], sizes = [8, 128], strides = [1, 1]} : vector<8x512xf32> to vector<8x128xf32>
    %66 = math.tanh %65 : vector<8x128xf32>
    %67 = vector.extract_strided_slice %48 {offsets = [0, 384], sizes = [8, 128], strides = [1, 1]} : vector<8x512xf32> to vector<8x128xf32>
    %cst_28 = arith.constant 5.000000e-01 : f32
    %68 = vector.broadcast %cst_28 : f32 to vector<8x128xf32>
    %69 = arith.mulf %68, %67 : vector<8x128xf32>
    %70 = math.tanh %69 : vector<8x128xf32>
    %cst_29 = arith.constant 5.000000e-01 : f32
    %71 = vector.broadcast %cst_29 : f32 to vector<8x128xf32>
    %72 = arith.mulf %71, %70 : vector<8x128xf32>
    %cst_30 = arith.constant 5.000000e-01 : f32
    %73 = vector.broadcast %cst_30 : f32 to vector<8x128xf32>
    %74 = arith.addf %72, %73 : vector<8x128xf32>
    %75 = arith.mulf %64, %41 : vector<8x128xf32>
    %76 = arith.mulf %56, %66 : vector<8x128xf32>
    %77 = arith.addf %75, %76 : vector<8x128xf32>
    %78 = math.tanh %77 : vector<8x128xf32>
    %79 = arith.mulf %74, %78 : vector<8x128xf32>
    %80 = vector.extract_strided_slice %5 {offsets = [16, 0], sizes = [8, 512], strides = [1, 1]} : vector<48x512xf32> to vector<8x512xf32>
    %81 = arith.truncf %79 : vector<8x128xf32> to vector<8x128xbf16>
    %c0_31 = arith.constant 0 : index
    %c0_32 = arith.constant 0 : index
    %82 = vector.load %arg4[%c0_31, %c0_32] : memref<128x512xbf16, #tpu.memory_space<vmem>>, vector<128x512xbf16>
    %cst_33 = arith.constant dense<0.000000e+00> : vector<8x512xf32>
    %83 = tpu.matmul %81, %82, %cst_33 {dimension_numbers = #tpu.dot_dimension_numbers<[1], [0], [0], [1], [0, 0, 1, 1], [], []>} : vector<8x128xbf16>, vector<128x512xbf16>, vector<8x512xf32> -> vector<8x512xf32>
    %84 = arith.addf %80, %83 : vector<8x512xf32>
    %85 = vector.extract_strided_slice %84 {offsets = [0, 0], sizes = [8, 128], strides = [1, 1]} : vector<8x512xf32> to vector<8x128xf32>
    %cst_34 = arith.constant 5.000000e-01 : f32
    %86 = vector.broadcast %cst_34 : f32 to vector<8x128xf32>
    %87 = arith.mulf %86, %85 : vector<8x128xf32>
    %88 = math.tanh %87 : vector<8x128xf32>
    %cst_35 = arith.constant 5.000000e-01 : f32
    %89 = vector.broadcast %cst_35 : f32 to vector<8x128xf32>
    %90 = arith.mulf %89, %88 : vector<8x128xf32>
    %cst_36 = arith.constant 5.000000e-01 : f32
    %91 = vector.broadcast %cst_36 : f32 to vector<8x128xf32>
    %92 = arith.addf %90, %91 : vector<8x128xf32>
    %93 = vector.extract_strided_slice %84 {offsets = [0, 128], sizes = [8, 128], strides = [1, 1]} : vector<8x512xf32> to vector<8x128xf32>
    %cst_37 = arith.constant 5.000000e-01 : f32
    %94 = vector.broadcast %cst_37 : f32 to vector<8x128xf32>
    %95 = arith.mulf %94, %93 : vector<8x128xf32>
    %96 = math.tanh %95 : vector<8x128xf32>
    %cst_38 = arith.constant 5.000000e-01 : f32
    %97 = vector.broadcast %cst_38 : f32 to vector<8x128xf32>
    %98 = arith.mulf %97, %96 : vector<8x128xf32>
    %cst_39 = arith.constant 5.000000e-01 : f32
    %99 = vector.broadcast %cst_39 : f32 to vector<8x128xf32>
    %100 = arith.addf %98, %99 : vector<8x128xf32>
    %101 = vector.extract_strided_slice %84 {offsets = [0, 256], sizes = [8, 128], strides = [1, 1]} : vector<8x512xf32> to vector<8x128xf32>
    %102 = math.tanh %101 : vector<8x128xf32>
    %103 = vector.extract_strided_slice %84 {offsets = [0, 384], sizes = [8, 128], strides = [1, 1]} : vector<8x512xf32> to vector<8x128xf32>
    %cst_40 = arith.constant 5.000000e-01 : f32
    %104 = vector.broadcast %cst_40 : f32 to vector<8x128xf32>
    %105 = arith.mulf %104, %103 : vector<8x128xf32>
    %106 = math.tanh %105 : vector<8x128xf32>
    %cst_41 = arith.constant 5.000000e-01 : f32
    %107 = vector.broadcast %cst_41 : f32 to vector<8x128xf32>
    %108 = arith.mulf %107, %106 : vector<8x128xf32>
    %cst_42 = arith.constant 5.000000e-01 : f32
    %109 = vector.broadcast %cst_42 : f32 to vector<8x128xf32>
    %110 = arith.addf %108, %109 : vector<8x128xf32>
    %111 = arith.mulf %100, %77 : vector<8x128xf32>
    %112 = arith.mulf %92, %102 : vector<8x128xf32>
    %113 = arith.addf %111, %112 : vector<8x128xf32>
    %114 = math.tanh %113 : vector<8x128xf32>
    %115 = arith.mulf %110, %114 : vector<8x128xf32>
    %116 = vector.extract_strided_slice %5 {offsets = [24, 0], sizes = [8, 512], strides = [1, 1]} : vector<48x512xf32> to vector<8x512xf32>
    %117 = arith.truncf %115 : vector<8x128xf32> to vector<8x128xbf16>
    %c0_43 = arith.constant 0 : index
    %c0_44 = arith.constant 0 : index
    %118 = vector.load %arg4[%c0_43, %c0_44] : memref<128x512xbf16, #tpu.memory_space<vmem>>, vector<128x512xbf16>
    %cst_45 = arith.constant dense<0.000000e+00> : vector<8x512xf32>
    %119 = tpu.matmul %117, %118, %cst_45 {dimension_numbers = #tpu.dot_dimension_numbers<[1], [0], [0], [1], [0, 0, 1, 1], [], []>} : vector<8x128xbf16>, vector<128x512xbf16>, vector<8x512xf32> -> vector<8x512xf32>
    %120 = arith.addf %116, %119 : vector<8x512xf32>
    %121 = vector.extract_strided_slice %120 {offsets = [0, 0], sizes = [8, 128], strides = [1, 1]} : vector<8x512xf32> to vector<8x128xf32>
    %cst_46 = arith.constant 5.000000e-01 : f32
    %122 = vector.broadcast %cst_46 : f32 to vector<8x128xf32>
    %123 = arith.mulf %122, %121 : vector<8x128xf32>
    %124 = math.tanh %123 : vector<8x128xf32>
    %cst_47 = arith.constant 5.000000e-01 : f32
    %125 = vector.broadcast %cst_47 : f32 to vector<8x128xf32>
    %126 = arith.mulf %125, %124 : vector<8x128xf32>
    %cst_48 = arith.constant 5.000000e-01 : f32
    %127 = vector.broadcast %cst_48 : f32 to vector<8x128xf32>
    %128 = arith.addf %126, %127 : vector<8x128xf32>
    %129 = vector.extract_strided_slice %120 {offsets = [0, 128], sizes = [8, 128], strides = [1, 1]} : vector<8x512xf32> to vector<8x128xf32>
    %cst_49 = arith.constant 5.000000e-01 : f32
    %130 = vector.broadcast %cst_49 : f32 to vector<8x128xf32>
    %131 = arith.mulf %130, %129 : vector<8x128xf32>
    %132 = math.tanh %131 : vector<8x128xf32>
    %cst_50 = arith.constant 5.000000e-01 : f32
    %133 = vector.broadcast %cst_50 : f32 to vector<8x128xf32>
    %134 = arith.mulf %133, %132 : vector<8x128xf32>
    %cst_51 = arith.constant 5.000000e-01 : f32
    %135 = vector.broadcast %cst_51 : f32 to vector<8x128xf32>
    %136 = arith.addf %134, %135 : vector<8x128xf32>
    %137 = vector.extract_strided_slice %120 {offsets = [0, 256], sizes = [8, 128], strides = [1, 1]} : vector<8x512xf32> to vector<8x128xf32>
    %138 = math.tanh %137 : vector<8x128xf32>
    %139 = vector.extract_strided_slice %120 {offsets = [0, 384], sizes = [8, 128], strides = [1, 1]} : vector<8x512xf32> to vector<8x128xf32>
    %cst_52 = arith.constant 5.000000e-01 : f32
    %140 = vector.broadcast %cst_52 : f32 to vector<8x128xf32>
    %141 = arith.mulf %140, %139 : vector<8x128xf32>
    %142 = math.tanh %141 : vector<8x128xf32>
    %cst_53 = arith.constant 5.000000e-01 : f32
    %143 = vector.broadcast %cst_53 : f32 to vector<8x128xf32>
    %144 = arith.mulf %143, %142 : vector<8x128xf32>
    %cst_54 = arith.constant 5.000000e-01 : f32
    %145 = vector.broadcast %cst_54 : f32 to vector<8x128xf32>
    %146 = arith.addf %144, %145 : vector<8x128xf32>
    %147 = arith.mulf %136, %113 : vector<8x128xf32>
    %148 = arith.mulf %128, %138 : vector<8x128xf32>
    %149 = arith.addf %147, %148 : vector<8x128xf32>
    %150 = math.tanh %149 : vector<8x128xf32>
    %151 = arith.mulf %146, %150 : vector<8x128xf32>
    %152 = vector.extract_strided_slice %5 {offsets = [32, 0], sizes = [8, 512], strides = [1, 1]} : vector<48x512xf32> to vector<8x512xf32>
    %153 = arith.truncf %151 : vector<8x128xf32> to vector<8x128xbf16>
    %c0_55 = arith.constant 0 : index
    %c0_56 = arith.constant 0 : index
    %154 = vector.load %arg4[%c0_55, %c0_56] : memref<128x512xbf16, #tpu.memory_space<vmem>>, vector<128x512xbf16>
    %cst_57 = arith.constant dense<0.000000e+00> : vector<8x512xf32>
    %155 = tpu.matmul %153, %154, %cst_57 {dimension_numbers = #tpu.dot_dimension_numbers<[1], [0], [0], [1], [0, 0, 1, 1], [], []>} : vector<8x128xbf16>, vector<128x512xbf16>, vector<8x512xf32> -> vector<8x512xf32>
    %156 = arith.addf %152, %155 : vector<8x512xf32>
    %157 = vector.extract_strided_slice %156 {offsets = [0, 0], sizes = [8, 128], strides = [1, 1]} : vector<8x512xf32> to vector<8x128xf32>
    %cst_58 = arith.constant 5.000000e-01 : f32
    %158 = vector.broadcast %cst_58 : f32 to vector<8x128xf32>
    %159 = arith.mulf %158, %157 : vector<8x128xf32>
    %160 = math.tanh %159 : vector<8x128xf32>
    %cst_59 = arith.constant 5.000000e-01 : f32
    %161 = vector.broadcast %cst_59 : f32 to vector<8x128xf32>
    %162 = arith.mulf %161, %160 : vector<8x128xf32>
    %cst_60 = arith.constant 5.000000e-01 : f32
    %163 = vector.broadcast %cst_60 : f32 to vector<8x128xf32>
    %164 = arith.addf %162, %163 : vector<8x128xf32>
    %165 = vector.extract_strided_slice %156 {offsets = [0, 128], sizes = [8, 128], strides = [1, 1]} : vector<8x512xf32> to vector<8x128xf32>
    %cst_61 = arith.constant 5.000000e-01 : f32
    %166 = vector.broadcast %cst_61 : f32 to vector<8x128xf32>
    %167 = arith.mulf %166, %165 : vector<8x128xf32>
    %168 = math.tanh %167 : vector<8x128xf32>
    %cst_62 = arith.constant 5.000000e-01 : f32
    %169 = vector.broadcast %cst_62 : f32 to vector<8x128xf32>
    %170 = arith.mulf %169, %168 : vector<8x128xf32>
    %cst_63 = arith.constant 5.000000e-01 : f32
    %171 = vector.broadcast %cst_63 : f32 to vector<8x128xf32>
    %172 = arith.addf %170, %171 : vector<8x128xf32>
    %173 = vector.extract_strided_slice %156 {offsets = [0, 256], sizes = [8, 128], strides = [1, 1]} : vector<8x512xf32> to vector<8x128xf32>
    %174 = math.tanh %173 : vector<8x128xf32>
    %175 = vector.extract_strided_slice %156 {offsets = [0, 384], sizes = [8, 128], strides = [1, 1]} : vector<8x512xf32> to vector<8x128xf32>
    %cst_64 = arith.constant 5.000000e-01 : f32
    %176 = vector.broadcast %cst_64 : f32 to vector<8x128xf32>
    %177 = arith.mulf %176, %175 : vector<8x128xf32>
    %178 = math.tanh %177 : vector<8x128xf32>
    %cst_65 = arith.constant 5.000000e-01 : f32
    %179 = vector.broadcast %cst_65 : f32 to vector<8x128xf32>
    %180 = arith.mulf %179, %178 : vector<8x128xf32>
    %cst_66 = arith.constant 5.000000e-01 : f32
    %181 = vector.broadcast %cst_66 : f32 to vector<8x128xf32>
    %182 = arith.addf %180, %181 : vector<8x128xf32>
    %183 = arith.mulf %172, %149 : vector<8x128xf32>
    %184 = arith.mulf %164, %174 : vector<8x128xf32>
    %185 = arith.addf %183, %184 : vector<8x128xf32>
    %186 = math.tanh %185 : vector<8x128xf32>
    %187 = arith.mulf %182, %186 : vector<8x128xf32>
    %188 = vector.extract_strided_slice %5 {offsets = [40, 0], sizes = [8, 512], strides = [1, 1]} : vector<48x512xf32> to vector<8x512xf32>
    %189 = arith.truncf %187 : vector<8x128xf32> to vector<8x128xbf16>
    %c0_67 = arith.constant 0 : index
    %c0_68 = arith.constant 0 : index
    %190 = vector.load %arg4[%c0_67, %c0_68] : memref<128x512xbf16, #tpu.memory_space<vmem>>, vector<128x512xbf16>
    %cst_69 = arith.constant dense<0.000000e+00> : vector<8x512xf32>
    %191 = tpu.matmul %189, %190, %cst_69 {dimension_numbers = #tpu.dot_dimension_numbers<[1], [0], [0], [1], [0, 0, 1, 1], [], []>} : vector<8x128xbf16>, vector<128x512xbf16>, vector<8x512xf32> -> vector<8x512xf32>
    %192 = arith.addf %188, %191 : vector<8x512xf32>
    %193 = vector.extract_strided_slice %192 {offsets = [0, 0], sizes = [8, 128], strides = [1, 1]} : vector<8x512xf32> to vector<8x128xf32>
    %cst_70 = arith.constant 5.000000e-01 : f32
    %194 = vector.broadcast %cst_70 : f32 to vector<8x128xf32>
    %195 = arith.mulf %194, %193 : vector<8x128xf32>
    %196 = math.tanh %195 : vector<8x128xf32>
    %cst_71 = arith.constant 5.000000e-01 : f32
    %197 = vector.broadcast %cst_71 : f32 to vector<8x128xf32>
    %198 = arith.mulf %197, %196 : vector<8x128xf32>
    %cst_72 = arith.constant 5.000000e-01 : f32
    %199 = vector.broadcast %cst_72 : f32 to vector<8x128xf32>
    %200 = arith.addf %198, %199 : vector<8x128xf32>
    %201 = vector.extract_strided_slice %192 {offsets = [0, 128], sizes = [8, 128], strides = [1, 1]} : vector<8x512xf32> to vector<8x128xf32>
    %cst_73 = arith.constant 5.000000e-01 : f32
    %202 = vector.broadcast %cst_73 : f32 to vector<8x128xf32>
    %203 = arith.mulf %202, %201 : vector<8x128xf32>
    %204 = math.tanh %203 : vector<8x128xf32>
    %cst_74 = arith.constant 5.000000e-01 : f32
    %205 = vector.broadcast %cst_74 : f32 to vector<8x128xf32>
    %206 = arith.mulf %205, %204 : vector<8x128xf32>
    %cst_75 = arith.constant 5.000000e-01 : f32
    %207 = vector.broadcast %cst_75 : f32 to vector<8x128xf32>
    %208 = arith.addf %206, %207 : vector<8x128xf32>
    %209 = vector.extract_strided_slice %192 {offsets = [0, 256], sizes = [8, 128], strides = [1, 1]} : vector<8x512xf32> to vector<8x128xf32>
    %210 = math.tanh %209 : vector<8x128xf32>
    %211 = vector.extract_strided_slice %192 {offsets = [0, 384], sizes = [8, 128], strides = [1, 1]} : vector<8x512xf32> to vector<8x128xf32>
    %cst_76 = arith.constant 5.000000e-01 : f32
    %212 = vector.broadcast %cst_76 : f32 to vector<8x128xf32>
    %213 = arith.mulf %212, %211 : vector<8x128xf32>
    %214 = math.tanh %213 : vector<8x128xf32>
    %cst_77 = arith.constant 5.000000e-01 : f32
    %215 = vector.broadcast %cst_77 : f32 to vector<8x128xf32>
    %216 = arith.mulf %215, %214 : vector<8x128xf32>
    %cst_78 = arith.constant 5.000000e-01 : f32
    %217 = vector.broadcast %cst_78 : f32 to vector<8x128xf32>
    %218 = arith.addf %216, %217 : vector<8x128xf32>
    %219 = arith.mulf %208, %185 : vector<8x128xf32>
    %220 = arith.mulf %200, %210 : vector<8x128xf32>
    %221 = arith.addf %219, %220 : vector<8x128xf32>
    %222 = math.tanh %221 : vector<8x128xf32>
    %223 = arith.mulf %218, %222 : vector<8x128xf32>
    %224 = arith.truncf %223 : vector<8x128xf32> to vector<8x128xbf16>
    %c0_79 = arith.constant 0 : index
    %c0_80 = arith.constant 0 : index
    %225 = vector.load %arg6[%c0_79, %c0_80] : memref<128x512xbf16, #tpu.memory_space<vmem>>, vector<128x512xbf16>
    %cst_81 = arith.constant dense<0.000000e+00> : vector<8x512xf32>
    %226 = tpu.matmul %224, %225, %cst_81 {dimension_numbers = #tpu.dot_dimension_numbers<[1], [0], [0], [1], [0, 0, 1, 1], [], []>} : vector<8x128xbf16>, vector<128x512xbf16>, vector<8x512xf32> -> vector<8x512xf32>
    %c0_82 = arith.constant 0 : index
    %c0_83 = arith.constant 0 : index
    %227 = vector.load %arg2[%c0_82, %c0_83] : memref<8x640xbf16, #tpu.memory_space<vmem>>, vector<8x640xbf16>
    %c0_84 = arith.constant 0 : index
    %c0_85 = arith.constant 0 : index
    %228 = vector.load %arg7[%c0_84, %c0_85] : memref<640x512xbf16, #tpu.memory_space<vmem>>, vector<640x512xbf16>
    %cst_86 = arith.constant dense<0.000000e+00> : vector<8x512xf32>
    %229 = tpu.matmul %227, %228, %cst_86 {dimension_numbers = #tpu.dot_dimension_numbers<[1], [0], [0], [1], [0, 0, 1, 1], [], []>} : vector<8x640xbf16>, vector<640x512xbf16>, vector<8x512xf32> -> vector<8x512xf32>
    %230 = arith.addf %226, %229 : vector<8x512xf32>
    %c0_87 = arith.constant 0 : index
    %c0_88 = arith.constant 0 : index
    %231 = vector.load %arg8[%c0_87, %c0_88] : memref<1x512xf32, #tpu.memory_space<vmem>>, vector<1x512xf32>
    %232 = vector.broadcast %231 : vector<1x512xf32> to vector<8x512xf32>
    %233 = arith.addf %230, %232 : vector<8x512xf32>
    %234 = arith.truncf %233 : vector<8x512xf32> to vector<8x512xbf16>
    %c0_89 = arith.constant 0 : index
    %c0_90 = arith.constant 0 : index
    %235 = vector.load %arg9[%c0_89, %c0_90] : memref<512x512xbf16, #tpu.memory_space<vmem>>, vector<512x512xbf16>
    %cst_91 = arith.constant dense<0.000000e+00> : vector<8x512xf32>
    %236 = tpu.matmul %234, %235, %cst_91 {dimension_numbers = #tpu.dot_dimension_numbers<[1], [0], [0], [1], [0, 0, 1, 1], [], []>} : vector<8x512xbf16>, vector<512x512xbf16>, vector<8x512xf32> -> vector<8x512xf32>
    %c0_92 = arith.constant 0 : index
    %c0_93 = arith.constant 0 : index
    %237 = vector.load %arg10[%c0_92, %c0_93] : memref<1x512xf32, #tpu.memory_space<vmem>>, vector<1x512xf32>
    %238 = vector.broadcast %237 : vector<1x512xf32> to vector<8x512xf32>
    %239 = arith.addf %236, %238 : vector<8x512xf32>
    %240 = arith.addf %239, %233 : vector<8x512xf32>
    %cst_94 = arith.constant 0.000000e+00 : f32
    %241 = vector.broadcast %cst_94 : f32 to vector<8x512xf32>
    %242 = arith.maximumf %240, %241 : vector<8x512xf32>
    %243 = arith.truncf %242 : vector<8x512xf32> to vector<8x512xbf16>
    %c0_95 = arith.constant 0 : index
    %c0_96 = arith.constant 0 : index
    %244 = vector.load %arg11[%c0_95, %c0_96] : memref<512x512xbf16, #tpu.memory_space<vmem>>, vector<512x512xbf16>
    %cst_97 = arith.constant dense<0.000000e+00> : vector<8x512xf32>
    %245 = tpu.matmul %243, %244, %cst_97 {dimension_numbers = #tpu.dot_dimension_numbers<[1], [0], [0], [1], [0, 0, 1, 1], [], []>} : vector<8x512xbf16>, vector<512x512xbf16>, vector<8x512xf32> -> vector<8x512xf32>
    %c0_98 = arith.constant 0 : index
    %c0_99 = arith.constant 0 : index
    %246 = vector.load %arg12[%c0_98, %c0_99] : memref<1x512xf32, #tpu.memory_space<vmem>>, vector<1x512xf32>
    %247 = vector.broadcast %246 : vector<1x512xf32> to vector<8x512xf32>
    %248 = arith.addf %245, %247 : vector<8x512xf32>
    %249 = arith.addf %248, %242 : vector<8x512xf32>
    %cst_100 = arith.constant 0.000000e+00 : f32
    %250 = vector.broadcast %cst_100 : f32 to vector<8x512xf32>
    %251 = arith.maximumf %249, %250 : vector<8x512xf32>
    %252 = arith.truncf %251 : vector<8x512xf32> to vector<8x512xbf16>
    %c0_101 = arith.constant 0 : index
    %c0_102 = arith.constant 0 : index
    %253 = vector.load %arg13[%c0_101, %c0_102] : memref<512x512xbf16, #tpu.memory_space<vmem>>, vector<512x512xbf16>
    %cst_103 = arith.constant dense<0.000000e+00> : vector<8x512xf32>
    %254 = tpu.matmul %252, %253, %cst_103 {dimension_numbers = #tpu.dot_dimension_numbers<[1], [0], [0], [1], [0, 0, 1, 1], [], []>} : vector<8x512xbf16>, vector<512x512xbf16>, vector<8x512xf32> -> vector<8x512xf32>
    %c0_104 = arith.constant 0 : index
    %c0_105 = arith.constant 0 : index
    %255 = vector.load %arg14[%c0_104, %c0_105] : memref<1x512xf32, #tpu.memory_space<vmem>>, vector<1x512xf32>
    %256 = vector.broadcast %255 : vector<1x512xf32> to vector<8x512xf32>
    %257 = arith.addf %254, %256 : vector<8x512xf32>
    %258 = arith.addf %257, %251 : vector<8x512xf32>
    %cst_106 = arith.constant 0.000000e+00 : f32
    %259 = vector.broadcast %cst_106 : f32 to vector<8x512xf32>
    %260 = arith.maximumf %258, %259 : vector<8x512xf32>
    %261 = arith.truncf %260 : vector<8x512xf32> to vector<8x512xbf16>
    %c0_107 = arith.constant 0 : index
    %c0_108 = arith.constant 0 : index
    %262 = vector.load %arg15[%c0_107, %c0_108] : memref<512x512xbf16, #tpu.memory_space<vmem>>, vector<512x512xbf16>
    %cst_109 = arith.constant dense<0.000000e+00> : vector<8x512xf32>
    %263 = tpu.matmul %261, %262, %cst_109 {dimension_numbers = #tpu.dot_dimension_numbers<[1], [0], [0], [1], [0, 0, 1, 1], [], []>} : vector<8x512xbf16>, vector<512x512xbf16>, vector<8x512xf32> -> vector<8x512xf32>
    %c0_110 = arith.constant 0 : index
    %c0_111 = arith.constant 0 : index
    %264 = vector.load %arg16[%c0_110, %c0_111] : memref<1x512xf32, #tpu.memory_space<vmem>>, vector<1x512xf32>
    %265 = vector.broadcast %264 : vector<1x512xf32> to vector<8x512xf32>
    %266 = arith.addf %263, %265 : vector<8x512xf32>
    %267 = arith.addf %266, %260 : vector<8x512xf32>
    %cst_112 = arith.constant 0.000000e+00 : f32
    %268 = vector.broadcast %cst_112 : f32 to vector<8x512xf32>
    %269 = arith.maximumf %267, %268 : vector<8x512xf32>
    %270 = arith.truncf %269 : vector<8x512xf32> to vector<8x512xbf16>
    %c0_113 = arith.constant 0 : index
    %c0_114 = arith.constant 0 : index
    %271 = vector.load %arg17[%c0_113, %c0_114] : memref<512x128xbf16, #tpu.memory_space<vmem>>, vector<512x128xbf16>
    %cst_115 = arith.constant dense<0.000000e+00> : vector<8x128xf32>
    %272 = tpu.matmul %270, %271, %cst_115 {dimension_numbers = #tpu.dot_dimension_numbers<[1], [0], [0], [1], [0, 0, 1, 1], [], []>} : vector<8x512xbf16>, vector<512x128xbf16>, vector<8x128xf32> -> vector<8x128xf32>
    %c0_116 = arith.constant 0 : index
    %c0_117 = arith.constant 0 : index
    %273 = vector.load %arg18[%c0_116, %c0_117] : memref<1x128xf32, #tpu.memory_space<vmem>>, vector<1x128xf32>
    %274 = vector.broadcast %273 : vector<1x128xf32> to vector<8x128xf32>
    %275 = arith.addf %272, %274 : vector<8x128xf32>
    %c0_118 = arith.constant 0 : index
    %c0_119 = arith.constant 0 : index
    %276 = vector.load %arg19[%c0_118, %c0_119] : memref<8x128xf32, #tpu.memory_space<vmem>>, vector<8x128xf32>
    tpu.vector_store %arg19[%c0_118, %c0_119], %275 {strides = array<i32>} : memref<8x128xf32, #tpu.memory_space<vmem>>, vector<8x128xf32>,
    return
  }
  func.func @transform_0(%arg0: i32) -> (i32, i32) {
    %c0_i32 = arith.constant 0 : i32
    %c0_i32_0 = arith.constant 0 : i32
    return %arg0, %c0_i32 : i32, i32
  }
  func.func @transform_1(%arg0: i32) -> (i32, i32) {
    %c0_i32 = arith.constant 0 : i32
    %c0_i32_0 = arith.constant 0 : i32
    return %arg0, %c0_i32 : i32, i32
  }
  func.func @transform_2(%arg0: i32) -> (i32, i32) {
    %c0_i32 = arith.constant 0 : i32
    %c0_i32_0 = arith.constant 0 : i32
    %c0_i32_1 = arith.constant 0 : i32
    return %c0_i32, %c0_i32_0 : i32, i32
  }
  func.func @transform_3(%arg0: i32) -> (i32, i32) {
    %c0_i32 = arith.constant 0 : i32
    %c0_i32_0 = arith.constant 0 : i32
    %c0_i32_1 = arith.constant 0 : i32
    return %c0_i32, %c0_i32_0 : i32, i32
  }
  func.func @transform_4(%arg0: i32) -> (i32, i32) {
    %c0_i32 = arith.constant 0 : i32
    %c0_i32_0 = arith.constant 0 : i32
    %c0_i32_1 = arith.constant 0 : i32
    return %c0_i32, %c0_i32_0 : i32, i32
  }
  func.func @transform_5(%arg0: i32) -> (i32, i32) {
    %c0_i32 = arith.constant 0 : i32
    %c0_i32_0 = arith.constant 0 : i32
    %c0_i32_1 = arith.constant 0 : i32
    return %c0_i32, %c0_i32_0 : i32, i32
  }
  func.func @transform_6(%arg0: i32) -> (i32, i32) {
    %c0_i32 = arith.constant 0 : i32
    %c0_i32_0 = arith.constant 0 : i32
    %c0_i32_1 = arith.constant 0 : i32
    return %c0_i32, %c0_i32_0 : i32, i32
  }
  func.func @transform_7(%arg0: i32) -> (i32, i32) {
    %c0_i32 = arith.constant 0 : i32
    %c0_i32_0 = arith.constant 0 : i32
    %c0_i32_1 = arith.constant 0 : i32
    return %c0_i32, %c0_i32_0 : i32, i32
  }
  func.func @transform_8(%arg0: i32) -> (i32, i32) {
    %c0_i32 = arith.constant 0 : i32
    %c0_i32_0 = arith.constant 0 : i32
    %c0_i32_1 = arith.constant 0 : i32
    return %c0_i32, %c0_i32_0 : i32, i32
  }
  func.func @transform_9(%arg0: i32) -> (i32, i32) {
    %c0_i32 = arith.constant 0 : i32
    %c0_i32_0 = arith.constant 0 : i32
    %c0_i32_1 = arith.constant 0 : i32
    return %c0_i32, %c0_i32_0 : i32, i32
  }
  func.func @transform_10(%arg0: i32) -> (i32, i32) {
    %c0_i32 = arith.constant 0 : i32
    %c0_i32_0 = arith.constant 0 : i32
    %c0_i32_1 = arith.constant 0 : i32
    return %c0_i32, %c0_i32_0 : i32, i32
  }
  func.func @transform_11(%arg0: i32) -> (i32, i32) {
    %c0_i32 = arith.constant 0 : i32
    %c0_i32_0 = arith.constant 0 : i32
    %c0_i32_1 = arith.constant 0 : i32
    return %c0_i32, %c0_i32_0 : i32, i32
  }
  func.func @transform_12(%arg0: i32) -> (i32, i32) {
    %c0_i32 = arith.constant 0 : i32
    %c0_i32_0 = arith.constant 0 : i32
    %c0_i32_1 = arith.constant 0 : i32
    return %c0_i32, %c0_i32_0 : i32, i32
  }
  func.func @transform_13(%arg0: i32) -> (i32, i32) {
    %c0_i32 = arith.constant 0 : i32
    %c0_i32_0 = arith.constant 0 : i32
    %c0_i32_1 = arith.constant 0 : i32
    return %c0_i32, %c0_i32_0 : i32, i32
  }
  func.func @transform_14(%arg0: i32) -> (i32, i32) {
    %c0_i32 = arith.constant 0 : i32
    %c0_i32_0 = arith.constant 0 : i32
    %c0_i32_1 = arith.constant 0 : i32
    return %c0_i32, %c0_i32_0 : i32, i32
  }
  func.func @transform_15(%arg0: i32) -> (i32, i32) {
    %c0_i32 = arith.constant 0 : i32
    %c0_i32_0 = arith.constant 0 : i32
    %c0_i32_1 = arith.constant 0 : i32
    return %c0_i32, %c0_i32_0 : i32, i32
  }
  func.func @transform_16(%arg0: i32) -> (i32, i32) {
    %c0_i32 = arith.constant 0 : i32
    %c0_i32_0 = arith.constant 0 : i32
    %c0_i32_1 = arith.constant 0 : i32
    return %c0_i32, %c0_i32_0 : i32, i32
  }
  func.func @transform_17(%arg0: i32) -> (i32, i32) {
    %c0_i32 = arith.constant 0 : i32
    %c0_i32_0 = arith.constant 0 : i32
    %c0_i32_1 = arith.constant 0 : i32
    return %c0_i32, %c0_i32_0 : i32, i32
  }
  func.func @transform_18(%arg0: i32) -> (i32, i32) {
    %c0_i32 = arith.constant 0 : i32
    %c0_i32_0 = arith.constant 0 : i32
    return %arg0, %c0_i32 : i32, i32
  }
}

</mosaic_0001>

<bundles_post_ra>
// kernel: big2_model_resnet_forward.1
= control target key start
LH: loop header
LB: loop body
LE: loop exit
PB: predicated region body
PF: predicated region fallthrough
CT: control target
= control target key end

     0   :  { %s10799_s0 = inlined_call_operand.vmem [shape: bf16[48,256], index: 0, kind: input, shape index: {}]   ;;  %s10800_s1 = inlined_call_operand.vmem [shape: bf16[8,640], index: 1, kind: input, shape index: {}]   ;;  %s10801_s2 = inlined_call_operand.hbm [shape: bf16[256,512], index: 2, kind: input, shape index: {}]   ;;  %s10802_s3 = inlined_call_operand.vmem [shape: bf16[128,512], index: 3, kind: input, shape index: {}]   ;;  %s10803_s4 = inlined_call_operand.vmem [shape: f32[1,512], index: 4, kind: input, shape index: {}]   ;;  %s10804_s5 = inlined_call_operand.hbm [shape: bf16[128,512], index: 5, kind: input, shape index: {}]   ;;  %s10805_s6 = inlined_call_operand.hbm [shape: bf16[640,512], index: 6, kind: input, shape index: {}]   ;;  %s10806_s7 = inlined_call_operand.vmem [shape: f32[1,512], index: 7, kind: input, shape index: {}]   ;;  %s10807_s8 = inlined_call_operand.hbm [shape: bf16[512,512], index: 8, kind: input, shape index: {}]   ;;  %s10808_s9 = inlined_call_operand.vmem [shape: f32[1,512], index: 9, kind: input, shape index: {}]   ;;  %s10809_s10 = inlined_call_operand.hbm [shape: bf16[512,512], index: 10, kind: input, shape index: {}]   ;;  %s10810_s11 = inlined_call_operand.vmem [shape: f32[1,512], index: 11, kind: input, shape index: {}]   ;;  %s10811_s12 = inlined_call_operand.hbm [shape: bf16[512,512], index: 12, kind: input, shape index: {}]   ;;  %s10812_s13 = inlined_call_operand.vmem [shape: f32[1,512], index: 13, kind: input, shape index: {}]   ;;  %s10813_s14 = inlined_call_operand.hbm [shape: bf16[512,512], index: 14, kind: input, shape index: {}]   ;;  %s10814_s15 = inlined_call_operand.vmem [shape: f32[1,512], index: 15, kind: input, shape index: {}]   ;;  %s10815_s16 = inlined_call_operand.hbm [shape: bf16[512,128], index: 16, kind: input, shape index: {}]   ;;  %s10816_s17 = inlined_call_operand.vmem [shape: f32[1,128], index: 17, kind: input, shape index: {}]   ;;  %s10817_s18 = inlined_call_operand.vmem [shape: f32[8,128], index: 18, kind: output, shape index: {}]  }
   0x1   :  { %10831 = sst [smem:[#allocation30_spill]] %s10799_s0 }
   0x2   :  { %10832 = sst [smem:[#allocation31_spill]] %s10800_s1 }
   0x3   :  { %10833 = sst [smem:[#allocation32_spill]] %s10801_s2 }
   0x4   :  { %23 = vsyncpa [#allocation3], 0 }
   0x5   :  { %24 = vsyncpa [#allocation5], 0 }
   0x6   :  { %25 = vsyncpa [#allocation8], 0 }
   0x7   :  { %26 = vsyncpa [#allocation11], 0 }
   0x8   :  { %27 = vsyncpa [#allocation14], 0  ;;  %s9732_s27 = smov [#allocation4]   ;;  %s9733_s29 = smov [#allocation7]  }
   0x9   :  { %s53_s28 = sshll.u32 %s9732_s27, 4  ;;  %s79_s30 = sshll.u32 %s9733_s29, 4  ;;  %s54_s28 = int_to_ptr.vmem [resolvable:$true] %s53_s28  ;;  %s9840_s30 = int_to_ptr.vmem [resolvable:$true] %s79_s30 }
   0xa   :  { %s9546_s1 = scalar_lea.hbm %s10804_s5, 4096 }
   0xb   :  { %p9547_p0 = scmp.ne.s32.totalorder %s10804_s5, %s9546_s1  ;;  %p9550_p1 = scmp.lt.u32.totalorder %s9546_s1, %s10804_s5 }
   0xd   :  { %p9552_p2 = pnand %p9550_p1, %p9547_p0 }
   0xf   :  { %9555 = shalt.err (!%p9552_p2)
}
  0x10   :  { %s9556_s23 = scalar_lea.vmem %s54_s28, 4096  ;;  %p9561_p4 = scmp.lt.s32.totalorder %s54_s28, %s54_s28 }
  0x11   :  { %p9557_p3 = scmp.ne.s32.totalorder %s54_s28, %s9556_s23  ;;  %p9562_p5 = scmp.lt.s32.totalorder %s9556_s23, %s9556_s23 }
  0x13   :  { %p9563_p6 = por %p9562_p5, %p9561_p4 }
  0x15   :  { %p9564_p7 = pnand %p9563_p6, %p9557_p3 }
  0x17   :  { %9567 = shalt.err (!%p9564_p7)
}
  0x18   :  { %s9734_s24 = smov 256   ;;  %s9735_s25 = smov 16  }
  0x19   :  { %59 = dma.hbm_to_vmem [thread:$0]  %s10804_s5, 4096, %s54_s28, [#allocation5], %s9734_s24, %s9734_s24, %s9735_s25  }
  0x1a   :  { %s9568_s19 = scalar_lea.hbm %s10807_s8, 16384 }
  0x1b   :  { %p9569_p8 = scmp.ne.s32.totalorder %s10807_s8, %s9568_s19  ;;  %p9572_p9 = scmp.lt.u32.totalorder %s9568_s19, %s10807_s8 }
  0x1d   :  { %p9574_p10 = pnand %p9572_p9, %p9569_p8 }
  0x1f   :  { %9577 = shalt.err (!%p9574_p10)
}
  0x20   :  { %s9578_s2 = scalar_lea.vmem %s9840_s30, 16384  ;;  %p9583_p12 = scmp.lt.s32.totalorder %s9840_s30, %s9840_s30 }
  0x21   :  { %p9579_p11 = scmp.ne.s32.totalorder %s9840_s30, %s9578_s2  ;;  %p9584_p13 = scmp.lt.s32.totalorder %s9578_s2, %s9578_s2 }
  0x23   :  { %p9585_p0 = por %p9584_p13, %p9583_p12 }
  0x25   :  { %p9586_p1 = pnand %p9585_p0, %p9579_p11 }
  0x27   :  { %9589 = shalt.err (!%p9586_p1)
}
  0x28   :  { %85 = dma.hbm_to_vmem [thread:$0]  %s10807_s8, 16384, %s9840_s30, [#allocation8], %s9734_s24, %s9734_s24, %s9735_s25  }
  0x29   :  { %s9736_s23 = smov [#allocation10]   ;;  %s9737_s27 = smov [#allocation2]  }
  0x2a   :  { %s107_s26 = sshll.u32 %s9736_s23, 4  ;;  %s37_s29 = sshll.u32 %s9737_s27, 4  ;;  %s108_s26 = int_to_ptr.vmem [resolvable:$true] %s107_s26  ;;  %s9877_s29 = int_to_ptr.vmem [resolvable:$true] %s37_s29 }
  0x2b   :  { %s9590_s1 = scalar_lea.hbm %s10811_s12, 16384 }
  0x2c   :  { %p9591_p2 = scmp.ne.s32.totalorder %s10811_s12, %s9590_s1  ;;  %p9594_p3 = scmp.lt.u32.totalorder %s9590_s1, %s10811_s12 }
  0x2e   :  { %p9596_p4 = pnand %p9594_p3, %p9591_p2 }
  0x30   :  { %9599 = shalt.err (!%p9596_p4)
}
  0x31   :  { %s9600_s8 = scalar_lea.vmem %s108_s26, 16384  ;;  %p9605_p6 = scmp.lt.s32.totalorder %s108_s26, %s108_s26 }
  0x32   :  { %p9601_p5 = scmp.ne.s32.totalorder %s108_s26, %s9600_s8  ;;  %p9606_p7 = scmp.lt.s32.totalorder %s9600_s8, %s9600_s8 }
  0x34   :  { %p9607_p8 = por %p9606_p7, %p9605_p6 }
  0x36   :  { %p9608_p9 = pnand %p9607_p8, %p9601_p5 }
  0x38   :  { %9611 = shalt.err (!%p9608_p9)
}
  0x39   :  { %113 = dma.hbm_to_vmem [thread:$0]  %s10811_s12, 16384, %s108_s26, [#allocation11], %s9734_s24, %s9734_s24, %s9735_s25  }
  0x3a   :  { %s10834_s27 = sld [smem:[#allocation32_spill]] }
  0x40   :  { %s9612_s0 = scalar_lea.hbm %s10834_s27, 8192 }
  0x41   :  { %p9613_p10 = scmp.ne.s32.totalorder %s10834_s27, %s9612_s0  ;;  %p9616_p11 = scmp.lt.u32.totalorder %s9612_s0, %s10834_s27 }
  0x43   :  { %p9618_p12 = pnand %p9616_p11, %p9613_p10 }
  0x45   :  { %9621 = shalt.err (!%p9618_p12)
}
  0x46   :  { %s9622_s22 = scalar_lea.vmem %s9877_s29, 8192  ;;  %p9627_p0 = scmp.lt.s32.totalorder %s9877_s29, %s9877_s29 }
  0x47   :  { %p9623_p13 = scmp.ne.s32.totalorder %s9877_s29, %s9622_s22  ;;  %p9628_p1 = scmp.lt.s32.totalorder %s9622_s22, %s9622_s22 }
  0x49   :  { %p9629_p2 = por %p9628_p1, %p9627_p0 }
  0x4b   :  { %p9630_p3 = pnand %p9629_p2, %p9623_p13 }
  0x4d   :  { %9633 = shalt.err (!%p9630_p3)
}
  0x4e   :  { %43 = dma.hbm_to_vmem [thread:$0]  %s10834_s27, 8192, %s9877_s29, [#allocation3], %s9734_s24, %s9734_s24, %s9735_s25  }
  0x4f   :  { %s9738_s2 = smov [#allocation6]   ;;  %s9739_s30 = smov [#allocation9]  }
  0x50   :  { %s65_s8 = sshll.u32 %s9738_s2, 4  ;;  %s93_s5 = sshll.u32 %s9739_s30, 4  ;;  %s66_s8 = int_to_ptr.vmem [resolvable:$true] %s65_s8  ;;  %s9914_s5 = int_to_ptr.vmem [resolvable:$true] %s93_s5 }
  0x51   :  { %s9634_s0 = scalar_lea.hbm %s10805_s6, 20480 }
  0x52   :  { %p9635_p4 = scmp.ne.s32.totalorder %s10805_s6, %s9634_s0  ;;  %p9638_p5 = scmp.lt.u32.totalorder %s9634_s0, %s10805_s6 }
  0x54   :  { %p9640_p6 = pnand %p9638_p5, %p9635_p4 }
  0x56   :  { %9643 = shalt.err (!%p9640_p6)
}
  0x57   :  { %s9644_s29 = scalar_lea.vmem %s66_s8, 20480  ;;  %p9649_p8 = scmp.lt.s32.totalorder %s66_s8, %s66_s8 }
  0x58   :  { %p9645_p7 = scmp.ne.s32.totalorder %s66_s8, %s9644_s29  ;;  %p9650_p9 = scmp.lt.s32.totalorder %s9644_s29, %s9644_s29 }
  0x5a   :  { %p9651_p10 = por %p9650_p9, %p9649_p8 }
  0x5c   :  { %p9652_p11 = pnand %p9651_p10, %p9645_p7 }
  0x5e   :  { %9655 = shalt.err (!%p9652_p11)
}
  0x5f   :  { %71 = dma.hbm_to_vmem [thread:$0]  %s10805_s6, 20480, %s66_s8, [#allocation5], %s9734_s24, %s9734_s24, %s9735_s25  }
  0x60   :  { %s9656_s2 = scalar_lea.hbm %s10809_s10, 16384 }
  0x61   :  { %p9657_p12 = scmp.ne.s32.totalorder %s10809_s10, %s9656_s2  ;;  %p9660_p13 = scmp.lt.u32.totalorder %s9656_s2, %s10809_s10 }
  0x63   :  { %p9662_p0 = pnand %p9660_p13, %p9657_p12 }
  0x65   :  { %9665 = shalt.err (!%p9662_p0)
}
  0x66   :  { %s9666_s19 = scalar_lea.vmem %s9914_s5, 16384  ;;  %p9671_p2 = scmp.lt.s32.totalorder %s9914_s5, %s9914_s5 }
  0x67   :  { %p9667_p1 = scmp.ne.s32.totalorder %s9914_s5, %s9666_s19  ;;  %p9672_p3 = scmp.lt.s32.totalorder %s9666_s19, %s9666_s19 }
  0x69   :  { %p9673_p4 = por %p9672_p3, %p9671_p2 }
  0x6b   :  { %p9674_p5 = pnand %p9673_p4, %p9667_p1 }
  0x6d   :  { %9677 = shalt.err (!%p9674_p5)
}
  0x6e   :  { %99 = dma.hbm_to_vmem [thread:$0]  %s10809_s10, 16384, %s9914_s5, [#allocation8], %s9734_s24, %s9734_s24, %s9735_s25  }
  0x6f   :  { %s9740_s1 = smov [#allocation12]   ;;  %s9741_s21 = smov [#allocation13]  }
  0x70   :  { %s121_s20 = sshll.u32 %s9740_s1, 4  ;;  %s135_s29 = sshll.u32 %s9741_s21, 4  ;;  %s122_s20 = int_to_ptr.vmem [resolvable:$true] %s121_s20  ;;  %s9951_s29 = int_to_ptr.vmem [resolvable:$true] %s135_s29 }
  0x71   :  { %s9678_s12 = scalar_lea.hbm %s10813_s14, 16384 }
  0x72   :  { %p9679_p6 = scmp.ne.s32.totalorder %s10813_s14, %s9678_s12  ;;  %p9682_p7 = scmp.lt.u32.totalorder %s9678_s12, %s10813_s14 }
  0x74   :  { %p9684_p8 = pnand %p9682_p7, %p9679_p6 }
  0x76   :  { %9687 = shalt.err (!%p9684_p8)
}
  0x77   :  { %s9688_s10 = scalar_lea.vmem %s122_s20, 16384  ;;  %p9693_p10 = scmp.lt.s32.totalorder %s122_s20, %s122_s20 }
  0x78   :  { %p9689_p9 = scmp.ne.s32.totalorder %s122_s20, %s9688_s10  ;;  %p9694_p11 = scmp.lt.s32.totalorder %s9688_s10, %s9688_s10 }
  0x7a   :  { %p9695_p12 = por %p9694_p11, %p9693_p10 }
  0x7c   :  { %p9696_p13 = pnand %p9695_p12, %p9689_p9 }
  0x7e   :  { %9699 = shalt.err (!%p9696_p13)
}
  0x7f   :  { %127 = dma.hbm_to_vmem [thread:$0]  %s10813_s14, 16384, %s122_s20, [#allocation11], %s9734_s24, %s9734_s24, %s9735_s25  }
  0x80   :  { %s9700_s6 = scalar_lea.hbm %s10815_s16, 4096 }
  0x81   :  { %p9701_p0 = scmp.ne.s32.totalorder %s10815_s16, %s9700_s6  ;;  %p9704_p1 = scmp.lt.u32.totalorder %s9700_s6, %s10815_s16 }
  0x83   :  { %p9706_p2 = pnand %p9704_p1, %p9701_p0 }
  0x85   :  { %9709 = shalt.err (!%p9706_p2)
}
  0x86   :  { %s9710_s22 = scalar_lea.vmem %s9951_s29, 4096  ;;  %p9715_p4 = scmp.lt.s32.totalorder %s9951_s29, %s9951_s29 }
  0x87   :  { %p9711_p3 = scmp.ne.s32.totalorder %s9951_s29, %s9710_s22  ;;  %p9716_p5 = scmp.lt.s32.totalorder %s9710_s22, %s9710_s22 }
  0x89   :  { %p9717_p6 = por %p9716_p5, %p9715_p4 }
  0x8b   :  { %p9718_p7 = pnand %p9717_p6, %p9711_p3 }
  0x8d   :  { %9721 = shalt.err (!%p9718_p7)
}
  0x8e   :  { %s9742_s14 = smov 64   ;;  %s9743_s24 = smov 4  }
  0x8f   :  { %141 = dma.hbm_to_vmem [thread:$0]  %s10815_s16, 4096, %s9951_s29, [#allocation14], %s9742_s14, %s9742_s14, %s9743_s24  }
  0x90   :  { %9722 = dma.done.wait [#allocation3], 8192  }
  0x91   :  { %9723 = vsyncadd [#allocation3], 4294959104 }
  0x92   :  { %9724 = dma.done.wait [#allocation5], 24576  }
  0x93   :  { %9725 = vsyncadd [#allocation5], 4294942720 }
  0x94   :  { %9726 = dma.done.wait [#allocation8], 32768  }
  0x95   :  { %9727 = vsyncadd [#allocation8], 4294934528 }
  0x96   :  { %9728 = dma.done.wait [#allocation11], 32768  }
  0x97   :  { %9729 = vsyncadd [#allocation11], 4294934528 }
  0x98   :  { %9730 = dma.done.wait [#allocation14], 4096  }
  0x99   :  { %9731 = vsyncadd [#allocation14], 4294963200  ;;  %v8208_v0 = vld [vmem:[#allocation2 + $0x4] ss:$16 sps:$4 sm:$0xff]   ;;  %v8210_v1 = vld [vmem:[#allocation2 + $0xc] ss:$16 sps:$4 sm:$0xff]  }
  0x9a   :  { %611 = vmatprep.subr.bf16.mxu0 %v8208_v0  ;;  %v8212_v2 = vld [vmem:[#allocation2] ss:$16 sps:$4 sm:$0xff]   ;;  %v8213_v3 = vld [vmem:[#allocation2 + $0x8] ss:$16 sps:$4 sm:$0xff]   ;;  %674 = vmatprep.subr.bf16.mxu1 %v8210_v1  ;;  %v8214_v4 = vld [vmem:[#allocation2 + $0x24] ss:$16 sps:$4 sm:$0xff]  }
  0x9b   :  { %612 = vmatpush1.bf16.msra.mxu0 %v8212_v2  ;;  %675 = vmatpush1.bf16.msra.mxu1 %v8213_v3  ;;  %v8216_v5 = vld [vmem:[#allocation2 + $0x2c] ss:$16 sps:$4 sm:$0xff]   ;;  %v8218_v6 = vld [vmem:[#allocation2 + $0x20] ss:$16 sps:$4 sm:$0xff]   ;;  %v8219_v7 = vld [vmem:[#allocation2 + $0x28] ss:$16 sps:$4 sm:$0xff]  }
  0x9c   :  { %613 = vmatprep.subr.bf16.mxu0 %v8214_v4  ;;  %676 = vmatprep.subr.bf16.mxu1 %v8216_v5  ;;  %v8220_v8 = vld [vmem:[#allocation2 + $0x44] ss:$16 sps:$4 sm:$0xff]   ;;  %v8222_v9 = vld [vmem:[#allocation2 + $0x4c] ss:$16 sps:$4 sm:$0xff]   ;;  %v8224_v10 = vld [vmem:[#allocation2 + $0x40] ss:$16 sps:$4 sm:$0xff]  }
  0x9d   :  { %v8225_v11 = vld [vmem:[#allocation2 + $0x48] ss:$16 sps:$4 sm:$0xff]   ;;  %v8226_v12 = vld [vmem:[#allocation2 + $0x64] ss:$16 sps:$4 sm:$0xff]   ;;  %v8228_v13 = vld [vmem:[#allocation2 + $0x6c] ss:$16 sps:$4 sm:$0xff]  }
  0x9e   :  { %v8230_v14 = vld [vmem:[#allocation2 + $0x60] ss:$16 sps:$4 sm:$0xff]   ;;  %v8231_v15 = vld [vmem:[#allocation2 + $0x68] ss:$16 sps:$4 sm:$0xff]   ;;  %v8232_v16 = vld [vmem:[#allocation2 + $0x84] ss:$16 sps:$4 sm:$0xff]  }
  0x9f   :  { %614 = vmatpush1.bf16.msra.mxu0 %v8218_v6  ;;  %677 = vmatpush1.bf16.msra.mxu1 %v8219_v7  ;;  %v8234_v17 = vld [vmem:[#allocation2 + $0x8c] ss:$16 sps:$4 sm:$0xff]   ;;  %v8236_v18 = vld [vmem:[#allocation2 + $0x80] ss:$16 sps:$4 sm:$0xff]   ;;  %v8237_v19 = vld [vmem:[#allocation2 + $0x88] ss:$16 sps:$4 sm:$0xff]  }
  0xa0   :  { %615 = vmatprep.subr.bf16.mxu0 %v8220_v8  ;;  %678 = vmatprep.subr.bf16.mxu1 %v8222_v9  ;;  %v8238_v20 = vld [vmem:[#allocation2 + $0xa4] ss:$16 sps:$4 sm:$0xff]   ;;  %v8240_v21 = vld [vmem:[#allocation2 + $0xac] ss:$16 sps:$4 sm:$0xff]   ;;  %v8242_v22 = vld [vmem:[#allocation2 + $0xa0] ss:$16 sps:$4 sm:$0xff]  }
  0xa1   :  { %v8243_v23 = vld [vmem:[#allocation2 + $0xa8] ss:$16 sps:$4 sm:$0xff]   ;;  %v8244_v24 = vld [vmem:[#allocation2 + $0xc4] ss:$16 sps:$4 sm:$0xff]   ;;  %v8246_v25 = vld [vmem:[#allocation2 + $0xcc] ss:$16 sps:$4 sm:$0xff]  }
  0xa2   :  { %v8248_v26 = vld [vmem:[#allocation2 + $0xc0] ss:$16 sps:$4 sm:$0xff]   ;;  %v8249_v27 = vld [vmem:[#allocation2 + $0xc8] ss:$16 sps:$4 sm:$0xff]   ;;  %v8250_v28 = vld [vmem:[#allocation2 + $0xe4] ss:$16 sps:$4 sm:$0xff]  }
  0xa3   :  { %616 = vmatpush1.bf16.msra.mxu0 %v8224_v10  ;;  %679 = vmatpush1.bf16.msra.mxu1 %v8225_v11  ;;  %v8252_v29 = vld [vmem:[#allocation2 + $0xec] ss:$16 sps:$4 sm:$0xff]   ;;  %v8254_v30 = vld [vmem:[#allocation2 + $0xe0] ss:$16 sps:$4 sm:$0xff]   ;;  %v8255_v31 = vld [vmem:[#allocation2 + $0xe8] ss:$16 sps:$4 sm:$0xff]  }
  0xa4   :  { %617 = vmatprep.subr.bf16.mxu0 %v8226_v12  ;;  %680 = vmatprep.subr.bf16.mxu1 %v8228_v13  ;;  %v8256_v32 = vld [vmem:[#allocation2 + $0x104] ss:$16 sps:$4 sm:$0xff]   ;;  %v8258_v33 = vld [vmem:[#allocation2 + $0x10c] ss:$16 sps:$4 sm:$0xff]   ;;  %v8260_v34 = vld [vmem:[#allocation2 + $0x100] ss:$16 sps:$4 sm:$0xff]  }
  0xa5   :  { %v8261_v35 = vld [vmem:[#allocation2 + $0x108] ss:$16 sps:$4 sm:$0xff]   ;;  %v8262_v36 = vld [vmem:[#allocation2 + $0x124] ss:$16 sps:$4 sm:$0xff]   ;;  %v8264_v37 = vld [vmem:[#allocation2 + $0x12c] ss:$16 sps:$4 sm:$0xff]  }
  0xa6   :  { %v8266_v38 = vld [vmem:[#allocation2 + $0x120] ss:$16 sps:$4 sm:$0xff]   ;;  %v8267_v39 = vld [vmem:[#allocation2 + $0x128] ss:$16 sps:$4 sm:$0xff]   ;;  %v8268_v40 = vld [vmem:[#allocation2 + $0x144] ss:$16 sps:$4 sm:$0xff]  }
  0xa7   :  { %618 = vmatpush1.bf16.msra.mxu0 %v8230_v14  ;;  %681 = vmatpush1.bf16.msra.mxu1 %v8231_v15  ;;  %v8270_v41 = vld [vmem:[#allocation2 + $0x14c] ss:$16 sps:$4 sm:$0xff]   ;;  %v8272_v42 = vld [vmem:[#allocation2 + $0x140] ss:$16 sps:$4 sm:$0xff]   ;;  %v8273_v43 = vld [vmem:[#allocation2 + $0x148] ss:$16 sps:$4 sm:$0xff]  }
  0xa8   :  { %619 = vmatprep.subr.bf16.mxu0 %v8232_v16  ;;  %682 = vmatprep.subr.bf16.mxu1 %v8234_v17  ;;  %v8274_v44 = vld [vmem:[#allocation2 + $0x164] ss:$16 sps:$4 sm:$0xff]   ;;  %v8276_v45 = vld [vmem:[#allocation2 + $0x16c] ss:$16 sps:$4 sm:$0xff]   ;;  %v8278_v46 = vld [vmem:[#allocation2 + $0x160] ss:$16 sps:$4 sm:$0xff]  }
  0xa9   :  { %v8279_v47 = vld [vmem:[#allocation2 + $0x168] ss:$16 sps:$4 sm:$0xff]   ;;  %s10835_s12 = sld [smem:[#allocation30_spill]]  ;;  %v8280_v49 = vld [vmem:[#allocation2 + $0x184] ss:$16 sps:$4 sm:$0xff]   ;;  %s10849_s19 = sld [smem:[#allocation31_spill]] }
  0xaa   :  { %v8282_v50 = vld [vmem:[#allocation2 + $0x18c] ss:$16 sps:$4 sm:$0xff]   ;;  %v8284_v51 = vld [vmem:[#allocation2 + $0x180] ss:$16 sps:$4 sm:$0xff]   ;;  %v8285_v52 = vld [vmem:[#allocation2 + $0x188] ss:$16 sps:$4 sm:$0xff]  }
  0xab   :  { %620 = vmatpush1.bf16.msra.mxu0 %v8236_v18  ;;  %683 = vmatpush1.bf16.msra.mxu1 %v8237_v19  ;;  %v8286_v53 = vld [vmem:[#allocation2 + $0x1a4] ss:$16 sps:$4 sm:$0xff]   ;;  %v8288_v54 = vld [vmem:[#allocation2 + $0x1ac] ss:$16 sps:$4 sm:$0xff]   ;;  %v8290_v55 = vld [vmem:[#allocation2 + $0x1a0] ss:$16 sps:$4 sm:$0xff]  }
  0xac   :  { %621 = vmatprep.subr.bf16.mxu0 %v8238_v20  ;;  %684 = vmatprep.subr.bf16.mxu1 %v8240_v21  ;;  %v8291_v56 = vld [vmem:[#allocation2 + $0x1a8] ss:$16 sps:$4 sm:$0xff]   ;;  %v8292_v57 = vld [vmem:[#allocation2 + $0x1c4] ss:$16 sps:$4 sm:$0xff]   ;;  %v8294_v58 = vld [vmem:[#allocation2 + $0x1cc] ss:$16 sps:$4 sm:$0xff]  }
  0xad   :  { %v8296_v59 = vld [vmem:[#allocation2 + $0x1c0] ss:$16 sps:$4 sm:$0xff]   ;;  %v8297_v60 = vld [vmem:[#allocation2 + $0x1c8] ss:$16 sps:$4 sm:$0xff]   ;;  %v8298_v61 = vld [vmem:[#allocation2 + $0x1e4] ss:$16 sps:$4 sm:$0xff]  }
  0xae   :  { %v8300_v62 = vld [vmem:[#allocation2 + $0x1ec] ss:$16 sps:$4 sm:$0xff]   ;;  %v8302_v63 = vld [vmem:[#allocation2 + $0x1e0] ss:$16 sps:$4 sm:$0xff]   ;;  %v8303_v0 = vld [vmem:[#allocation2 + $0x1e8] ss:$16 sps:$4 sm:$0xff]  }
  0xaf   :  { %622 = vmatpush1.bf16.msra.mxu0 %v8242_v22  ;;  %685 = vmatpush1.bf16.msra.mxu1 %v8243_v23  ;;  %v8306_v48 = vld [vmem:[%s10835_s12 + $0x4] ss:$8 sps:$4 sm:$0xff]   ;;  %v8304_v3 = vld [vmem:[%s10835_s12] ss:$8 sps:$4 sm:$0xff]   ;;  %v8325_v8 = vld [vmem:[%s10835_s12 + $0x14] ss:$8 sps:$4 sm:$0xff]  }
  0xb0   :  { %623 = vmatprep.subr.bf16.mxu0 %v8244_v24  ;;  %686 = vmatprep.subr.bf16.mxu1 %v8246_v25  ;;  %v9991_v1 = vld [vmem:[%s10802_s3 + $0x4] ss:$16 sps:$4 sm:$0xff]   ;;  %v9996_v2 = vld [vmem:[%s10802_s3 + $0xc] ss:$16 sps:$4 sm:$0xff]   ;;  %v10004_v4 = vld [vmem:[%s10802_s3] ss:$16 sps:$4 sm:$0xff]  }
  0xb1   :  { %643 = vmatprep.mubr.bf16.mxu0 %v8306_v48  ;;  %706 = vmatprep.mubr.bf16.mxu1 %v8306_v48  ;;  %v10009_v5 = vld [vmem:[%s10802_s3 + $0x8] ss:$16 sps:$4 sm:$0xff]   ;;  %v10014_v6 = vld [vmem:[%s10802_s3 + $0x24] ss:$16 sps:$4 sm:$0xff]   ;;  %v10021_v7 = vld [vmem:[%s10802_s3 + $0x2c] ss:$16 sps:$4 sm:$0xff]  }
  0xb2   :  { %v10029_v9 = vld [vmem:[%s10802_s3 + $0x20] ss:$16 sps:$4 sm:$0xff]   ;;  %v10034_v10 = vld [vmem:[%s10802_s3 + $0x28] ss:$16 sps:$4 sm:$0xff]   ;;  %v10039_v11 = vld [vmem:[%s10802_s3 + $0x44] ss:$16 sps:$4 sm:$0xff]  }
  0xb3   :  { %624 = vmatpush1.bf16.msra.mxu0 %v8248_v26  ;;  %687 = vmatpush1.bf16.msra.mxu1 %v8249_v27  ;;  %v10046_v12 = vld [vmem:[%s10802_s3 + $0x4c] ss:$16 sps:$4 sm:$0xff]   ;;  %v8331_v13 = vld [vmem:[%s10835_s12 + $0x10] ss:$8 sps:$4 sm:$0xff]   ;;  %v10066_v16 = vld [vmem:[%s10802_s3 + $0x64] ss:$16 sps:$4 sm:$0xff]  }
  0xb4   :  { %625 = vmatprep.subr.bf16.mxu0 %v8250_v28  ;;  %688 = vmatprep.subr.bf16.mxu1 %v8252_v29  ;;  %v10056_v14 = vld [vmem:[%s10802_s3 + $0x40] ss:$16 sps:$4 sm:$0xff]   ;;  %v10061_v15 = vld [vmem:[%s10802_s3 + $0x48] ss:$16 sps:$4 sm:$0xff]   ;;  %v10071_v17 = vld [vmem:[%s10802_s3 + $0x6c] ss:$16 sps:$4 sm:$0xff]  }
  0xb5   :  { %v8340_v18 = vld [vmem:[%s10835_s12 + $0x24] ss:$8 sps:$4 sm:$0xff]   ;;  %v10083_v19 = vld [vmem:[%s10802_s3 + $0x60] ss:$16 sps:$4 sm:$0xff]   ;;  %v10088_v20 = vld [vmem:[%s10802_s3 + $0x68] ss:$16 sps:$4 sm:$0xff]  }
  0xb6   :  { %v10093_v21 = vld [vmem:[%s10802_s3 + $0x84] ss:$16 sps:$4 sm:$0xff]   ;;  %v10098_v22 = vld [vmem:[%s10802_s3 + $0x8c] ss:$16 sps:$4 sm:$0xff]   ;;  %v8346_v23 = vld [vmem:[%s10835_s12 + $0x20] ss:$8 sps:$4 sm:$0xff]  }
  0xb7   :  { %626 = vmatpush1.bf16.msra.mxu0 %v8254_v30  ;;  %689 = vmatpush1.bf16.msra.mxu1 %v8255_v31  ;;  %v8338_v24 = vld [vmem:[%s10802_s3 + $0x80] ss:$16 sps:$4 sm:$0xff]   ;;  %v8339_v25 = vld [vmem:[%s10802_s3 + $0x88] ss:$16 sps:$4 sm:$0xff]   ;;  %v8342_v26 = vld [vmem:[%s10802_s3 + $0xa4] ss:$16 sps:$4 sm:$0xff]  }
  0xb8   :  { %627 = vmatprep.subr.bf16.mxu0 %v8256_v32  ;;  %690 = vmatprep.subr.bf16.mxu1 %v8258_v33  ;;  %v8344_v27 = vld [vmem:[%s10802_s3 + $0xac] ss:$16 sps:$4 sm:$0xff]   ;;  %v8347_v28 = vld [vmem:[%s10802_s3 + $0xa0] ss:$16 sps:$4 sm:$0xff]   ;;  %v8348_v29 = vld [vmem:[%s10802_s3 + $0xa8] ss:$16 sps:$4 sm:$0xff]  }
  0xb9   :  { %v8349_v30 = vld [vmem:[%s10802_s3 + $0xc4] ss:$16 sps:$4 sm:$0xff]   ;;  %v8351_v31 = vld [vmem:[%s10802_s3 + $0xcc] ss:$16 sps:$4 sm:$0xff]   ;;  %v8353_v32 = vld [vmem:[%s10802_s3 + $0xc0] ss:$16 sps:$4 sm:$0xff]  }
  0xba   :  { %v8354_v33 = vld [vmem:[%s10802_s3 + $0xc8] ss:$16 sps:$4 sm:$0xff]  }
  0xbb   :  { %628 = vmatpush1.bf16.msra.mxu0 %v8260_v34  ;;  %691 = vmatpush1.bf16.msra.mxu1 %v8261_v35  ;;  %v10821_v34 = vmov 0   ;;  %v8355_v35 = vld [vmem:[%s10802_s3 + $0xe4] ss:$16 sps:$4 sm:$0xff]  }
  0xbc   :  { %629 = vmatprep.subr.bf16.mxu0 %v8262_v36  ;;  %692 = vmatprep.subr.bf16.mxu1 %v8264_v37  ;;  %v8357_v36 = vld [vmem:[%s10802_s3 + $0xec] ss:$16 sps:$4 sm:$0xff]   ;;  %v8359_v37 = vld [vmem:[%s10802_s3 + $0xe0] ss:$16 sps:$4 sm:$0xff]  }
  0xbf   :  { %630 = vmatpush1.bf16.msra.mxu0 %v8266_v38  ;;  %693 = vmatpush1.bf16.msra.mxu1 %v8267_v39  ;;  %v8360_v38 = vld [vmem:[%s10802_s3 + $0xe8] ss:$16 sps:$4 sm:$0xff]   ;;  %v241_v39 = vlaneseq }
  0xc0   :  { %631 = vmatprep.subr.bf16.mxu0 %v8268_v40  ;;  %694 = vmatprep.subr.bf16.mxu1 %v8270_v41  ;;  %v239_v41 = vld [vmem:[%s10803_s4] sm:$0xf] }
  0xc1   :  { %v242_v40 = vshrl.u32 %v241_v39, 7 }
  0xc3   :  { %632 = vmatpush1.bf16.msra.mxu0 %v8272_v42  ;;  %695 = vmatpush1.bf16.msra.mxu1 %v8273_v43  ;;  %v10182_v42 = vsub.s32 0, %v242_v40  ;;  %v10184_v43 = vsub.s32 2, %v242_v40 }
  0xc4   :  { %633 = vmatprep.subr.bf16.mxu0 %v8274_v44  ;;  %696 = vmatprep.subr.bf16.mxu1 %v8276_v45  ;;  %v10186_v44 = vsub.s32 3, %v242_v40  ;;  %v10188_v45 = vsub.s32 1, %v242_v40 }
  0xc5   :  { %10836 = vst [vmem:[#allocation20_spill] sm:$0xff] %v10182_v42  ;;  %10837 = vst [vmem:[#allocation21_spill] sm:$0xff] %v10184_v43 }
  0xc6   :  { %10838 = vst [vmem:[#allocation22_spill] sm:$0xff] %v10186_v44  ;;  %10839 = vst [vmem:[#allocation23_spill] sm:$0xff] %v10188_v45 }
  0xc7   :  { %634 = vmatpush1.bf16.msra.mxu0 %v8278_v46  ;;  %697 = vmatpush1.bf16.msra.mxu1 %v8279_v47  ;;  %v244_v46 = vrot.slane %v239_v41, %v10182_v42  ;;  %v252_v47 = vrot.slane %v239_v41, %v10184_v43 }
  0xc8   :  { %635 = vmatprep.subr.bf16.mxu0 %v8280_v49  ;;  %698 = vmatprep.subr.bf16.mxu1 %v8282_v50  ;;  %v256_v50 = vrot.slane %v239_v41, %v10186_v44 }
  0xcb   :  { %636 = vmatpush1.bf16.msra.mxu0 %v8284_v51  ;;  %699 = vmatpush1.bf16.msra.mxu1 %v8285_v52 }
  0xcc   :  { %637 = vmatprep.subr.bf16.mxu0 %v8286_v53  ;;  %700 = vmatprep.subr.bf16.mxu1 %v8288_v54  ;;  %v248_v53 = vrot.slane %v239_v41, %v10188_v45 }
  0xcf   :  { %638 = vmatpush1.bf16.msra.mxu0 %v8290_v55  ;;  %701 = vmatpush1.bf16.msra.mxu1 %v8291_v56 }
  0xd0   :  { %639 = vmatprep.subr.bf16.mxu0 %v8292_v57  ;;  %702 = vmatprep.subr.bf16.mxu1 %v8294_v58 }
  0xd3   :  { %640 = vmatpush1.bf16.msra.mxu0 %v8296_v59  ;;  %703 = vmatpush1.bf16.msra.mxu1 %v8297_v60 }
  0xd4   :  { %641 = vmatprep.subr.bf16.mxu0 %v8298_v61  ;;  %704 = vmatprep.subr.bf16.mxu1 %v8300_v62 }
  0xd7   :  { %642 = vmatpush1.bf16.msra.mxu0 %v8302_v63  ;;  %705 = vmatpush1.bf16.msra.mxu1 %v8303_v0 }
  0xd8   :  { %929 = vmatprep.subr.bf16.mxu0 %v9991_v1  ;;  %970 = vmatprep.subr.bf16.mxu1 %v9996_v2 }
  0xda   :  { %644 = vmatmul.mubr.bf16.vlgmr.msra.gmra.mrb[0].mxu0 %v8304_v3  ;;  %707 = vmatmul.mubr.bf16.vlgmr.msra.gmra.mrb[0].mxu1 %v8304_v3 }
  0xdb   :  { %930 = vmatpush1.bf16.msra.mxu0 %v10004_v4  ;;  %971 = vmatpush1.bf16.msra.mxu1 %v10009_v5 }
  0xdc   :  { %931 = vmatprep.subr.bf16.mxu0 %v10014_v6  ;;  %972 = vmatprep.subr.bf16.mxu1 %v10021_v7 }
  0xdd   :  { %653 = vmatprep.mubr.bf16.mxu0 %v8325_v8  ;;  %716 = vmatprep.mubr.bf16.mxu1 %v8325_v8 }
  0xdf   :  { %932 = vmatpush1.bf16.msra.mxu0 %v10029_v9  ;;  %973 = vmatpush1.bf16.msra.mxu1 %v10034_v10 }
  0xe0   :  { %933 = vmatprep.subr.bf16.mxu0 %v10039_v11  ;;  %974 = vmatprep.subr.bf16.mxu1 %v10046_v12 }
  0xe2   :  { %654 = vmatmul.mubr.bf16.gmra.mrb[4].mxu0 %v8331_v13  ;;  %717 = vmatmul.mubr.bf16.gmra.mrb[4].mxu1 %v8331_v13 }
  0xe3   :  { %934 = vmatpush1.bf16.msra.mxu0 %v10056_v14  ;;  %975 = vmatpush1.bf16.msra.mxu1 %v10061_v15 }
  0xe4   :  { %935 = vmatprep.subr.bf16.mxu0 %v10066_v16  ;;  %976 = vmatprep.subr.bf16.mxu1 %v10071_v17 }
  0xe5   :  { %663 = vmatprep.mubr.bf16.mxu0 %v8340_v18  ;;  %726 = vmatprep.mubr.bf16.mxu1 %v8340_v18 }
  0xe7   :  { %936 = vmatpush1.bf16.msra.mxu0 %v10083_v19  ;;  %977 = vmatpush1.bf16.msra.mxu1 %v10088_v20 }
  0xe8   :  { %937 = vmatprep.subr.bf16.mxu0 %v10093_v21  ;;  %978 = vmatprep.subr.bf16.mxu1 %v10098_v22 }
  0xea   :  { %664 = vmatmul.mubr.bf16.gmra.mrb[8].mxu0 %v8346_v23  ;;  %727 = vmatmul.mubr.bf16.gmra.mrb[8].mxu1 %v8346_v23 }
  0xeb   :  { %938 = vmatpush1.bf16.msra.mxu0 %v8338_v24  ;;  %979 = vmatpush1.bf16.msra.mxu1 %v8339_v25 }
  0xec   :  { %939 = vmatprep.subr.bf16.mxu0 %v8342_v26  ;;  %980 = vmatprep.subr.bf16.mxu1 %v8344_v27 }
  0xed   :  { %961 = vmatprep.mubr.bf16.mxu0 %v10821_v34  ;;  %1002 = vmatprep.mubr.bf16.mxu1 %v10821_v34 }
  0xef   :  { %940 = vmatpush1.bf16.msra.mxu0 %v8347_v28  ;;  %981 = vmatpush1.bf16.msra.mxu1 %v8348_v29 }
  0xf0   :  { %941 = vmatprep.subr.bf16.mxu0 %v8349_v30  ;;  %982 = vmatprep.subr.bf16.mxu1 %v8351_v31 }
  0xf3   :  { %942 = vmatpush1.bf16.msra.mxu0 %v8353_v32  ;;  %983 = vmatpush1.bf16.msra.mxu1 %v8354_v33 }
  0xf4   :  { %943 = vmatprep.subr.bf16.mxu0 %v8355_v35  ;;  %984 = vmatprep.subr.bf16.mxu1 %v8357_v36 }
  0xf7   :  { %944 = vmatpush1.bf16.msra.mxu0 %v8359_v37  ;;  %985 = vmatpush1.bf16.msra.mxu1 %v8360_v38 }
  0xf8   :  { %1034 = vmatprep.subr.bf16.mxu0 %v9991_v1  ;;  %1075 = vmatprep.subr.bf16.mxu1 %v9996_v2 }
  0xfa   :  { %962 = vmatmul.mubr.bf16.vlgmr.msra.gmra.mrb[12].mxu0 %v10821_v34  ;;  %1003 = vmatmul.mubr.bf16.vlgmr.msra.gmra.mrb[12].mxu1 %v10821_v34 }
  0xfb   :  { %1035 = vmatpush1.bf16.msra.mxu0 %v10004_v4  ;;  %1076 = vmatpush1.bf16.msra.mxu1 %v10009_v5 }
  0xfc   :  { %1036 = vmatprep.subr.bf16.mxu0 %v10014_v6  ;;  %1077 = vmatprep.subr.bf16.mxu1 %v10021_v7 }
  0xfd   :  { %1066 = vmatprep.mubr.bf16.mxu0 %v10821_v34  ;;  %1107 = vmatprep.mubr.bf16.mxu1 %v10821_v34 }
  0xff   :  { %1037 = vmatpush1.bf16.msra.mxu0 %v10029_v9  ;;  %1078 = vmatpush1.bf16.msra.mxu1 %v10034_v10 }
 0x100   :  { %1038 = vmatprep.subr.bf16.mxu0 %v10039_v11  ;;  %1079 = vmatprep.subr.bf16.mxu1 %v10046_v12 }
 0x103   :  { %1039 = vmatpush1.bf16.msra.mxu0 %v10056_v14  ;;  %1080 = vmatpush1.bf16.msra.mxu1 %v10061_v15 }
 0x104   :  { %1040 = vmatprep.subr.bf16.mxu0 %v10066_v16  ;;  %1081 = vmatprep.subr.bf16.mxu1 %v10071_v17 }
 0x107   :  { %1041 = vmatpush1.bf16.msra.mxu0 %v10083_v19  ;;  %1082 = vmatpush1.bf16.msra.mxu1 %v10088_v20 }
 0x108   :  { %1042 = vmatprep.subr.bf16.mxu0 %v10093_v21  ;;  %1083 = vmatprep.subr.bf16.mxu1 %v10098_v22 }
 0x10b   :  { %1043 = vmatpush1.bf16.msra.mxu0 %v8338_v24  ;;  %1084 = vmatpush1.bf16.msra.mxu1 %v8339_v25 }
 0x10c   :  { %1044 = vmatprep.subr.bf16.mxu0 %v8342_v26  ;;  %1085 = vmatprep.subr.bf16.mxu1 %v8344_v27 }
 0x10f   :  { %1045 = vmatpush1.bf16.msra.mxu0 %v8347_v28  ;;  %1086 = vmatpush1.bf16.msra.mxu1 %v8348_v29 }
 0x110   :  { %1046 = vmatprep.subr.bf16.mxu0 %v8349_v30  ;;  %1087 = vmatprep.subr.bf16.mxu1 %v8351_v31 }
 0x113   :  { %1047 = vmatpush1.bf16.msra.mxu0 %v8353_v32  ;;  %1088 = vmatpush1.bf16.msra.mxu1 %v8354_v33 }
 0x114   :  { %1048 = vmatprep.subr.bf16.mxu0 %v8355_v35  ;;  %1089 = vmatprep.subr.bf16.mxu1 %v8357_v36 }
 0x117   :  { %1049 = vmatpush1.bf16.msra.mxu0 %v8359_v37  ;;  %1090 = vmatpush1.bf16.msra.mxu1 %v8360_v38 }
 0x118   :  { %1139 = vmatprep.subr.bf16.mxu0 %v9991_v1  ;;  %1180 = vmatprep.subr.bf16.mxu1 %v9996_v2 }
 0x1ad   :  { %v645_v48 = vpop.f32.mrb[0].mxu0  ;;  %v708_v49 = vpop.f32.mrb[0].mxu1 }
 0x1ae   :  { %v647_v51 = vpop.f32.mrb[1].mxu0  ;;  %v710_v52 = vpop.f32.mrb[1].mxu1  ;;  %v646_v30 = vadd.f32 %v645_v48, %v244_v46  ;;  %v709_v31 = vadd.f32 %v708_v49, %v252_v47 }
 0x1af   :  { %v649_v54 = vpop.f32.mrb[2].mxu0  ;;  %v712_v55 = vpop.f32.mrb[2].mxu1  ;;  %v648_v32 = vadd.f32 %v647_v51, %v248_v53  ;;  %v711_v33 = vadd.f32 %v710_v52, %v256_v50 }
 0x1b0   :  { %v10194_v56 = vadd.f32 %v649_v54, %v244_v46  ;;  %v651_v57 = vpop.f32.mrb[3].mxu0  ;;  %v10196_v58 = vadd.f32 %v712_v55, %v252_v47  ;;  %v714_v59 = vpop.f32.mrb[3].mxu1 }
 0x1b1   :  { %v10198_v60 = vadd.f32 %v651_v57, %v248_v53  ;;  %v10200_v61 = vadd.f32 %v714_v59, %v256_v50 }
 0x1b5   :  { %v655_v62 = vpop.f32.mrb[4].mxu0  ;;  %v718_v63 = vpop.f32.mrb[4].mxu1 }
 0x1b6   :  { %v10202_v0 = vadd.f32 %v655_v62, %v244_v46  ;;  %v657_v1 = vpop.f32.mrb[5].mxu0  ;;  %v10204_v2 = vadd.f32 %v718_v63, %v252_v47  ;;  %v720_v3 = vpop.f32.mrb[5].mxu1 }
 0x1b7   :  { %v10206_v4 = vadd.f32 %v657_v1, %v248_v53  ;;  %v659_v5 = vpop.f32.mrb[6].mxu0  ;;  %v10208_v6 = vadd.f32 %v720_v3, %v256_v50  ;;  %v722_v7 = vpop.f32.mrb[6].mxu1 }
 0x1b8   :  { %v10210_v8 = vadd.f32 %v659_v5, %v244_v46  ;;  %v661_v9 = vpop.f32.mrb[7].mxu0  ;;  %v10212_v10 = vadd.f32 %v722_v7, %v252_v47  ;;  %v724_v11 = vpop.f32.mrb[7].mxu1 }
 0x1b9   :  { %v10214_v12 = vadd.f32 %v661_v9, %v248_v53  ;;  %v10216_v13 = vadd.f32 %v724_v11, %v256_v50 }
 0x1bd   :  { %v665_v14 = vpop.f32.mrb[8].mxu0  ;;  %v728_v15 = vpop.f32.mrb[8].mxu1 }
 0x1be   :  { %v10218_v16 = vadd.f32 %v665_v14, %v244_v46  ;;  %v667_v17 = vpop.f32.mrb[9].mxu0  ;;  %v10220_v18 = vadd.f32 %v728_v15, %v252_v47  ;;  %v730_v19 = vpop.f32.mrb[9].mxu1 }
 0x1bf   :  { %v10222_v20 = vadd.f32 %v667_v17, %v248_v53  ;;  %v669_v21 = vpop.f32.mrb[10].mxu0  ;;  %v10224_v22 = vadd.f32 %v730_v19, %v256_v50  ;;  %v732_v23 = vpop.f32.mrb[10].mxu1 }
 0x1c0   :  { %v10226_v24 = vadd.f32 %v669_v21, %v244_v46  ;;  %v671_v25 = vpop.f32.mrb[11].mxu0  ;;  %v10228_v26 = vadd.f32 %v732_v23, %v252_v47  ;;  %v734_v27 = vpop.f32.mrb[11].mxu1  ;;  %v10240_v21 = vld [vmem:[%s10802_s3] ss:$16 sps:$4 sm:$0xff]   ;;  %v10246_v23 = vld [vmem:[%s10802_s3 + $0x8] ss:$16 sps:$4 sm:$0xff]  }
 0x1c1   :  { %10840 = vst [vmem:[#allocation24_spill] sm:$0xff] %v10222_v20  ;;  %10841 = vst [vmem:[#allocation25_spill] sm:$0xff] %v10224_v22  ;;  %v10230_v28 = vadd.f32 %v671_v25, %v248_v53  ;;  %v10232_v29 = vadd.f32 %v734_v27, %v256_v50  ;;  %v10252_v25 = vld [vmem:[%s10802_s3 + $0x24] ss:$16 sps:$4 sm:$0xff]   ;;  %v10258_v27 = vld [vmem:[%s10802_s3 + $0x2c] ss:$16 sps:$4 sm:$0xff]  }
 0x1c2   :  { %10842 = vst [vmem:[#allocation26_spill] sm:$0xff] %v10226_v24  ;;  %10843 = vst [vmem:[#allocation27_spill] sm:$0xff] %v10228_v26 }
 0x1c3   :  { %10844 = vst [vmem:[#allocation28_spill] sm:$0xff] %v10230_v28  ;;  %10845 = vst [vmem:[#allocation29_spill] sm:$0xff] %v10232_v29 }
 0x1cd   :  { %v963_v35 = vpop.f32.mrb[12].mxu0  ;;  %v1004_v36 = vpop.f32.mrb[12].mxu1 }
 0x1ce   :  { %v1011_v37 = vadd.f32 %v963_v35, %v646_v30  ;;  %v1013_v38 = vadd.f32 %v1004_v36, %v709_v31  ;;  %v965_v39 = vpop.f32.mrb[13].mxu0  ;;  %v1006_v40 = vpop.f32.mrb[13].mxu1  ;;  %v10266_v30 = vld [vmem:[%s10802_s3 + $0x20] ss:$16 sps:$4 sm:$0xff]   ;;  %v10272_v31 = vld [vmem:[%s10802_s3 + $0x28] ss:$16 sps:$4 sm:$0xff]  }
 0x1cf   :  { %v1012_v41 = vadd.f32 %v965_v39, %v648_v32  ;;  %v1014_v54 = vadd.f32 %v1006_v40, %v711_v33  ;;  %v967_v55 = vpop.f32.mrb[14].mxu0  ;;  %v1008_v57 = vpop.f32.mrb[14].mxu1  ;;  %v10278_v32 = vld [vmem:[%s10802_s3 + $0x44] ss:$16 sps:$4 sm:$0xff]   ;;  %v10284_v33 = vld [vmem:[%s10802_s3 + $0x4c] ss:$16 sps:$4 sm:$0xff]  }
 0x1d0   :  { %v1015_v59 = vmul.f32 0.5, %v1011_v37  ;;  %v968_v62 = vpop.f32.mrb[15].mxu0  ;;  %v1009_v63 = vpop.f32.mrb[15].mxu1  ;;  %v10290_v35 = vld [vmem:[%s10802_s3 + $0x40] ss:$16 sps:$4 sm:$0xff]  }
 0x1d1   :  { %v1019_v1 = vmul.f32 0.5, %v1012_v41  ;;  %v1024_v3 = vmul.f32 0.5, %v1014_v54  ;;  %v10296_v36 = vld [vmem:[%s10802_s3 + $0x48] ss:$16 sps:$4 sm:$0xff]   ;;  %v10302_v37 = vld [vmem:[%s10802_s3 + $0x64] ss:$16 sps:$4 sm:$0xff]  }
 0x1d2   :  { %9454 = vtanh.f32 %v1015_v59  ;;  %v10314_v39 = vld [vmem:[%s10802_s3 + $0x60] ss:$16 sps:$4 sm:$0xff]   ;;  %v10320_v40 = vld [vmem:[%s10802_s3 + $0x68] ss:$16 sps:$4 sm:$0xff]   ;;  %v10326_v41 = vld [vmem:[%s10802_s3 + $0x84] ss:$16 sps:$4 sm:$0xff]  }
 0x1d3   :  { %9456 = vtanh.f32 %v1019_v1  ;;  %v10332_v54 = vld [vmem:[%s10802_s3 + $0x8c] ss:$16 sps:$4 sm:$0xff]   ;;  %v10338_v55 = vld [vmem:[%s10802_s3 + $0x80] ss:$16 sps:$4 sm:$0xff]   ;;  %v10344_v57 = vld [vmem:[%s10802_s3 + $0x88] ss:$16 sps:$4 sm:$0xff]  }
 0x1d4   :  { %9458 = vtanh.f32 %v1013_v38  ;;  %v10308_v38 = vld [vmem:[%s10802_s3 + $0x6c] ss:$16 sps:$4 sm:$0xff]   ;;  %v10350_v59 = vld [vmem:[%s10802_s3 + $0xa4] ss:$16 sps:$4 sm:$0xff]   ;;  %v10362_v63 = vld [vmem:[%s10802_s3 + $0xa0] ss:$16 sps:$4 sm:$0xff]  }
 0x1d5   :  { %9460 = vtanh.f32 %v1024_v3  ;;  %v10356_v62 = vld [vmem:[%s10802_s3 + $0xac] ss:$16 sps:$4 sm:$0xff]   ;;  %v10368_v1 = vld [vmem:[%s10802_s3 + $0xa8] ss:$16 sps:$4 sm:$0xff]   ;;  %v10374_v3 = vld [vmem:[%s10802_s3 + $0xc4] ss:$16 sps:$4 sm:$0xff]  }
 0x1dc   :  { %v9455_v46 = vpop.eup %9454 }
 0x1dd   :  { %v9457_v47 = vpop.eup %9456  ;;  %v1017_v48 = vmul.f32 0.5, %v9455_v46  ;;  %v10380_v46 = vld [vmem:[%s10802_s3 + $0xcc] ss:$16 sps:$4 sm:$0xff]  }
 0x1de   :  { %v1021_v49 = vmul.f32 0.5, %v9457_v47  ;;  %v9459_v51 = vpop.eup %9458  ;;  %v10386_v47 = vld [vmem:[%s10802_s3 + $0xc0] ss:$16 sps:$4 sm:$0xff]  }
 0x1df   :  { %v1018_v50 = vadd.f32 0.5, %v1017_v48  ;;  %v9461_v9 = vpop.eup %9460  ;;  %v10392_v48 = vld [vmem:[%s10802_s3 + $0xc8] ss:$16 sps:$4 sm:$0xff]  }
 0x1e0   :  { %v1022_v52 = vadd.f32 0.5, %v1021_v49  ;;  %v1026_v11 = vmul.f32 0.5, %v9461_v9  ;;  %v10398_v49 = vld [vmem:[%s10802_s3 + $0xe4] ss:$16 sps:$4 sm:$0xff]  }
 0x1e1   :  { %v1029_v53 = vmul.f32 %v9459_v51, %v1018_v50  ;;  %v10404_v50 = vld [vmem:[%s10802_s3 + $0xec] ss:$16 sps:$4 sm:$0xff]   ;;  %v10410_v51 = vld [vmem:[%s10802_s3 + $0xe0] ss:$16 sps:$4 sm:$0xff]  }
 0x1e2   :  { %v1028_v5 = vmul.f32 0.0, %v1022_v52  ;;  %v1027_v14 = vadd.f32 0.5, %v1026_v11  ;;  %v10416_v52 = vld [vmem:[%s10802_s3 + $0xe8] ss:$16 sps:$4 sm:$0xff]  }
 0x1e4   :  { %v10234_v7 = vadd.f32 %v1029_v53, %v1028_v5  ;;  %v10422_v53 = vld [vmem:[%s10802_s3 + $0x4] ss:$16 sps:$4 sm:$0xff]   ;;  %v10428_v5 = vld [vmem:[%s10802_s3 + $0xc] ss:$16 sps:$4 sm:$0xff]  }
 0x1e6   :  { %9462 = vtanh.f32 %v10234_v7 }
 0x1f0   :  { %v9463_v15 = vpop.eup %9462 }
 0x1f1   :  { %v1032_v17 = vmul.f32 %v9463_v15, %v1027_v14 }
 0x1f3   :  { %v1033_v19 = vpack.c.bf16 %v1032_v17, %v1032_v17 }
 0x1f5   :  { %1067 = vmatmul.mubr.bf16.vlgmr.msra.gmra.mrb[16].mxu0 %v1033_v19  ;;  %1108 = vmatmul.mubr.bf16.vlgmr.msra.gmra.mrb[16].mxu1 %v1033_v19 }
 0x1f6   :  { %1140 = vmatpush1.bf16.msra.mxu0 %v10240_v21  ;;  %1181 = vmatpush1.bf16.msra.mxu1 %v10246_v23 }
 0x1f7   :  { %1141 = vmatprep.subr.bf16.mxu0 %v10252_v25  ;;  %1182 = vmatprep.subr.bf16.mxu1 %v10258_v27 }
 0x1f8   :  { %1171 = vmatprep.mubr.bf16.mxu0 %v10821_v34  ;;  %1212 = vmatprep.mubr.bf16.mxu1 %v10821_v34 }
 0x1fa   :  { %1142 = vmatpush1.bf16.msra.mxu0 %v10266_v30  ;;  %1183 = vmatpush1.bf16.msra.mxu1 %v10272_v31 }
 0x1fb   :  { %1143 = vmatprep.subr.bf16.mxu0 %v10278_v32  ;;  %1184 = vmatprep.subr.bf16.mxu1 %v10284_v33 }
 0x1fe   :  { %1144 = vmatpush1.bf16.msra.mxu0 %v10290_v35  ;;  %1185 = vmatpush1.bf16.msra.mxu1 %v10296_v36 }
 0x1ff   :  { %1145 = vmatprep.subr.bf16.mxu0 %v10302_v37  ;;  %1186 = vmatprep.subr.bf16.mxu1 %v10308_v38 }
 0x202   :  { %1146 = vmatpush1.bf16.msra.mxu0 %v10314_v39  ;;  %1187 = vmatpush1.bf16.msra.mxu1 %v10320_v40 }
 0x203   :  { %1147 = vmatprep.subr.bf16.mxu0 %v10326_v41  ;;  %1188 = vmatprep.subr.bf16.mxu1 %v10332_v54 }
 0x206   :  { %1148 = vmatpush1.bf16.msra.mxu0 %v10338_v55  ;;  %1189 = vmatpush1.bf16.msra.mxu1 %v10344_v57 }
 0x207   :  { %1149 = vmatprep.subr.bf16.mxu0 %v10350_v59  ;;  %1190 = vmatprep.subr.bf16.mxu1 %v10356_v62 }
 0x20a   :  { %1150 = vmatpush1.bf16.msra.mxu0 %v10362_v63  ;;  %1191 = vmatpush1.bf16.msra.mxu1 %v10368_v1 }
 0x20b   :  { %1151 = vmatprep.subr.bf16.mxu0 %v10374_v3  ;;  %1192 = vmatprep.subr.bf16.mxu1 %v10380_v46 }
 0x20e   :  { %1152 = vmatpush1.bf16.msra.mxu0 %v10386_v47  ;;  %1193 = vmatpush1.bf16.msra.mxu1 %v10392_v48 }
 0x20f   :  { %1153 = vmatprep.subr.bf16.mxu0 %v10398_v49  ;;  %1194 = vmatprep.subr.bf16.mxu1 %v10404_v50 }
 0x212   :  { %1154 = vmatpush1.bf16.msra.mxu0 %v10410_v51  ;;  %1195 = vmatpush1.bf16.msra.mxu1 %v10416_v52 }
 0x213   :  { %1244 = vmatprep.subr.bf16.mxu0 %v10422_v53  ;;  %1285 = vmatprep.subr.bf16.mxu1 %v10428_v5 }
 0x2c8   :  { %v1068_v9 = vpop.f32.mrb[16].mxu0  ;;  %v1109_v11 = vpop.f32.mrb[16].mxu1 }
 0x2c9   :  { %v1116_v14 = vadd.f32 %v1068_v9, %v10194_v56  ;;  %v1118_v15 = vadd.f32 %v1109_v11, %v10196_v58  ;;  %v1070_v17 = vpop.f32.mrb[17].mxu0  ;;  %v1111_v19 = vpop.f32.mrb[17].mxu1 }
 0x2ca   :  { %v1117_v34 = vadd.f32 %v1070_v17, %v10198_v60  ;;  %v1119_v44 = vadd.f32 %v1111_v19, %v10200_v61  ;;  %v1072_v45 = vpop.f32.mrb[18].mxu0  ;;  %v1113_v43 = vpop.f32.mrb[18].mxu1 }
 0x2cb   :  { %v1120_v42 = vmul.f32 0.5, %v1116_v14  ;;  %v1073_v29 = vpop.f32.mrb[19].mxu0  ;;  %v1114_v28 = vpop.f32.mrb[19].mxu1 }
 0x2cc   :  { %v1124_v26 = vmul.f32 0.5, %v1117_v34  ;;  %v1129_v24 = vmul.f32 0.5, %v1119_v44 }
 0x2cd   :  { %9464 = vtanh.f32 %v1120_v42 }
 0x2ce   :  { %9466 = vtanh.f32 %v1124_v26 }
 0x2cf   :  { %9468 = vtanh.f32 %v1118_v15 }
 0x2d0   :  { %9470 = vtanh.f32 %v1129_v24 }
 0x2d7   :  { %v9465_v22 = vpop.eup %9464 }
 0x2d8   :  { %v9467_v56 = vpop.eup %9466  ;;  %v1122_v9 = vmul.f32 0.5, %v9465_v22 }
 0x2d9   :  { %v1126_v58 = vmul.f32 0.5, %v9467_v56  ;;  %v9469_v20 = vpop.eup %9468 }
 0x2da   :  { %v1123_v11 = vadd.f32 0.5, %v1122_v9  ;;  %v9471_v34 = vpop.eup %9470 }
 0x2db   :  { %v1127_v60 = vadd.f32 0.5, %v1126_v58  ;;  %v1131_v42 = vmul.f32 0.5, %v9471_v34 }
 0x2dc   :  { %v1134_v17 = vmul.f32 %v9469_v20, %v1123_v11  ;;  %v10846_v20 = vmov 0  }
 0x2dd   :  { %v1133_v45 = vmul.f32 %v1127_v60, %v10234_v7  ;;  %v1132_v61 = vadd.f32 0.5, %v1131_v42 }
 0x2df   :  { %v10436_v43 = vadd.f32 %v1134_v17, %v1133_v45 }
 0x2e1   :  { %9472 = vtanh.f32 %v10436_v43 }
 0x2eb   :  { %v9473_v26 = vpop.eup %9472 }
 0x2ec   :  { %v1137_v44 = vmul.f32 %v9473_v26, %v1132_v61 }
 0x2ee   :  { %v1138_v28 = vpack.c.bf16 %v1137_v44, %v1137_v44 }
 0x2f0   :  { %1172 = vmatmul.mubr.bf16.vlgmr.msra.gmra.mrb[20].mxu0 %v1138_v28  ;;  %1213 = vmatmul.mubr.bf16.vlgmr.msra.gmra.mrb[20].mxu1 %v1138_v28 }
 0x2f1   :  { %1245 = vmatpush1.bf16.msra.mxu0 %v10240_v21  ;;  %1286 = vmatpush1.bf16.msra.mxu1 %v10246_v23 }
 0x2f2   :  { %1246 = vmatprep.subr.bf16.mxu0 %v10252_v25  ;;  %1287 = vmatprep.subr.bf16.mxu1 %v10258_v27 }
 0x2f3   :  { %1276 = vmatprep.mubr.bf16.mxu0 %v10846_v20  ;;  %1317 = vmatprep.mubr.bf16.mxu1 %v10846_v20 }
 0x2f5   :  { %1247 = vmatpush1.bf16.msra.mxu0 %v10266_v30  ;;  %1288 = vmatpush1.bf16.msra.mxu1 %v10272_v31 }
 0x2f6   :  { %1248 = vmatprep.subr.bf16.mxu0 %v10278_v32  ;;  %1289 = vmatprep.subr.bf16.mxu1 %v10284_v33 }
 0x2f9   :  { %1249 = vmatpush1.bf16.msra.mxu0 %v10290_v35  ;;  %1290 = vmatpush1.bf16.msra.mxu1 %v10296_v36 }
 0x2fa   :  { %1250 = vmatprep.subr.bf16.mxu0 %v10302_v37  ;;  %1291 = vmatprep.subr.bf16.mxu1 %v10308_v38 }
 0x2fd   :  { %1251 = vmatpush1.bf16.msra.mxu0 %v10314_v39  ;;  %1292 = vmatpush1.bf16.msra.mxu1 %v10320_v40 }
 0x2fe   :  { %1252 = vmatprep.subr.bf16.mxu0 %v10326_v41  ;;  %1293 = vmatprep.subr.bf16.mxu1 %v10332_v54 }
 0x301   :  { %1253 = vmatpush1.bf16.msra.mxu0 %v10338_v55  ;;  %1294 = vmatpush1.bf16.msra.mxu1 %v10344_v57 }
 0x302   :  { %1254 = vmatprep.subr.bf16.mxu0 %v10350_v59  ;;  %1295 = vmatprep.subr.bf16.mxu1 %v10356_v62 }
 0x305   :  { %1255 = vmatpush1.bf16.msra.mxu0 %v10362_v63  ;;  %1296 = vmatpush1.bf16.msra.mxu1 %v10368_v1 }
 0x306   :  { %1256 = vmatprep.subr.bf16.mxu0 %v10374_v3  ;;  %1297 = vmatprep.subr.bf16.mxu1 %v10380_v46 }
 0x309   :  { %1257 = vmatpush1.bf16.msra.mxu0 %v10386_v47  ;;  %1298 = vmatpush1.bf16.msra.mxu1 %v10392_v48 }
 0x30a   :  { %1258 = vmatprep.subr.bf16.mxu0 %v10398_v49  ;;  %1299 = vmatprep.subr.bf16.mxu1 %v10404_v50 }
 0x30d   :  { %1259 = vmatpush1.bf16.msra.mxu0 %v10410_v51  ;;  %1300 = vmatpush1.bf16.msra.mxu1 %v10416_v52 }
 0x30e   :  { %1349 = vmatprep.subr.bf16.mxu0 %v10422_v53  ;;  %1390 = vmatprep.subr.bf16.mxu1 %v10428_v5 }
 0x3c3   :  { %v1173_v22 = vpop.f32.mrb[20].mxu0  ;;  %v1214_v24 = vpop.f32.mrb[20].mxu1 }
 0x3c4   :  { %v1221_v29 = vadd.f32 %v1173_v22, %v10202_v0  ;;  %v1223_v7 = vadd.f32 %v1214_v24, %v10204_v2  ;;  %v1175_v14 = vpop.f32.mrb[21].mxu0  ;;  %v1216_v15 = vpop.f32.mrb[21].mxu1 }
 0x3c5   :  { %v1222_v19 = vadd.f32 %v1175_v14, %v10206_v4  ;;  %v1224_v56 = vadd.f32 %v1216_v15, %v10208_v6  ;;  %v1177_v9 = vpop.f32.mrb[22].mxu0  ;;  %v1218_v58 = vpop.f32.mrb[22].mxu1 }
 0x3c6   :  { %v1225_v11 = vmul.f32 0.5, %v1221_v29  ;;  %v1178_v60 = vpop.f32.mrb[23].mxu0  ;;  %v1219_v17 = vpop.f32.mrb[23].mxu1 }
 0x3c7   :  { %v1229_v45 = vmul.f32 0.5, %v1222_v19  ;;  %v1234_v34 = vmul.f32 0.5, %v1224_v56 }
 0x3c8   :  { %9474 = vtanh.f32 %v1225_v11 }
 0x3c9   :  { %9476 = vtanh.f32 %v1229_v45 }
 0x3ca   :  { %9478 = vtanh.f32 %v1223_v7 }
 0x3cb   :  { %9480 = vtanh.f32 %v1234_v34 }
 0x3d2   :  { %v9475_v42 = vpop.eup %9474 }
 0x3d3   :  { %v9477_v0 = vpop.eup %9476  ;;  %v1227_v61 = vmul.f32 0.5, %v9475_v42 }
 0x3d4   :  { %v1231_v2 = vmul.f32 0.5, %v9477_v0  ;;  %v9479_v44 = vpop.eup %9478 }
 0x3d5   :  { %v1228_v26 = vadd.f32 0.5, %v1227_v61  ;;  %v9481_v24 = vpop.eup %9480 }
 0x3d6   :  { %v1232_v4 = vadd.f32 0.5, %v1231_v2  ;;  %v1236_v29 = vmul.f32 0.5, %v9481_v24 }
 0x3d7   :  { %v1239_v28 = vmul.f32 %v9479_v44, %v1228_v26 }
 0x3d8   :  { %v1238_v6 = vmul.f32 %v1232_v4, %v10436_v43  ;;  %v1237_v14 = vadd.f32 0.5, %v1236_v29 }
 0x3da   :  { %v10478_v22 = vadd.f32 %v1239_v28, %v1238_v6 }
 0x3dc   :  { %9482 = vtanh.f32 %v10478_v22 }
 0x3e6   :  { %v9483_v7 = vpop.eup %9482 }
 0x3e7   :  { %v1242_v15 = vmul.f32 %v9483_v7, %v1237_v14 }
 0x3e9   :  { %v1243_v19 = vpack.c.bf16 %v1242_v15, %v1242_v15 }
 0x3eb   :  { %1277 = vmatmul.mubr.bf16.vlgmr.msra.gmra.mrb[24].mxu0 %v1243_v19  ;;  %1318 = vmatmul.mubr.bf16.vlgmr.msra.gmra.mrb[24].mxu1 %v1243_v19 }
 0x3ec   :  { %1350 = vmatpush1.bf16.msra.mxu0 %v10240_v21  ;;  %1391 = vmatpush1.bf16.msra.mxu1 %v10246_v23 }
 0x3ed   :  { %1351 = vmatprep.subr.bf16.mxu0 %v10252_v25  ;;  %1392 = vmatprep.subr.bf16.mxu1 %v10258_v27 }
 0x3ee   :  { %1381 = vmatprep.mubr.bf16.mxu0 %v10846_v20  ;;  %1422 = vmatprep.mubr.bf16.mxu1 %v10846_v20 }
 0x3f0   :  { %1352 = vmatpush1.bf16.msra.mxu0 %v10266_v30  ;;  %1393 = vmatpush1.bf16.msra.mxu1 %v10272_v31 }
 0x3f1   :  { %1353 = vmatprep.subr.bf16.mxu0 %v10278_v32  ;;  %1394 = vmatprep.subr.bf16.mxu1 %v10284_v33 }
 0x3f4   :  { %1354 = vmatpush1.bf16.msra.mxu0 %v10290_v35  ;;  %1395 = vmatpush1.bf16.msra.mxu1 %v10296_v36 }
 0x3f5   :  { %1355 = vmatprep.subr.bf16.mxu0 %v10302_v37  ;;  %1396 = vmatprep.subr.bf16.mxu1 %v10308_v38 }
 0x3f8   :  { %1356 = vmatpush1.bf16.msra.mxu0 %v10314_v39  ;;  %1397 = vmatpush1.bf16.msra.mxu1 %v10320_v40 }
 0x3f9   :  { %1357 = vmatprep.subr.bf16.mxu0 %v10326_v41  ;;  %1398 = vmatprep.subr.bf16.mxu1 %v10332_v54 }
 0x3fc   :  { %1358 = vmatpush1.bf16.msra.mxu0 %v10338_v55  ;;  %1399 = vmatpush1.bf16.msra.mxu1 %v10344_v57 }
 0x3fd   :  { %1359 = vmatprep.subr.bf16.mxu0 %v10350_v59  ;;  %1400 = vmatprep.subr.bf16.mxu1 %v10356_v62 }
 0x400   :  { %1360 = vmatpush1.bf16.msra.mxu0 %v10362_v63  ;;  %1401 = vmatpush1.bf16.msra.mxu1 %v10368_v1 }
 0x401   :  { %1361 = vmatprep.subr.bf16.mxu0 %v10374_v3  ;;  %1402 = vmatprep.subr.bf16.mxu1 %v10380_v46 }
 0x404   :  { %1362 = vmatpush1.bf16.msra.mxu0 %v10386_v47  ;;  %1403 = vmatpush1.bf16.msra.mxu1 %v10392_v48 }
 0x405   :  { %1363 = vmatprep.subr.bf16.mxu0 %v10398_v49  ;;  %1404 = vmatprep.subr.bf16.mxu1 %v10404_v50 }
 0x408   :  { %1364 = vmatpush1.bf16.msra.mxu0 %v10410_v51  ;;  %1405 = vmatpush1.bf16.msra.mxu1 %v10416_v52 }
 0x409   :  { %1454 = vmatprep.subr.bf16.mxu0 %v10422_v53  ;;  %1495 = vmatprep.subr.bf16.mxu1 %v10428_v5 }
 0x4be   :  { %v1278_v43 = vpop.f32.mrb[24].mxu0  ;;  %v1319_v56 = vpop.f32.mrb[24].mxu1 }
 0x4bf   :  { %v1326_v9 = vadd.f32 %v1278_v43, %v10210_v8  ;;  %v1328_v58 = vadd.f32 %v1319_v56, %v10212_v10  ;;  %v1280_v11 = vpop.f32.mrb[25].mxu0  ;;  %v1321_v60 = vpop.f32.mrb[25].mxu1 }
 0x4c0   :  { %v1327_v17 = vadd.f32 %v1280_v11, %v10214_v12  ;;  %v1329_v45 = vadd.f32 %v1321_v60, %v10216_v13  ;;  %v1282_v34 = vpop.f32.mrb[26].mxu0  ;;  %v1323_v42 = vpop.f32.mrb[26].mxu1  ;;  %v8361_v11 = vld [vmem:[#allocation6] ss:$16 sps:$4 sm:$0xff]  }
 0x4c1   :  { %v1330_v0 = vmul.f32 0.5, %v1326_v9  ;;  %v1283_v61 = vpop.f32.mrb[27].mxu0  ;;  %v1324_v2 = vpop.f32.mrb[27].mxu1  ;;  %v10566_v9 = vld [vmem:[%s10849_s19] sm:$0xff] }
 0x4c2   :  { %v1334_v53 = vmul.f32 0.5, %v1327_v17  ;;  %v1339_v5 = vmul.f32 0.5, %v1329_v45  ;;  %v8364_v60 = vld [vmem:[#allocation6 + $0x200] ss:$16 sps:$4 sm:$0xff]   ;;  %v8369_v45 = vld [vmem:[#allocation6 + $0x24] ss:$16 sps:$4 sm:$0xff]   ;;  %v10575_v42 = vcombine.high %v10566_v9, %v10566_v9 }
 0x4c3   :  { %9484 = vtanh.f32 %v1330_v0  ;;  %v8372_v34 = vld [vmem:[#allocation6 + $0x224] ss:$16 sps:$4 sm:$0xff]   ;;  %v8367_v61 = vld [vmem:[#allocation6 + $0x20] ss:$16 sps:$4 sm:$0xff]  }
 0x4c4   :  { %9486 = vtanh.f32 %v1334_v53  ;;  %v8370_v2 = vld [vmem:[#allocation6 + $0x220] ss:$16 sps:$4 sm:$0xff]   ;;  %v8375_v53 = vld [vmem:[#allocation6 + $0x44] ss:$16 sps:$4 sm:$0xff]  }
 0x4c5   :  { %9488 = vtanh.f32 %v1328_v58  ;;  %v10571_v58 = vld [vmem:[%s10849_s19 + $0x8] sm:$0xff] }
 0x4c6   :  { %9490 = vtanh.f32 %v1339_v5  ;;  %v10579_v0 = vcombine.high %v10571_v58, %v10571_v58  ;;  %v8378_v5 = vld [vmem:[#allocation6 + $0x244] ss:$16 sps:$4 sm:$0xff]  }
 0x4cd   :  { %v9485_v26 = vpop.eup %9484 }
 0x4ce   :  { %v9487_v8 = vpop.eup %9486  ;;  %v1332_v44 = vmul.f32 0.5, %v9485_v26  ;;  %v8373_v26 = vld [vmem:[#allocation6 + $0x40] ss:$16 sps:$4 sm:$0xff]  }
 0x4cf   :  { %v1336_v10 = vmul.f32 0.5, %v9487_v8  ;;  %v9489_v28 = vpop.eup %9488  ;;  %v8376_v8 = vld [vmem:[#allocation6 + $0x240] ss:$16 sps:$4 sm:$0xff]  }
 0x4d0   :  { %v1333_v4 = vadd.f32 0.5, %v1332_v44  ;;  %v9491_v29 = vpop.eup %9490  ;;  %v8381_v44 = vld [vmem:[#allocation6 + $0x64] ss:$16 sps:$4 sm:$0xff]  }
 0x4d1   :  { %v1337_v12 = vadd.f32 0.5, %v1336_v10  ;;  %v1341_v14 = vmul.f32 0.5, %v9491_v29  ;;  %v8384_v10 = vld [vmem:[#allocation6 + $0x264] ss:$16 sps:$4 sm:$0xff]  }
 0x4d2   :  { %v1344_v6 = vmul.f32 %v9489_v28, %v1333_v4  ;;  %v8379_v4 = vld [vmem:[#allocation6 + $0x60] ss:$16 sps:$4 sm:$0xff]   ;;  %v8393_v29 = vld [vmem:[#allocation6 + $0xa4] ss:$16 sps:$4 sm:$0xff]  }
 0x4d3   :  { %v1343_v13 = vmul.f32 %v1337_v12, %v10478_v22  ;;  %v1342_v7 = vadd.f32 0.5, %v1341_v14  ;;  %v8382_v28 = vld [vmem:[#allocation6 + $0x260] ss:$16 sps:$4 sm:$0xff]   ;;  %v8387_v12 = vld [vmem:[#allocation6 + $0x84] ss:$16 sps:$4 sm:$0xff]  }
 0x4d4   :  { %v8396_v14 = vld [vmem:[#allocation6 + $0x2a4] ss:$16 sps:$4 sm:$0xff]  }
 0x4d5   :  { %v10520_v24 = vadd.f32 %v1344_v6, %v1343_v13  ;;  %v8390_v6 = vld [vmem:[#allocation6 + $0x284] ss:$16 sps:$4 sm:$0xff]   ;;  %v8385_v13 = vld [vmem:[#allocation6 + $0x80] ss:$16 sps:$4 sm:$0xff]  }
 0x4d7   :  { %9492 = vtanh.f32 %v10520_v24 }
 0x4e1   :  { %v9493_v15 = vpop.eup %9492 }
 0x4e2   :  { %v1347_v19 = vmul.f32 %v9493_v15, %v1342_v7  ;;  %v8391_v7 = vld [vmem:[#allocation6 + $0xa0] ss:$16 sps:$4 sm:$0xff]  }
 0x4e3   :  { %v8394_v15 = vld [vmem:[#allocation6 + $0x2a0] ss:$16 sps:$4 sm:$0xff]  }
 0x4e4   :  { %v1348_v43 = vpack.c.bf16 %v1347_v19, %v1347_v19  ;;  %v8399_v19 = vld [vmem:[#allocation6 + $0xc4] ss:$16 sps:$4 sm:$0xff]  }
 0x4e6   :  { %1382 = vmatmul.mubr.bf16.vlgmr.msra.gmra.mrb[28].mxu0 %v1348_v43  ;;  %1423 = vmatmul.mubr.bf16.vlgmr.msra.gmra.mrb[28].mxu1 %v1348_v43  ;;  %v8402_v43 = vld [vmem:[#allocation6 + $0x2c4] ss:$16 sps:$4 sm:$0xff]  }
 0x4e7   :  { %1455 = vmatpush1.bf16.msra.mxu0 %v10240_v21  ;;  %1496 = vmatpush1.bf16.msra.mxu1 %v10246_v23  ;;  %v8363_v21 = vld [vmem:[#allocation6 + $0x4] ss:$16 sps:$4 sm:$0xff]  }
 0x4e8   :  { %1456 = vmatprep.subr.bf16.mxu0 %v10252_v25  ;;  %1497 = vmatprep.subr.bf16.mxu1 %v10258_v27  ;;  %v8366_v23 = vld [vmem:[#allocation6 + $0x204] ss:$16 sps:$4 sm:$0xff]  }
 0x4e9   :  { %1486 = vmatprep.mubr.bf16.mxu0 %v10846_v20  ;;  %1527 = vmatprep.mubr.bf16.mxu1 %v10846_v20 }
 0x4eb   :  { %1457 = vmatpush1.bf16.msra.mxu0 %v10266_v30  ;;  %1498 = vmatpush1.bf16.msra.mxu1 %v10272_v31 }
 0x4ec   :  { %1458 = vmatprep.subr.bf16.mxu0 %v10278_v32  ;;  %1499 = vmatprep.subr.bf16.mxu1 %v10284_v33 }
 0x4ef   :  { %1459 = vmatpush1.bf16.msra.mxu0 %v10290_v35  ;;  %1500 = vmatpush1.bf16.msra.mxu1 %v10296_v36  ;;  %v10847_v35 = vld [vmem:[#allocation24_spill] sm:$0xff] }
 0x4f0   :  { %1460 = vmatprep.subr.bf16.mxu0 %v10302_v37  ;;  %1501 = vmatprep.subr.bf16.mxu1 %v10308_v38  ;;  %v10848_v37 = vld [vmem:[#allocation25_spill] sm:$0xff] }
 0x4f3   :  { %1461 = vmatpush1.bf16.msra.mxu0 %v10314_v39  ;;  %1502 = vmatpush1.bf16.msra.mxu1 %v10320_v40 }
 0x4f4   :  { %1462 = vmatprep.subr.bf16.mxu0 %v10326_v41  ;;  %1503 = vmatprep.subr.bf16.mxu1 %v10332_v54 }
 0x4f7   :  { %1463 = vmatpush1.bf16.msra.mxu0 %v10338_v55  ;;  %1504 = vmatpush1.bf16.msra.mxu1 %v10344_v57 }
 0x4f8   :  { %1464 = vmatprep.subr.bf16.mxu0 %v10350_v59  ;;  %1505 = vmatprep.subr.bf16.mxu1 %v10356_v62 }
 0x4fb   :  { %1465 = vmatpush1.bf16.msra.mxu0 %v10362_v63  ;;  %1506 = vmatpush1.bf16.msra.mxu1 %v10368_v1 }
 0x4fc   :  { %1466 = vmatprep.subr.bf16.mxu0 %v10374_v3  ;;  %1507 = vmatprep.subr.bf16.mxu1 %v10380_v46 }
 0x4ff   :  { %1467 = vmatpush1.bf16.msra.mxu0 %v10386_v47  ;;  %1508 = vmatpush1.bf16.msra.mxu1 %v10392_v48 }
 0x500   :  { %1468 = vmatprep.subr.bf16.mxu0 %v10398_v49  ;;  %1509 = vmatprep.subr.bf16.mxu1 %v10404_v50 }
 0x503   :  { %1469 = vmatpush1.bf16.msra.mxu0 %v10410_v51  ;;  %1510 = vmatpush1.bf16.msra.mxu1 %v10416_v52 }
 0x504   :  { %2572 = vmatprep.subr.bf16.mxu0 %v8363_v21  ;;  %2613 = vmatprep.subr.bf16.mxu1 %v8366_v23  ;;  %v8397_v21 = vld [vmem:[#allocation6 + $0xc0] ss:$16 sps:$4 sm:$0xff]  }
 0x505   :  { %v8400_v23 = vld [vmem:[#allocation6 + $0x2c0] ss:$16 sps:$4 sm:$0xff]  }
 0x5b9   :  { %v1383_v25 = vpop.f32.mrb[28].mxu0  ;;  %v1424_v27 = vpop.f32.mrb[28].mxu1 }
 0x5ba   :  { %v1431_v30 = vadd.f32 %v1383_v25, %v10218_v16  ;;  %v1433_v31 = vadd.f32 %v1424_v27, %v10220_v18  ;;  %v1385_v32 = vpop.f32.mrb[29].mxu0  ;;  %v1426_v33 = vpop.f32.mrb[29].mxu1  ;;  %v8405_v25 = vld [vmem:[#allocation6 + $0xe4] ss:$16 sps:$4 sm:$0xff]  }
 0x5bb   :  { %v1432_v36 = vadd.f32 %v1385_v32, %v10847_v35  ;;  %v1434_v38 = vadd.f32 %v1426_v33, %v10848_v37  ;;  %v1387_v39 = vpop.f32.mrb[30].mxu0  ;;  %v1428_v40 = vpop.f32.mrb[30].mxu1  ;;  %v8408_v27 = vld [vmem:[#allocation6 + $0x2e4] ss:$16 sps:$4 sm:$0xff]   ;;  %v8409_v35 = vld [vmem:[#allocation6 + $0x100] ss:$16 sps:$4 sm:$0xff]  }
 0x5bc   :  { %v1435_v41 = vmul.f32 0.5, %v1431_v30  ;;  %v1388_v54 = vpop.f32.mrb[31].mxu0  ;;  %v1429_v55 = vpop.f32.mrb[31].mxu1  ;;  %v8403_v30 = vld [vmem:[#allocation6 + $0xe0] ss:$16 sps:$4 sm:$0xff]  }
 0x5bd   :  { %v1439_v57 = vmul.f32 0.5, %v1432_v36  ;;  %v1444_v59 = vmul.f32 0.5, %v1434_v38  ;;  %v8411_v32 = vld [vmem:[#allocation6 + $0x104] ss:$16 sps:$4 sm:$0xff]   ;;  %v8412_v36 = vld [vmem:[#allocation6 + $0x300] ss:$16 sps:$4 sm:$0xff]  }
 0x5be   :  { %9494 = vtanh.f32 %v1435_v41  ;;  %v8414_v33 = vld [vmem:[#allocation6 + $0x304] ss:$16 sps:$4 sm:$0xff]   ;;  %v8415_v39 = vld [vmem:[#allocation6 + $0x120] ss:$16 sps:$4 sm:$0xff]  }
 0x5bf   :  { %9496 = vtanh.f32 %v1439_v57  ;;  %v8417_v37 = vld [vmem:[#allocation6 + $0x124] ss:$16 sps:$4 sm:$0xff]   ;;  %v8418_v40 = vld [vmem:[#allocation6 + $0x320] ss:$16 sps:$4 sm:$0xff]  }
 0x5c0   :  { %9498 = vtanh.f32 %v1433_v31  ;;  %v8406_v31 = vld [vmem:[#allocation6 + $0x2e0] ss:$16 sps:$4 sm:$0xff]   ;;  %v8420_v38 = vld [vmem:[#allocation6 + $0x324] ss:$16 sps:$4 sm:$0xff]  }
 0x5c1   :  { %9500 = vtanh.f32 %v1444_v59  ;;  %v8423_v41 = vld [vmem:[#allocation6 + $0x144] ss:$16 sps:$4 sm:$0xff]   ;;  %v8421_v55 = vld [vmem:[#allocation6 + $0x140] ss:$16 sps:$4 sm:$0xff]  }
 0x5c2   :  { %v8426_v54 = vld [vmem:[#allocation6 + $0x344] ss:$16 sps:$4 sm:$0xff]   ;;  %v8424_v57 = vld [vmem:[#allocation6 + $0x340] ss:$16 sps:$4 sm:$0xff]  }
 0x5c3   :  { %v8429_v59 = vld [vmem:[#allocation6 + $0x164] ss:$16 sps:$4 sm:$0xff]  }
 0x5c8   :  { %v9495_v62 = vpop.eup %9494 }
 0x5c9   :  { %v9497_v16 = vpop.eup %9496  ;;  %v1437_v63 = vmul.f32 0.5, %v9495_v62  ;;  %v8432_v62 = vld [vmem:[#allocation6 + $0x364] ss:$16 sps:$4 sm:$0xff]  }
 0x5ca   :  { %v1441_v18 = vmul.f32 0.5, %v9497_v16  ;;  %v9499_v3 = vpop.eup %9498  ;;  %v8427_v16 = vld [vmem:[#allocation6 + $0x160] ss:$16 sps:$4 sm:$0xff]  }
 0x5cb   :  { %v1438_v1 = vadd.f32 0.5, %v1437_v63  ;;  %v9501_v50 = vpop.eup %9500  ;;  %v8430_v63 = vld [vmem:[#allocation6 + $0x360] ss:$16 sps:$4 sm:$0xff]  }
 0x5cc   :  { %v1442_v46 = vadd.f32 0.5, %v1441_v18  ;;  %v1446_v51 = vmul.f32 0.5, %v9501_v50  ;;  %v8435_v18 = vld [vmem:[#allocation6 + $0x184] ss:$16 sps:$4 sm:$0xff]   ;;  %v8439_v50 = vld [vmem:[#allocation6 + $0x1a0] ss:$16 sps:$4 sm:$0xff]  }
 0x5cd   :  { %v1449_v47 = vmul.f32 %v9499_v3, %v1438_v1  ;;  %v8438_v1 = vld [vmem:[#allocation6 + $0x384] ss:$16 sps:$4 sm:$0xff]   ;;  %v8433_v3 = vld [vmem:[#allocation6 + $0x180] ss:$16 sps:$4 sm:$0xff]  }
 0x5ce   :  { %v1448_v48 = vmul.f32 %v1442_v46, %v10520_v24  ;;  %v1447_v52 = vadd.f32 0.5, %v1446_v51  ;;  %v8388_v24 = vld [vmem:[#allocation6 + $0x280] ss:$16 sps:$4 sm:$0xff]  }
 0x5cf   :  { %v8436_v46 = vld [vmem:[#allocation6 + $0x380] ss:$16 sps:$4 sm:$0xff]  }
 0x5d0   :  { %v10560_v49 = vadd.f32 %v1449_v47, %v1448_v48  ;;  %v8441_v47 = vld [vmem:[#allocation6 + $0x1a4] ss:$16 sps:$4 sm:$0xff]   ;;  %v8442_v51 = vld [vmem:[#allocation6 + $0x3a0] ss:$16 sps:$4 sm:$0xff]  }
 0x5d1   :  { %v8444_v48 = vld [vmem:[#allocation6 + $0x3a4] ss:$16 sps:$4 sm:$0xff]  }
 0x5d2   :  { %9502 = vtanh.f32 %v10560_v49 }
 0x5dc   :  { %v9503_v22 = vpop.eup %9502 }
 0x5dd   :  { %v1452_v56 = vmul.f32 %v9503_v22, %v1447_v52  ;;  %v8447_v52 = vld [vmem:[#allocation6 + $0x1c4] ss:$16 sps:$4 sm:$0xff]  }
 0x5de   :  { %v8450_v22 = vld [vmem:[#allocation6 + $0x3c4] ss:$16 sps:$4 sm:$0xff]  }
 0x5df   :  { %v1453_v17 = vpack.c.bf16 %v1452_v56, %v1452_v56  ;;  %v8445_v56 = vld [vmem:[#allocation6 + $0x1c0] ss:$16 sps:$4 sm:$0xff]  }
 0x5e1   :  { %1487 = vmatmul.mubr.bf16.vlgmr.msra.gmra.mrb[32].mxu0 %v1453_v17  ;;  %1528 = vmatmul.mubr.bf16.vlgmr.msra.gmra.mrb[32].mxu1 %v1453_v17  ;;  %v8456_v17 = vld [vmem:[#allocation6 + $0x3e4] ss:$16 sps:$4 sm:$0xff]  }
 0x5e2   :  { %2573 = vmatpush1.bf16.msra.mxu0 %v8361_v11  ;;  %2614 = vmatpush1.bf16.msra.mxu1 %v8364_v60  ;;  %v8448_v11 = vld [vmem:[#allocation6 + $0x3c0] ss:$16 sps:$4 sm:$0xff]   ;;  %v8453_v60 = vld [vmem:[#allocation6 + $0x1e4] ss:$16 sps:$4 sm:$0xff]  }
 0x5e3   :  { %2574 = vmatprep.subr.bf16.mxu0 %v8369_v45  ;;  %2615 = vmatprep.subr.bf16.mxu1 %v8372_v34  ;;  %v8451_v45 = vld [vmem:[#allocation6 + $0x1e0] ss:$16 sps:$4 sm:$0xff]  }
 0x5e4   :  { %2604 = vmatprep.mubr.bf16.mxu0 %v10575_v42  ;;  %2645 = vmatprep.mubr.bf16.mxu1 %v10579_v0  ;;  %v8454_v34 = vld [vmem:[#allocation6 + $0x3e0] ss:$16 sps:$4 sm:$0xff]  }
 0x5e6   :  { %2575 = vmatpush1.bf16.msra.mxu0 %v8367_v61  ;;  %2616 = vmatpush1.bf16.msra.mxu1 %v8370_v2  ;;  %v8461_v61 = vld [vmem:[#allocation6 + $0x404] ss:$16 sps:$4 sm:$0xff]   ;;  %v8466_v2 = vld [vmem:[#allocation6 + $0xc] ss:$16 sps:$4 sm:$0xff]  }
 0x5e7   :  { %2576 = vmatprep.subr.bf16.mxu0 %v8375_v53  ;;  %2617 = vmatprep.subr.bf16.mxu1 %v8378_v5  ;;  %v10585_v53 = vcombine.low %v10566_v9, %v10566_v9  ;;  %v10589_v5 = vcombine.low %v10571_v58, %v10571_v58  ;;  %v8467_v9 = vld [vmem:[#allocation6 + $0x420] ss:$16 sps:$4 sm:$0xff]   ;;  %v8475_v58 = vld [vmem:[#allocation6 + $0x444] ss:$16 sps:$4 sm:$0xff]  }
 0x5ea   :  { %2577 = vmatpush1.bf16.msra.mxu0 %v8373_v26  ;;  %2618 = vmatpush1.bf16.msra.mxu1 %v8376_v8  ;;  %v8459_v26 = vld [vmem:[#allocation6 + $0x400] ss:$16 sps:$4 sm:$0xff]   ;;  %v8464_v8 = vld [vmem:[#allocation6 + $0x8] ss:$16 sps:$4 sm:$0xff]  }
 0x5eb   :  { %2578 = vmatprep.subr.bf16.mxu0 %v8381_v44  ;;  %2619 = vmatprep.subr.bf16.mxu1 %v8384_v10  ;;  %v8469_v44 = vld [vmem:[#allocation6 + $0x424] ss:$16 sps:$4 sm:$0xff]   ;;  %v8472_v10 = vld [vmem:[#allocation6 + $0x2c] ss:$16 sps:$4 sm:$0xff]  }
 0x5ee   :  { %2579 = vmatpush1.bf16.msra.mxu0 %v8379_v4  ;;  %2620 = vmatpush1.bf16.msra.mxu1 %v8382_v28  ;;  %v8470_v4 = vld [vmem:[#allocation6 + $0x28] ss:$16 sps:$4 sm:$0xff]   ;;  %v8478_v28 = vld [vmem:[#allocation6 + $0x4c] ss:$16 sps:$4 sm:$0xff]  }
 0x5ef   :  { %2580 = vmatprep.subr.bf16.mxu0 %v8387_v12  ;;  %2621 = vmatprep.subr.bf16.mxu1 %v8390_v6  ;;  %v8473_v12 = vld [vmem:[#allocation6 + $0x440] ss:$16 sps:$4 sm:$0xff]   ;;  %v8476_v6 = vld [vmem:[#allocation6 + $0x48] ss:$16 sps:$4 sm:$0xff]  }
 0x5f2   :  { %2581 = vmatpush1.bf16.msra.mxu0 %v8385_v13  ;;  %2622 = vmatpush1.bf16.msra.mxu1 %v8388_v24  ;;  %v8481_v13 = vld [vmem:[#allocation6 + $0x464] ss:$16 sps:$4 sm:$0xff]   ;;  %v8484_v24 = vld [vmem:[#allocation6 + $0x6c] ss:$16 sps:$4 sm:$0xff]  }
 0x5f3   :  { %2582 = vmatprep.subr.bf16.mxu0 %v8393_v29  ;;  %2623 = vmatprep.subr.bf16.mxu1 %v8396_v14  ;;  %v8479_v29 = vld [vmem:[#allocation6 + $0x460] ss:$16 sps:$4 sm:$0xff]   ;;  %v8482_v14 = vld [vmem:[#allocation6 + $0x68] ss:$16 sps:$4 sm:$0xff]  }
 0x5f6   :  { %2583 = vmatpush1.bf16.msra.mxu0 %v8391_v7  ;;  %2624 = vmatpush1.bf16.msra.mxu1 %v8394_v15  ;;  %v8487_v7 = vld [vmem:[#allocation6 + $0x484] ss:$16 sps:$4 sm:$0xff]   ;;  %v8490_v15 = vld [vmem:[#allocation6 + $0x8c] ss:$16 sps:$4 sm:$0xff]  }
 0x5f7   :  { %2584 = vmatprep.subr.bf16.mxu0 %v8399_v19  ;;  %2625 = vmatprep.subr.bf16.mxu1 %v8402_v43  ;;  %v8485_v19 = vld [vmem:[#allocation6 + $0x480] ss:$16 sps:$4 sm:$0xff]   ;;  %v8493_v43 = vld [vmem:[#allocation6 + $0x4a4] ss:$16 sps:$4 sm:$0xff]  }
 0x5fa   :  { %2585 = vmatpush1.bf16.msra.mxu0 %v8397_v21  ;;  %2626 = vmatpush1.bf16.msra.mxu1 %v8400_v23  ;;  %v8496_v21 = vld [vmem:[#allocation6 + $0xac] ss:$16 sps:$4 sm:$0xff]   ;;  %v8491_v23 = vld [vmem:[#allocation6 + $0x4a0] ss:$16 sps:$4 sm:$0xff]  }
 0x5fb   :  { %2586 = vmatprep.subr.bf16.mxu0 %v8405_v25  ;;  %2627 = vmatprep.subr.bf16.mxu1 %v8408_v27  ;;  %v8494_v25 = vld [vmem:[#allocation6 + $0xa8] ss:$16 sps:$4 sm:$0xff]   ;;  %v8499_v27 = vld [vmem:[#allocation6 + $0x4c4] ss:$16 sps:$4 sm:$0xff]  }
 0x5fe   :  { %2587 = vmatpush1.bf16.msra.mxu0 %v8403_v30  ;;  %2628 = vmatpush1.bf16.msra.mxu1 %v8406_v31  ;;  %v8502_v30 = vld [vmem:[#allocation6 + $0xcc] ss:$16 sps:$4 sm:$0xff]   ;;  %v8497_v31 = vld [vmem:[#allocation6 + $0x4c0] ss:$16 sps:$4 sm:$0xff]  }
 0x5ff   :  { %2588 = vmatprep.subr.bf16.mxu0 %v8411_v32  ;;  %2629 = vmatprep.subr.bf16.mxu1 %v8414_v33  ;;  %v8500_v32 = vld [vmem:[#allocation6 + $0xc8] ss:$16 sps:$4 sm:$0xff]   ;;  %v8505_v33 = vld [vmem:[#allocation6 + $0x4e4] ss:$16 sps:$4 sm:$0xff]  }
 0x602   :  { %2589 = vmatpush1.bf16.msra.mxu0 %v8409_v35  ;;  %2630 = vmatpush1.bf16.msra.mxu1 %v8412_v36  ;;  %v8508_v35 = vld [vmem:[#allocation6 + $0xec] ss:$16 sps:$4 sm:$0xff]   ;;  %v8503_v36 = vld [vmem:[#allocation6 + $0x4e0] ss:$16 sps:$4 sm:$0xff]  }
 0x603   :  { %2590 = vmatprep.subr.bf16.mxu0 %v8417_v37  ;;  %2631 = vmatprep.subr.bf16.mxu1 %v8420_v38  ;;  %v8506_v37 = vld [vmem:[#allocation6 + $0xe8] ss:$16 sps:$4 sm:$0xff]   ;;  %v8512_v38 = vld [vmem:[#allocation6 + $0x20c] ss:$16 sps:$4 sm:$0xff]  }
 0x606   :  { %2591 = vmatpush1.bf16.msra.mxu0 %v8415_v39  ;;  %2632 = vmatpush1.bf16.msra.mxu1 %v8418_v40  ;;  %v8515_v39 = vld [vmem:[#allocation6 + $0x10c] ss:$16 sps:$4 sm:$0xff]   ;;  %v10598_v40 = vld [vmem:[%s10849_s19 + $0x10] ss:$0 sps:$4 sm:$0xff]  }
 0x607   :  { %2592 = vmatprep.subr.bf16.mxu0 %v8423_v41  ;;  %2633 = vmatprep.subr.bf16.mxu1 %v8426_v54  ;;  %v8510_v41 = vld [vmem:[#allocation6 + $0x208] ss:$16 sps:$4 sm:$0xff]  }
 0x608   :  { %v8513_v54 = vld [vmem:[#allocation6 + $0x108] ss:$16 sps:$4 sm:$0xff]  }
 0x60a   :  { %2593 = vmatpush1.bf16.msra.mxu0 %v8421_v55  ;;  %2634 = vmatpush1.bf16.msra.mxu1 %v8424_v57  ;;  %v8518_v55 = vld [vmem:[#allocation6 + $0x22c] ss:$16 sps:$4 sm:$0xff]  }
 0x60b   :  { %2594 = vmatprep.subr.bf16.mxu0 %v8429_v59  ;;  %2635 = vmatprep.subr.bf16.mxu1 %v8432_v62  ;;  %v8521_v57 = vld [vmem:[#allocation6 + $0x12c] ss:$16 sps:$4 sm:$0xff]   ;;  %v8516_v59 = vld [vmem:[#allocation6 + $0x228] ss:$16 sps:$4 sm:$0xff]  }
 0x60c   :  { %v8519_v62 = vld [vmem:[#allocation6 + $0x128] ss:$16 sps:$4 sm:$0xff]  }
 0x60e   :  { %2595 = vmatpush1.bf16.msra.mxu0 %v8427_v16  ;;  %2636 = vmatpush1.bf16.msra.mxu1 %v8430_v63  ;;  %v8524_v16 = vld [vmem:[#allocation6 + $0x24c] ss:$16 sps:$4 sm:$0xff]  }
 0x60f   :  { %2596 = vmatprep.subr.bf16.mxu0 %v8435_v18  ;;  %2637 = vmatprep.subr.bf16.mxu1 %v8438_v1  ;;  %v8527_v63 = vld [vmem:[#allocation6 + $0x14c] ss:$16 sps:$4 sm:$0xff]   ;;  %v8522_v18 = vld [vmem:[#allocation6 + $0x248] ss:$16 sps:$4 sm:$0xff]  }
 0x610   :  { %v8525_v1 = vld [vmem:[#allocation6 + $0x148] ss:$16 sps:$4 sm:$0xff]  }
 0x612   :  { %2597 = vmatpush1.bf16.msra.mxu0 %v8433_v3  ;;  %2638 = vmatpush1.bf16.msra.mxu1 %v8436_v46  ;;  %v8530_v3 = vld [vmem:[#allocation6 + $0x26c] ss:$16 sps:$4 sm:$0xff]  }
 0x613   :  { %2598 = vmatprep.subr.bf16.mxu0 %v8441_v47  ;;  %2639 = vmatprep.subr.bf16.mxu1 %v8444_v48  ;;  %v8533_v46 = vld [vmem:[#allocation6 + $0x16c] ss:$16 sps:$4 sm:$0xff]   ;;  %v8528_v47 = vld [vmem:[#allocation6 + $0x268] ss:$16 sps:$4 sm:$0xff]  }
 0x614   :  { %v8531_v48 = vld [vmem:[#allocation6 + $0x168] ss:$16 sps:$4 sm:$0xff]  }
 0x616   :  { %2599 = vmatpush1.bf16.msra.mxu0 %v8439_v50  ;;  %2640 = vmatpush1.bf16.msra.mxu1 %v8442_v51  ;;  %v8536_v50 = vld [vmem:[#allocation6 + $0x28c] ss:$16 sps:$4 sm:$0xff]  }
 0x617   :  { %2600 = vmatprep.subr.bf16.mxu0 %v8447_v52  ;;  %2641 = vmatprep.subr.bf16.mxu1 %v8450_v22  ;;  %v8539_v51 = vld [vmem:[#allocation6 + $0x18c] ss:$16 sps:$4 sm:$0xff]   ;;  %v8534_v52 = vld [vmem:[#allocation6 + $0x288] ss:$16 sps:$4 sm:$0xff]  }
 0x618   :  { %v8542_v22 = vld [vmem:[#allocation6 + $0x2ac] ss:$16 sps:$4 sm:$0xff]  }
 0x61a   :  { %2601 = vmatpush1.bf16.msra.mxu0 %v8445_v56  ;;  %2642 = vmatpush1.bf16.msra.mxu1 %v8448_v11  ;;  %v8545_v56 = vld [vmem:[#allocation6 + $0x1ac] ss:$16 sps:$4 sm:$0xff]   ;;  %v8540_v11 = vld [vmem:[#allocation6 + $0x2a8] ss:$16 sps:$4 sm:$0xff]  }
 0x61b   :  { %2602 = vmatprep.subr.bf16.mxu0 %v8453_v60  ;;  %2643 = vmatprep.subr.bf16.mxu1 %v8456_v17  ;;  %v8543_v60 = vld [vmem:[#allocation6 + $0x1a8] ss:$16 sps:$4 sm:$0xff]   ;;  %v8548_v17 = vld [vmem:[#allocation6 + $0x2cc] ss:$16 sps:$4 sm:$0xff]  }
 0x61e   :  { %2603 = vmatpush1.bf16.msra.mxu0 %v8451_v45  ;;  %2644 = vmatpush1.bf16.msra.mxu1 %v8454_v34  ;;  %v8551_v45 = vld [vmem:[#allocation6 + $0x1cc] ss:$16 sps:$4 sm:$0xff]   ;;  %v8546_v34 = vld [vmem:[#allocation6 + $0x2c8] ss:$16 sps:$4 sm:$0xff]  }
 0x61f   :  { %2654 = vmatprep.subr.bf16.mxu0 %v8461_v61  ;;  %2695 = vmatprep.subr.bf16.mxu1 %v8466_v2  ;;  %v8549_v61 = vld [vmem:[#allocation6 + $0x1c8] ss:$16 sps:$4 sm:$0xff]   ;;  %v8554_v2 = vld [vmem:[#allocation6 + $0x2ec] ss:$16 sps:$4 sm:$0xff]  }
 0x621   :  { %2605 = vmatmul.mubr.bf16.vlgmr.msra.gmra.mrb[36].mxu0 %v10585_v53  ;;  %2646 = vmatmul.mubr.bf16.vlgmr.msra.gmra.mrb[36].mxu1 %v10589_v5 }
 0x622   :  { %2655 = vmatpush1.bf16.msra.mxu0 %v8459_v26  ;;  %2696 = vmatpush1.bf16.msra.mxu1 %v8464_v8  ;;  %v8557_v26 = vld [vmem:[#allocation6 + $0x1ec] ss:$16 sps:$4 sm:$0xff]   ;;  %v8552_v8 = vld [vmem:[#allocation6 + $0x2e8] ss:$16 sps:$4 sm:$0xff]  }
 0x623   :  { %2656 = vmatprep.subr.bf16.mxu0 %v8469_v44  ;;  %2697 = vmatprep.subr.bf16.mxu1 %v8472_v10  ;;  %v8555_v44 = vld [vmem:[#allocation6 + $0x1e8] ss:$16 sps:$4 sm:$0xff]   ;;  %v8560_v10 = vld [vmem:[#allocation6 + $0x30c] ss:$16 sps:$4 sm:$0xff]  }
 0x624   :  { %2686 = vmatprep.mubr.bf16.mxu0 %v10846_v20  ;;  %2727 = vmatprep.mubr.bf16.mxu1 %v10575_v42  ;;  %v8488_v42 = vld [vmem:[#allocation6 + $0x88] ss:$16 sps:$4 sm:$0xff]  }
 0x626   :  { %2657 = vmatpush1.bf16.msra.mxu0 %v8467_v9  ;;  %2698 = vmatpush1.bf16.msra.mxu1 %v8470_v4  ;;  %v8563_v9 = vld [vmem:[#allocation6 + $0x40c] ss:$16 sps:$4 sm:$0xff]   ;;  %v8558_v4 = vld [vmem:[#allocation6 + $0x308] ss:$16 sps:$4 sm:$0xff]  }
 0x627   :  { %2658 = vmatprep.subr.bf16.mxu0 %v8475_v58  ;;  %2699 = vmatprep.subr.bf16.mxu1 %v8478_v28  ;;  %v8561_v58 = vld [vmem:[#allocation6 + $0x408] ss:$16 sps:$4 sm:$0xff]   ;;  %v8566_v28 = vld [vmem:[#allocation6 + $0x32c] ss:$16 sps:$4 sm:$0xff]  }
 0x62a   :  { %2659 = vmatpush1.bf16.msra.mxu0 %v8473_v12  ;;  %2700 = vmatpush1.bf16.msra.mxu1 %v8476_v6  ;;  %v8569_v12 = vld [vmem:[#allocation6 + $0x42c] ss:$16 sps:$4 sm:$0xff]   ;;  %v8564_v6 = vld [vmem:[#allocation6 + $0x328] ss:$16 sps:$4 sm:$0xff]  }
 0x62b   :  { %2660 = vmatprep.subr.bf16.mxu0 %v8481_v13  ;;  %2701 = vmatprep.subr.bf16.mxu1 %v8484_v24  ;;  %v8567_v13 = vld [vmem:[#allocation6 + $0x428] ss:$16 sps:$4 sm:$0xff]   ;;  %v8572_v24 = vld [vmem:[#allocation6 + $0x34c] ss:$16 sps:$4 sm:$0xff]  }
 0x62e   :  { %2661 = vmatpush1.bf16.msra.mxu0 %v8479_v29  ;;  %2702 = vmatpush1.bf16.msra.mxu1 %v8482_v14  ;;  %v8575_v29 = vld [vmem:[#allocation6 + $0x44c] ss:$16 sps:$4 sm:$0xff]   ;;  %v8570_v14 = vld [vmem:[#allocation6 + $0x348] ss:$16 sps:$4 sm:$0xff]  }
 0x62f   :  { %2662 = vmatprep.subr.bf16.mxu0 %v8487_v7  ;;  %2703 = vmatprep.subr.bf16.mxu1 %v8490_v15  ;;  %v8573_v7 = vld [vmem:[#allocation6 + $0x448] ss:$16 sps:$4 sm:$0xff]   ;;  %v8578_v15 = vld [vmem:[#allocation6 + $0x36c] ss:$16 sps:$4 sm:$0xff]  }
 0x632   :  { %2663 = vmatpush1.bf16.msra.mxu0 %v8485_v19  ;;  %2704 = vmatpush1.bf16.msra.mxu1 %v8488_v42  ;;  %v8581_v19 = vld [vmem:[#allocation6 + $0x46c] ss:$16 sps:$4 sm:$0xff]   ;;  %v8579_v42 = vld [vmem:[#allocation6 + $0x468] ss:$16 sps:$4 sm:$0xff]  }
 0x633   :  { %2664 = vmatprep.subr.bf16.mxu0 %v8493_v43  ;;  %2705 = vmatprep.subr.bf16.mxu1 %v8496_v21  ;;  %v8584_v43 = vld [vmem:[#allocation6 + $0x38c] ss:$16 sps:$4 sm:$0xff]  }
 0x634   :  { %v8587_v21 = vld [vmem:[#allocation6 + $0x48c] ss:$16 sps:$4 sm:$0xff]  }
 0x636   :  { %2665 = vmatpush1.bf16.msra.mxu0 %v8491_v23  ;;  %2706 = vmatpush1.bf16.msra.mxu1 %v8494_v25  ;;  %v8582_v23 = vld [vmem:[#allocation6 + $0x388] ss:$16 sps:$4 sm:$0xff]  }
 0x637   :  { %2666 = vmatprep.subr.bf16.mxu0 %v8499_v27  ;;  %2707 = vmatprep.subr.bf16.mxu1 %v8502_v30  ;;  %v8585_v25 = vld [vmem:[#allocation6 + $0x488] ss:$16 sps:$4 sm:$0xff]   ;;  %v8590_v27 = vld [vmem:[#allocation6 + $0x3ac] ss:$16 sps:$4 sm:$0xff]  }
 0x638   :  { %v8593_v30 = vld [vmem:[#allocation6 + $0x4ac] ss:$16 sps:$4 sm:$0xff]  }
 0x63a   :  { %2667 = vmatpush1.bf16.msra.mxu0 %v8497_v31  ;;  %2708 = vmatpush1.bf16.msra.mxu1 %v8500_v32  ;;  %v8588_v31 = vld [vmem:[#allocation6 + $0x3a8] ss:$16 sps:$4 sm:$0xff]  }
 0x63b   :  { %2668 = vmatprep.subr.bf16.mxu0 %v8505_v33  ;;  %2709 = vmatprep.subr.bf16.mxu1 %v8508_v35  ;;  %v8591_v32 = vld [vmem:[#allocation6 + $0x4a8] ss:$16 sps:$4 sm:$0xff]   ;;  %v8596_v33 = vld [vmem:[#allocation6 + $0x3cc] ss:$16 sps:$4 sm:$0xff]  }
 0x63c   :  { %v8599_v35 = vld [vmem:[#allocation6 + $0x4cc] ss:$16 sps:$4 sm:$0xff]  }
 0x63e   :  { %2669 = vmatpush1.bf16.msra.mxu0 %v8503_v36  ;;  %2710 = vmatpush1.bf16.msra.mxu1 %v8506_v37  ;;  %v8594_v36 = vld [vmem:[#allocation6 + $0x3c8] ss:$16 sps:$4 sm:$0xff]  }
 0x63f   :  { %2736 = vmatprep.subr.bf16.mxu0 %v8512_v38  ;;  %2711 = vmatprep.subr.bf16.mxu1 %v8515_v39  ;;  %v8597_v37 = vld [vmem:[#allocation6 + $0x4c8] ss:$16 sps:$4 sm:$0xff]   ;;  %v8602_v38 = vld [vmem:[#allocation6 + $0x3ec] ss:$16 sps:$4 sm:$0xff]  }
 0x640   :  { %v8605_v39 = vld [vmem:[#allocation6 + $0x4ec] ss:$16 sps:$4 sm:$0xff]  }
 0x641   :  { %2687 = vmatmul.mubr.bf16.vlgmr.msra.gmra.mrb[40].mxu0 %v10598_v40 }
 0x642   :  { %2737 = vmatpush1.bf16.msra.mxu0 %v8510_v41  ;;  %2712 = vmatpush1.bf16.msra.mxu1 %v8513_v54  ;;  %v8600_v41 = vld [vmem:[#allocation6 + $0x3e8] ss:$16 sps:$4 sm:$0xff]  }
 0x643   :  { %2738 = vmatprep.subr.bf16.mxu0 %v8518_v55  ;;  %2713 = vmatprep.subr.bf16.mxu1 %v8521_v57  ;;  %v8603_v54 = vld [vmem:[#allocation6 + $0x4e8] ss:$16 sps:$4 sm:$0xff]   ;;  %v8608_v55 = vld [vmem:[#allocation4 + $0x4] ss:$16 sps:$4 sm:$0xff]   ;;  %v8611_v57 = vld [vmem:[#allocation4 + $0xc] ss:$16 sps:$4 sm:$0xff]  }
 0x644   :  { %2768 = vmatprep.mubr.bf16.mxu0 %v10579_v0  ;;  %v8537_v0 = vld [vmem:[#allocation6 + $0x188] ss:$16 sps:$4 sm:$0xff]  }
 0x646   :  { %2739 = vmatpush1.bf16.msra.mxu0 %v8516_v59  ;;  %2714 = vmatpush1.bf16.msra.mxu1 %v8519_v62  ;;  %v8606_v59 = vld [vmem:[#allocation4] ss:$16 sps:$4 sm:$0xff]   ;;  %v8609_v62 = vld [vmem:[#allocation4 + $0x8] ss:$16 sps:$4 sm:$0xff]  }
 0x647   :  { %2740 = vmatprep.subr.bf16.mxu0 %v8524_v16  ;;  %2715 = vmatprep.subr.bf16.mxu1 %v8527_v63  ;;  %v8614_v16 = vld [vmem:[#allocation4 + $0x24] ss:$16 sps:$4 sm:$0xff]   ;;  %v8617_v63 = vld [vmem:[#allocation4 + $0x2c] ss:$16 sps:$4 sm:$0xff]  }
 0x64a   :  { %2741 = vmatpush1.bf16.msra.mxu0 %v8522_v18  ;;  %2716 = vmatpush1.bf16.msra.mxu1 %v8525_v1  ;;  %v8612_v18 = vld [vmem:[#allocation4 + $0x20] ss:$16 sps:$4 sm:$0xff]   ;;  %v8615_v1 = vld [vmem:[#allocation4 + $0x28] ss:$16 sps:$4 sm:$0xff]  }
 0x64b   :  { %2742 = vmatprep.subr.bf16.mxu0 %v8530_v3  ;;  %2717 = vmatprep.subr.bf16.mxu1 %v8533_v46  ;;  %v8620_v3 = vld [vmem:[#allocation4 + $0x44] ss:$16 sps:$4 sm:$0xff]   ;;  %v8623_v46 = vld [vmem:[#allocation4 + $0x4c] ss:$16 sps:$4 sm:$0xff]  }
 0x64e   :  { %2743 = vmatpush1.bf16.msra.mxu0 %v8528_v47  ;;  %2718 = vmatpush1.bf16.msra.mxu1 %v8531_v48  ;;  %v8618_v47 = vld [vmem:[#allocation4 + $0x40] ss:$16 sps:$4 sm:$0xff]   ;;  %v8621_v48 = vld [vmem:[#allocation4 + $0x48] ss:$16 sps:$4 sm:$0xff]  }
 0x64f   :  { %2744 = vmatprep.subr.bf16.mxu0 %v8536_v50  ;;  %2719 = vmatprep.subr.bf16.mxu1 %v8539_v51  ;;  %v8624_v50 = vld [vmem:[#allocation4 + $0x60] ss:$16 sps:$4 sm:$0xff]   ;;  %v8627_v51 = vld [vmem:[#allocation4 + $0x68] ss:$16 sps:$4 sm:$0xff]  }
 0x652   :  { %2745 = vmatpush1.bf16.msra.mxu0 %v8534_v52  ;;  %2720 = vmatpush1.bf16.msra.mxu1 %v8537_v0  ;;  %v8632_v52 = vld [vmem:[#allocation4 + $0x84] ss:$16 sps:$4 sm:$0xff]   ;;  %v8635_v0 = vld [vmem:[#allocation4 + $0x8c] ss:$16 sps:$4 sm:$0xff]  }
 0x653   :  { %2746 = vmatprep.subr.bf16.mxu0 %v8542_v22  ;;  %2721 = vmatprep.subr.bf16.mxu1 %v8545_v56  ;;  %v8630_v22 = vld [vmem:[#allocation4 + $0x80] ss:$16 sps:$4 sm:$0xff]   ;;  %v8638_v56 = vld [vmem:[#allocation4 + $0xa4] ss:$16 sps:$4 sm:$0xff]  }
 0x656   :  { %2747 = vmatpush1.bf16.msra.mxu0 %v8540_v11  ;;  %2722 = vmatpush1.bf16.msra.mxu1 %v8543_v60  ;;  %v8641_v11 = vld [vmem:[#allocation4 + $0xac] ss:$16 sps:$4 sm:$0xff]   ;;  %v8636_v60 = vld [vmem:[#allocation4 + $0xa0] ss:$16 sps:$4 sm:$0xff]  }
 0x657   :  { %2748 = vmatprep.subr.bf16.mxu0 %v8548_v17  ;;  %2723 = vmatprep.subr.bf16.mxu1 %v8551_v45  ;;  %v8639_v17 = vld [vmem:[#allocation4 + $0xa8] ss:$16 sps:$4 sm:$0xff]   ;;  %v8644_v45 = vld [vmem:[#allocation4 + $0xc4] ss:$16 sps:$4 sm:$0xff]  }
 0x65a   :  { %2749 = vmatpush1.bf16.msra.mxu0 %v8546_v34  ;;  %2724 = vmatpush1.bf16.msra.mxu1 %v8549_v61  ;;  %v8647_v34 = vld [vmem:[#allocation4 + $0xcc] ss:$16 sps:$4 sm:$0xff]   ;;  %v8642_v61 = vld [vmem:[#allocation4 + $0xc0] ss:$16 sps:$4 sm:$0xff]  }
 0x65b   :  { %2750 = vmatprep.subr.bf16.mxu0 %v8554_v2  ;;  %2725 = vmatprep.subr.bf16.mxu1 %v8557_v26  ;;  %v8645_v2 = vld [vmem:[#allocation4 + $0xc8] ss:$16 sps:$4 sm:$0xff]   ;;  %v8650_v26 = vld [vmem:[#allocation4 + $0xe4] ss:$16 sps:$4 sm:$0xff]  }
 0x65e   :  { %2751 = vmatpush1.bf16.msra.mxu0 %v8552_v8  ;;  %2726 = vmatpush1.bf16.msra.mxu1 %v8555_v44  ;;  %v8653_v8 = vld [vmem:[#allocation4 + $0xec] ss:$16 sps:$4 sm:$0xff]   ;;  %v8648_v44 = vld [vmem:[#allocation4 + $0xe0] ss:$16 sps:$4 sm:$0xff]  }
 0x65f   :  { %2752 = vmatprep.subr.bf16.mxu0 %v8560_v10  ;;  %2777 = vmatprep.subr.bf16.mxu1 %v8563_v9  ;;  %v8651_v10 = vld [vmem:[#allocation4 + $0xe8] ss:$16 sps:$4 sm:$0xff]  }
 0x661   :  { %2728 = vmatmul.mubr.bf16.vlgmr.msra.gmra.mrb[40].mxu1 %v10585_v53  ;;  %v8576_v53 = vld [vmem:[#allocation6 + $0x368] ss:$16 sps:$4 sm:$0xff]  }
 0x662   :  { %2753 = vmatpush1.bf16.msra.mxu0 %v8558_v4  ;;  %2778 = vmatpush1.bf16.msra.mxu1 %v8561_v58  ;;  %v10850_v58 = vld [vmem:[#allocation26_spill] sm:$0xff] }
 0x663   :  { %2754 = vmatprep.subr.bf16.mxu0 %v8566_v28  ;;  %2779 = vmatprep.subr.bf16.mxu1 %v8569_v12  ;;  %v10851_v12 = vld [vmem:[#allocation27_spill] sm:$0xff] }
 0x664   :  { %2809 = vmatprep.mubr.bf16.mxu1 %v10846_v20 }
 0x666   :  { %2755 = vmatpush1.bf16.msra.mxu0 %v8564_v6  ;;  %2780 = vmatpush1.bf16.msra.mxu1 %v8567_v13 }
 0x667   :  { %2756 = vmatprep.subr.bf16.mxu0 %v8572_v24  ;;  %2781 = vmatprep.subr.bf16.mxu1 %v8575_v29  ;;  %v10852_v29 = vld [vmem:[#allocation28_spill] sm:$0xff] }
 0x66a   :  { %2757 = vmatpush1.bf16.msra.mxu0 %v8570_v14  ;;  %2782 = vmatpush1.bf16.msra.mxu1 %v8573_v7  ;;  %v10853_v7 = vld [vmem:[#allocation29_spill] sm:$0xff] }
 0x66b   :  { %2758 = vmatprep.subr.bf16.mxu0 %v8578_v15  ;;  %2783 = vmatprep.subr.bf16.mxu1 %v8581_v19 }
 0x66e   :  { %2759 = vmatpush1.bf16.msra.mxu0 %v8576_v53  ;;  %2784 = vmatpush1.bf16.msra.mxu1 %v8579_v42 }
 0x66f   :  { %2760 = vmatprep.subr.bf16.mxu0 %v8584_v43  ;;  %2785 = vmatprep.subr.bf16.mxu1 %v8587_v21 }
 0x672   :  { %2761 = vmatpush1.bf16.msra.mxu0 %v8582_v23  ;;  %2786 = vmatpush1.bf16.msra.mxu1 %v8585_v25 }
 0x673   :  { %2762 = vmatprep.subr.bf16.mxu0 %v8590_v27  ;;  %2787 = vmatprep.subr.bf16.mxu1 %v8593_v30 }
 0x676   :  { %2763 = vmatpush1.bf16.msra.mxu0 %v8588_v31  ;;  %2788 = vmatpush1.bf16.msra.mxu1 %v8591_v32 }
 0x677   :  { %2764 = vmatprep.subr.bf16.mxu0 %v8596_v33  ;;  %2789 = vmatprep.subr.bf16.mxu1 %v8599_v35 }
 0x67a   :  { %2765 = vmatpush1.bf16.msra.mxu0 %v8594_v36  ;;  %2790 = vmatpush1.bf16.msra.mxu1 %v8597_v37 }
 0x67b   :  { %2766 = vmatprep.subr.bf16.mxu0 %v8602_v38  ;;  %2791 = vmatprep.subr.bf16.mxu1 %v8605_v39 }
 0x67e   :  { %2767 = vmatpush1.bf16.msra.mxu0 %v8600_v41  ;;  %2792 = vmatpush1.bf16.msra.mxu1 %v8603_v54 }
 0x67f   :  { %2978 = vmatprep.subr.bf16.mxu0 %v8608_v55  ;;  %3019 = vmatprep.subr.bf16.mxu1 %v8611_v57 }
 0x681   :  { %2769 = vmatmul.mubr.bf16.vlgmr.msra.gmra.mrb[44].mxu0 %v10589_v5  ;;  %2810 = vmatmul.mubr.bf16.vlgmr.msra.gmra.mrb[44].mxu1 %v10598_v40  ;;  %v8626_v5 = vld [vmem:[#allocation4 + $0x64] ss:$16 sps:$4 sm:$0xff]   ;;  %v8629_v40 = vld [vmem:[#allocation4 + $0x6c] ss:$16 sps:$4 sm:$0xff]  }
 0x682   :  { %2979 = vmatpush1.bf16.msra.mxu0 %v8606_v59  ;;  %3020 = vmatpush1.bf16.msra.mxu1 %v8609_v62  ;;  %v8656_v62 = vld [vmem:[#allocation7 + $0x4] ss:$16 sps:$4 sm:$0xff]  }
 0x683   :  { %2980 = vmatprep.subr.bf16.mxu0 %v8614_v16  ;;  %3021 = vmatprep.subr.bf16.mxu1 %v8617_v63  ;;  %v8654_v16 = vld [vmem:[#allocation7] ss:$16 sps:$4 sm:$0xff]  }
 0x684   :  { %3010 = vmatprep.mubr.bf16.mxu0 %v10846_v20  ;;  %3051 = vmatprep.mubr.bf16.mxu1 %v10846_v20  ;;  %v8633_v20 = vld [vmem:[#allocation4 + $0x88] ss:$16 sps:$4 sm:$0xff]   ;;  %v8657_v63 = vld [vmem:[#allocation7 + $0x200] ss:$16 sps:$4 sm:$0xff]  }
 0x686   :  { %2981 = vmatpush1.bf16.msra.mxu0 %v8612_v18  ;;  %3022 = vmatpush1.bf16.msra.mxu1 %v8615_v1  ;;  %v8659_v18 = vld [vmem:[#allocation7 + $0x204] ss:$16 sps:$4 sm:$0xff]  }
 0x687   :  { %2982 = vmatprep.subr.bf16.mxu0 %v8620_v3  ;;  %3023 = vmatprep.subr.bf16.mxu1 %v8623_v46  ;;  %v8662_v3 = vld [vmem:[#allocation7 + $0x24] ss:$16 sps:$4 sm:$0xff]  }
 0x688   :  { %v8665_v46 = vld [vmem:[#allocation7 + $0x224] ss:$16 sps:$4 sm:$0xff]  }
 0x68a   :  { %2983 = vmatpush1.bf16.msra.mxu0 %v8618_v47  ;;  %3024 = vmatpush1.bf16.msra.mxu1 %v8621_v48  ;;  %v8663_v47 = vld [vmem:[#allocation7 + $0x220] ss:$16 sps:$4 sm:$0xff]   ;;  %v8668_v48 = vld [vmem:[#allocation7 + $0x44] ss:$16 sps:$4 sm:$0xff]  }
 0x68b   :  { %2984 = vmatprep.subr.bf16.mxu0 %v8626_v5  ;;  %3025 = vmatprep.subr.bf16.mxu1 %v8629_v40  ;;  %v8671_v5 = vld [vmem:[#allocation7 + $0x244] ss:$16 sps:$4 sm:$0xff]   ;;  %v8666_v40 = vld [vmem:[#allocation7 + $0x40] ss:$16 sps:$4 sm:$0xff]  }
 0x68e   :  { %2985 = vmatpush1.bf16.msra.mxu0 %v8624_v50  ;;  %3026 = vmatpush1.bf16.msra.mxu1 %v8627_v51  ;;  %v8669_v50 = vld [vmem:[#allocation7 + $0x240] ss:$16 sps:$4 sm:$0xff]   ;;  %v8674_v51 = vld [vmem:[#allocation7 + $0x64] ss:$16 sps:$4 sm:$0xff]  }
 0x68f   :  { %2986 = vmatprep.subr.bf16.mxu0 %v8632_v52  ;;  %3027 = vmatprep.subr.bf16.mxu1 %v8635_v0  ;;  %v8677_v52 = vld [vmem:[#allocation7 + $0x264] ss:$16 sps:$4 sm:$0xff]   ;;  %v8672_v0 = vld [vmem:[#allocation7 + $0x60] ss:$16 sps:$4 sm:$0xff]  }
 0x692   :  { %2987 = vmatpush1.bf16.msra.mxu0 %v8630_v22  ;;  %3028 = vmatpush1.bf16.msra.mxu1 %v8633_v20  ;;  %v8675_v22 = vld [vmem:[#allocation7 + $0x260] ss:$16 sps:$4 sm:$0xff]   ;;  %v8680_v20 = vld [vmem:[#allocation7 + $0x84] ss:$16 sps:$4 sm:$0xff]  }
 0x693   :  { %2988 = vmatprep.subr.bf16.mxu0 %v8638_v56  ;;  %3029 = vmatprep.subr.bf16.mxu1 %v8641_v11  ;;  %v8683_v56 = vld [vmem:[#allocation7 + $0x284] ss:$16 sps:$4 sm:$0xff]   ;;  %v8678_v11 = vld [vmem:[#allocation7 + $0x80] ss:$16 sps:$4 sm:$0xff]  }
 0x696   :  { %2989 = vmatpush1.bf16.msra.mxu0 %v8636_v60  ;;  %3030 = vmatpush1.bf16.msra.mxu1 %v8639_v17  ;;  %v8681_v60 = vld [vmem:[#allocation7 + $0x280] ss:$16 sps:$4 sm:$0xff]   ;;  %v8686_v17 = vld [vmem:[#allocation7 + $0xa4] ss:$16 sps:$4 sm:$0xff]  }
 0x697   :  { %2990 = vmatprep.subr.bf16.mxu0 %v8644_v45  ;;  %3031 = vmatprep.subr.bf16.mxu1 %v8647_v34  ;;  %v8689_v45 = vld [vmem:[#allocation7 + $0x2a4] ss:$16 sps:$4 sm:$0xff]   ;;  %v8684_v34 = vld [vmem:[#allocation7 + $0xa0] ss:$16 sps:$4 sm:$0xff]  }
 0x69a   :  { %2991 = vmatpush1.bf16.msra.mxu0 %v8642_v61  ;;  %3032 = vmatpush1.bf16.msra.mxu1 %v8645_v2  ;;  %v8687_v61 = vld [vmem:[#allocation7 + $0x2a0] ss:$16 sps:$4 sm:$0xff]   ;;  %v8692_v2 = vld [vmem:[#allocation7 + $0xc4] ss:$16 sps:$4 sm:$0xff]  }
 0x69b   :  { %2992 = vmatprep.subr.bf16.mxu0 %v8650_v26  ;;  %3033 = vmatprep.subr.bf16.mxu1 %v8653_v8  ;;  %v8695_v26 = vld [vmem:[#allocation7 + $0x2c4] ss:$16 sps:$4 sm:$0xff]   ;;  %v8690_v8 = vld [vmem:[#allocation7 + $0xc0] ss:$16 sps:$4 sm:$0xff]  }
 0x69e   :  { %2993 = vmatpush1.bf16.msra.mxu0 %v8648_v44  ;;  %3034 = vmatpush1.bf16.msra.mxu1 %v8651_v10  ;;  %v8693_v44 = vld [vmem:[#allocation7 + $0x2c0] ss:$16 sps:$4 sm:$0xff]   ;;  %v8698_v10 = vld [vmem:[#allocation7 + $0xe4] ss:$16 sps:$4 sm:$0xff]  }
 0x69f   :  { %3880 = vmatprep.subr.bf16.mxu0 %v8656_v62  ;;  %3921 = vmatprep.subr.bf16.mxu1 %v8659_v18  ;;  %v8737_v62 = vld [vmem:[#allocation7 + $0x3a4] ss:$16 sps:$4 sm:$0xff]  }
 0x6b4   :  { %v1488_v9 = vpop.f32.mrb[32].mxu0  ;;  %v1529_v4 = vpop.f32.mrb[32].mxu1 }
 0x6b5   :  { %v1536_v28 = vadd.f32 %v1488_v9, %v10850_v58  ;;  %v1538_v6 = vadd.f32 %v1529_v4, %v10851_v12  ;;  %v1490_v13 = vpop.f32.mrb[33].mxu0  ;;  %v1531_v24 = vpop.f32.mrb[33].mxu1  ;;  %v8701_v9 = vld [vmem:[#allocation7 + $0x2e4] ss:$16 sps:$4 sm:$0xff]  }
 0x6b6   :  { %v1537_v14 = vadd.f32 %v1490_v13, %v10852_v29  ;;  %v1539_v15 = vadd.f32 %v1531_v24, %v10853_v7  ;;  %v1492_v19 = vpop.f32.mrb[34].mxu0  ;;  %v1533_v53 = vpop.f32.mrb[34].mxu1  ;;  %v8696_v13 = vld [vmem:[#allocation7 + $0xe0] ss:$16 sps:$4 sm:$0xff]  }
 0x6b7   :  { %v1540_v42 = vmul.f32 0.5, %v1536_v28  ;;  %v1493_v43 = vpop.f32.mrb[35].mxu0  ;;  %v1534_v21 = vpop.f32.mrb[35].mxu1  ;;  %v8699_v24 = vld [vmem:[#allocation7 + $0x2e0] ss:$16 sps:$4 sm:$0xff]  }
 0x6b8   :  { %v1544_v23 = vmul.f32 0.5, %v1537_v14  ;;  %v1549_v25 = vmul.f32 0.5, %v1539_v15  ;;  %v8704_v15 = vld [vmem:[#allocation7 + $0x104] ss:$16 sps:$4 sm:$0xff]   ;;  %v8702_v43 = vld [vmem:[#allocation7 + $0x100] ss:$16 sps:$4 sm:$0xff]  }
 0x6b9   :  { %9504 = vtanh.f32 %v1540_v42  ;;  %v8707_v19 = vld [vmem:[#allocation7 + $0x304] ss:$16 sps:$4 sm:$0xff]   ;;  %v8705_v21 = vld [vmem:[#allocation7 + $0x300] ss:$16 sps:$4 sm:$0xff]  }
 0x6ba   :  { %9506 = vtanh.f32 %v1544_v23  ;;  %v8710_v23 = vld [vmem:[#allocation7 + $0x124] ss:$16 sps:$4 sm:$0xff]  }
 0x6bb   :  { %9508 = vtanh.f32 %v1538_v6 }
 0x6bc   :  { %9510 = vtanh.f32 %v1549_v25  ;;  %v8713_v25 = vld [vmem:[#allocation7 + $0x324] ss:$16 sps:$4 sm:$0xff]  }
 0x6c3   :  { %v9505_v27 = vpop.eup %9504 }
 0x6c4   :  { %v9507_v30 = vpop.eup %9506  ;;  %v1542_v31 = vmul.f32 0.5, %v9505_v27  ;;  %v8708_v27 = vld [vmem:[#allocation7 + $0x120] ss:$16 sps:$4 sm:$0xff]  }
 0x6c5   :  { %v1546_v32 = vmul.f32 0.5, %v9507_v30  ;;  %v9509_v35 = vpop.eup %9508  ;;  %v8711_v30 = vld [vmem:[#allocation7 + $0x320] ss:$16 sps:$4 sm:$0xff]  }
 0x6c6   :  { %v1543_v33 = vadd.f32 0.5, %v1542_v31  ;;  %v9511_v41 = vpop.eup %9510  ;;  %v8716_v31 = vld [vmem:[#allocation7 + $0x144] ss:$16 sps:$4 sm:$0xff]  }
 0x6c7   :  { %v1547_v36 = vadd.f32 0.5, %v1546_v32  ;;  %v1551_v54 = vmul.f32 0.5, %v9511_v41  ;;  %v8719_v32 = vld [vmem:[#allocation7 + $0x344] ss:$16 sps:$4 sm:$0xff]  }
 0x6c8   :  { %v1554_v37 = vmul.f32 %v9509_v35, %v1543_v33  ;;  %v8714_v33 = vld [vmem:[#allocation7 + $0x140] ss:$16 sps:$4 sm:$0xff]   ;;  %v8728_v41 = vld [vmem:[#allocation7 + $0x184] ss:$16 sps:$4 sm:$0xff]  }
 0x6c9   :  { %v1553_v38 = vmul.f32 %v1547_v36, %v10560_v49  ;;  %v1552_v55 = vadd.f32 0.5, %v1551_v54  ;;  %v8660_v49 = vld [vmem:[#allocation7 + $0x20] ss:$16 sps:$4 sm:$0xff]   ;;  %v8722_v36 = vld [vmem:[#allocation7 + $0x164] ss:$16 sps:$4 sm:$0xff]  }
 0x6ca   :  { %v8717_v35 = vld [vmem:[#allocation7 + $0x340] ss:$16 sps:$4 sm:$0xff]   ;;  %v8731_v54 = vld [vmem:[#allocation7 + $0x384] ss:$16 sps:$4 sm:$0xff]  }
 0x6cb   :  { %v1555_v39 = vadd.f32 %v1554_v37, %v1553_v38  ;;  %v8725_v37 = vld [vmem:[#allocation7 + $0x364] ss:$16 sps:$4 sm:$0xff]   ;;  %v8720_v38 = vld [vmem:[#allocation7 + $0x160] ss:$16 sps:$4 sm:$0xff]  }
 0x6cd   :  { %9512 = vtanh.f32 %v1555_v39  ;;  %v8723_v39 = vld [vmem:[#allocation7 + $0x360] ss:$16 sps:$4 sm:$0xff]  }
 0x6d7   :  { %v9513_v57 = vpop.eup %9512 }
 0x6d8   :  { %v1557_v59 = vmul.f32 %v9513_v57, %v1552_v55  ;;  %v8726_v55 = vld [vmem:[#allocation7 + $0x180] ss:$16 sps:$4 sm:$0xff]  }
 0x6d9   :  { %v8729_v57 = vld [vmem:[#allocation7 + $0x380] ss:$16 sps:$4 sm:$0xff]  }
 0x6da   :  { %v1558_v1 = vpack.c.bf16 %v1557_v59, %v1557_v59  ;;  %v8734_v59 = vld [vmem:[#allocation7 + $0x1a4] ss:$16 sps:$4 sm:$0xff]  }
 0x6dc   :  { %3011 = vmatmul.mubr.bf16.vlgmr.msra.gmra.mrb[48].mxu0 %v1558_v1  ;;  %3052 = vmatmul.mubr.bf16.vlgmr.msra.gmra.mrb[48].mxu1 %v1558_v1 }
 0x6dd   :  { %3881 = vmatpush1.bf16.msra.mxu0 %v8654_v16  ;;  %3922 = vmatpush1.bf16.msra.mxu1 %v8657_v63  ;;  %v8732_v16 = vld [vmem:[#allocation7 + $0x1a0] ss:$16 sps:$4 sm:$0xff]  }
 0x6de   :  { %3882 = vmatprep.subr.bf16.mxu0 %v8662_v3  ;;  %3923 = vmatprep.subr.bf16.mxu1 %v8665_v46  ;;  %v8735_v63 = vld [vmem:[#allocation7 + $0x3a0] ss:$16 sps:$4 sm:$0xff]  }
 0x6e1   :  { %3883 = vmatpush1.bf16.msra.mxu0 %v8660_v49  ;;  %3924 = vmatpush1.bf16.msra.mxu1 %v8663_v47 }
 0x6e2   :  { %3884 = vmatprep.subr.bf16.mxu0 %v8668_v48  ;;  %3925 = vmatprep.subr.bf16.mxu1 %v8671_v5  ;;  %v8740_v48 = vld [vmem:[#allocation7 + $0x1c4] ss:$16 sps:$4 sm:$0xff]  }
 0x6e3   :  { %v8743_v5 = vld [vmem:[#allocation7 + $0x3c4] ss:$16 sps:$4 sm:$0xff]  }
 0x6e5   :  { %3885 = vmatpush1.bf16.msra.mxu0 %v8666_v40  ;;  %3926 = vmatpush1.bf16.msra.mxu1 %v8669_v50  ;;  %v8738_v40 = vld [vmem:[#allocation7 + $0x1c0] ss:$16 sps:$4 sm:$0xff]  }
 0x6e6   :  { %3886 = vmatprep.subr.bf16.mxu0 %v8674_v51  ;;  %3927 = vmatprep.subr.bf16.mxu1 %v8677_v52  ;;  %v8741_v50 = vld [vmem:[#allocation7 + $0x3c0] ss:$16 sps:$4 sm:$0xff]   ;;  %v8746_v51 = vld [vmem:[#allocation7 + $0x1e4] ss:$16 sps:$4 sm:$0xff]  }
 0x6e7   :  { %v8749_v52 = vld [vmem:[#allocation7 + $0x3e4] ss:$16 sps:$4 sm:$0xff]  }
 0x6e9   :  { %3887 = vmatpush1.bf16.msra.mxu0 %v8672_v0  ;;  %3928 = vmatpush1.bf16.msra.mxu1 %v8675_v22  ;;  %v8744_v0 = vld [vmem:[#allocation7 + $0x1e0] ss:$16 sps:$4 sm:$0xff]  }
 0x6ea   :  { %3888 = vmatprep.subr.bf16.mxu0 %v8680_v20  ;;  %3929 = vmatprep.subr.bf16.mxu1 %v8683_v56  ;;  %v8747_v22 = vld [vmem:[#allocation7 + $0x3e0] ss:$16 sps:$4 sm:$0xff]  }
 0x6ed   :  { %3889 = vmatpush1.bf16.msra.mxu0 %v8678_v11  ;;  %3930 = vmatpush1.bf16.msra.mxu1 %v8681_v60  ;;  %v8752_v60 = vld [vmem:[#allocation7 + $0xc] ss:$16 sps:$4 sm:$0xff]  }
 0x6ee   :  { %3890 = vmatprep.subr.bf16.mxu0 %v8686_v17  ;;  %3931 = vmatprep.subr.bf16.mxu1 %v8689_v45  ;;  %v8755_v17 = vld [vmem:[#allocation7 + $0x20c] ss:$16 sps:$4 sm:$0xff]  }
 0x6f1   :  { %3891 = vmatpush1.bf16.msra.mxu0 %v8684_v34  ;;  %3932 = vmatpush1.bf16.msra.mxu1 %v8687_v61 }
 0x6f2   :  { %3892 = vmatprep.subr.bf16.mxu0 %v8692_v2  ;;  %3933 = vmatprep.subr.bf16.mxu1 %v8695_v26 }
 0x6f4   :  { %v2606_v4 = vpop.f32.mrb[36].mxu0  ;;  %v2647_v58 = vpop.f32.mrb[36].mxu1 }
 0x6f5   :  { %v2608_v28 = vpop.f32.mrb[37].mxu0  ;;  %v10613_v12 = vadd.f32 %v2647_v58, %v2606_v4  ;;  %v2649_v6 = vpop.f32.mrb[37].mxu1  ;;  %3893 = vmatpush1.bf16.msra.mxu0 %v8690_v8  ;;  %3934 = vmatpush1.bf16.msra.mxu1 %v8693_v44 }
 0x6f6   :  { %v2610_v29 = vpop.f32.mrb[38].mxu0  ;;  %v2650_v14 = vadd.f32 %v2649_v6, %v2608_v28  ;;  %v2651_v7 = vpop.f32.mrb[38].mxu1  ;;  %3894 = vmatprep.subr.bf16.mxu0 %v8698_v10  ;;  %3935 = vmatprep.subr.bf16.mxu1 %v8701_v9  ;;  %v3060_v6 = vld [vmem:[%s10806_s7] sm:$0xf] }
 0x6f7   :  { %v2611_v53 = vpop.f32.mrb[39].mxu0  ;;  %v2652_v42 = vpop.f32.mrb[39].mxu1  ;;  %v10855_v29 = vld [vmem:[#allocation21_spill] sm:$0xff] }
 0x6f8   :  { %v10857_v42 = vld [vmem:[#allocation22_spill] sm:$0xff] }
 0x6f9   :  { %3895 = vmatpush1.bf16.msra.mxu0 %v8696_v13  ;;  %3936 = vmatpush1.bf16.msra.mxu1 %v8699_v24  ;;  %v10854_v13 = vld [vmem:[#allocation20_spill] sm:$0xff] }
 0x6fa   :  { %3896 = vmatprep.subr.bf16.mxu0 %v8704_v15  ;;  %3937 = vmatprep.subr.bf16.mxu1 %v8707_v19  ;;  %v3065_v24 = vrot.slane %v3060_v6, %v10854_v13  ;;  %v10856_v19 = vld [vmem:[#allocation23_spill] sm:$0xff] }
 0x6fb   :  { %v3069_v53 = vrot.slane %v3060_v6, %v10856_v19 }
 0x6fd   :  { %3897 = vmatpush1.bf16.msra.mxu0 %v8702_v43  ;;  %3938 = vmatpush1.bf16.msra.mxu1 %v8705_v21  ;;  %v3077_v43 = vrot.slane %v3060_v6, %v10857_v42 }
 0x6fe   :  { %3898 = vmatprep.subr.bf16.mxu0 %v8710_v23  ;;  %3939 = vmatprep.subr.bf16.mxu1 %v8713_v25 }
 0x701   :  { %3899 = vmatpush1.bf16.msra.mxu0 %v8708_v27  ;;  %3940 = vmatpush1.bf16.msra.mxu1 %v8711_v30 }
 0x702   :  { %3900 = vmatprep.subr.bf16.mxu0 %v8716_v31  ;;  %3941 = vmatprep.subr.bf16.mxu1 %v8719_v32 }
 0x705   :  { %3901 = vmatpush1.bf16.msra.mxu0 %v8714_v33  ;;  %3942 = vmatpush1.bf16.msra.mxu1 %v8717_v35 }
 0x706   :  { %3902 = vmatprep.subr.bf16.mxu0 %v8722_v36  ;;  %3943 = vmatprep.subr.bf16.mxu1 %v8725_v37 }
 0x709   :  { %3903 = vmatpush1.bf16.msra.mxu0 %v8720_v38  ;;  %3944 = vmatpush1.bf16.msra.mxu1 %v8723_v39 }
 0x70a   :  { %3904 = vmatprep.subr.bf16.mxu0 %v8728_v41  ;;  %3945 = vmatprep.subr.bf16.mxu1 %v8731_v54 }
 0x70d   :  { %3905 = vmatpush1.bf16.msra.mxu0 %v8726_v55  ;;  %3946 = vmatpush1.bf16.msra.mxu1 %v8729_v57  ;;  %v8750_v57 = vld [vmem:[#allocation7 + $0x8] ss:$16 sps:$4 sm:$0xff]  }
 0x70e   :  { %3906 = vmatprep.subr.bf16.mxu0 %v8734_v59  ;;  %3947 = vmatprep.subr.bf16.mxu1 %v8737_v62  ;;  %v8753_v59 = vld [vmem:[#allocation7 + $0x208] ss:$16 sps:$4 sm:$0xff]  }
 0x711   :  { %3907 = vmatpush1.bf16.msra.mxu0 %v8732_v16  ;;  %3948 = vmatpush1.bf16.msra.mxu1 %v8735_v63  ;;  %v8758_v63 = vld [vmem:[#allocation7 + $0x2c] ss:$16 sps:$4 sm:$0xff]  }
 0x712   :  { %3908 = vmatprep.subr.bf16.mxu0 %v8740_v48  ;;  %3949 = vmatprep.subr.bf16.mxu1 %v8743_v5  ;;  %v8765_v48 = vld [vmem:[#allocation7 + $0x248] ss:$16 sps:$4 sm:$0xff]   ;;  %v8770_v5 = vld [vmem:[#allocation7 + $0x6c] ss:$16 sps:$4 sm:$0xff]  }
 0x714   :  { %v2688_v18 = vpop.f32.mrb[40].mxu0 }
 0x715   :  { %v2689_v1 = vadd.f32 %v2688_v18, %v10613_v12  ;;  %v2690_v3 = vpop.f32.mrb[41].mxu0  ;;  %3909 = vmatpush1.bf16.msra.mxu0 %v8738_v40  ;;  %3950 = vmatpush1.bf16.msra.mxu1 %v8741_v50  ;;  %v8761_v18 = vld [vmem:[#allocation7 + $0x22c] ss:$16 sps:$4 sm:$0xff]   ;;  %v8768_v50 = vld [vmem:[#allocation7 + $0x68] ss:$16 sps:$4 sm:$0xff]  }
 0x716   :  { %v2691_v46 = vadd.f32 %v2690_v3, %v2650_v14  ;;  %v2692_v49 = vpop.f32.mrb[42].mxu0  ;;  %3910 = vmatprep.subr.bf16.mxu0 %v8746_v51  ;;  %3951 = vmatprep.subr.bf16.mxu1 %v8749_v52  ;;  %v3073_v14 = vrot.slane %v3060_v6, %v10855_v29  ;;  %v8759_v3 = vld [vmem:[#allocation7 + $0x228] ss:$16 sps:$4 sm:$0xff]   ;;  %v8773_v40 = vld [vmem:[#allocation7 + $0x26c] ss:$16 sps:$4 sm:$0xff]  }
 0x717   :  { %v2693_v47 = vpop.f32.mrb[43].mxu0  ;;  %v8767_v49 = vld [vmem:[#allocation7 + $0x24c] ss:$16 sps:$4 sm:$0xff]   ;;  %v8771_v51 = vld [vmem:[#allocation7 + $0x268] ss:$16 sps:$4 sm:$0xff]  }
 0x718   :  { %v8762_v47 = vld [vmem:[#allocation7 + $0x48] ss:$16 sps:$4 sm:$0xff]   ;;  %v8776_v52 = vld [vmem:[#allocation7 + $0x8c] ss:$16 sps:$4 sm:$0xff]  }
 0x719   :  { %3911 = vmatpush1.bf16.msra.mxu0 %v8744_v0  ;;  %3952 = vmatpush1.bf16.msra.mxu1 %v8747_v22  ;;  %v8779_v0 = vld [vmem:[#allocation7 + $0x28c] ss:$16 sps:$4 sm:$0xff]   ;;  %v8774_v22 = vld [vmem:[#allocation7 + $0x88] ss:$16 sps:$4 sm:$0xff]  }
 0x71a   :  { %3962 = vmatprep.subr.bf16.mxu0 %v8752_v60  ;;  %4003 = vmatprep.subr.bf16.mxu1 %v8755_v17  ;;  %v8780_v60 = vld [vmem:[#allocation7 + $0xa8] ss:$16 sps:$4 sm:$0xff]   ;;  %v8809_v6 = vld [vmem:[#allocation7 + $0x32c] ss:$16 sps:$4 sm:$0xff]  }
 0x71b   :  { %v8783_v17 = vld [vmem:[#allocation7 + $0x2a8] ss:$16 sps:$4 sm:$0xff]  }
 0x734   :  { %v2729_v20 = vpop.f32.mrb[40].mxu1 }
 0x735   :  { %v2731_v56 = vpop.f32.mrb[41].mxu1 }
 0x736   :  { %v2733_v11 = vpop.f32.mrb[42].mxu1 }
 0x737   :  { %v2734_v45 = vpop.f32.mrb[43].mxu1  ;;  %v8785_v11 = vld [vmem:[#allocation7 + $0x2ac] ss:$16 sps:$4 sm:$0xff]  }
 0x738   :  { %v8788_v45 = vld [vmem:[#allocation7 + $0xcc] ss:$16 sps:$4 sm:$0xff]  }
 0x754   :  { %v2770_v34 = vpop.f32.mrb[44].mxu0  ;;  %v2811_v61 = vpop.f32.mrb[44].mxu1 }
 0x755   :  { %v2771_v2 = vadd.f32 %v2770_v34, %v2729_v20  ;;  %v2772_v26 = vpop.f32.mrb[45].mxu0  ;;  %v2813_v8 = vpop.f32.mrb[45].mxu1  ;;  %v8777_v20 = vld [vmem:[#allocation7 + $0x288] ss:$16 sps:$4 sm:$0xff]   ;;  %v8791_v34 = vld [vmem:[#allocation7 + $0x2cc] ss:$16 sps:$4 sm:$0xff]  }
 0x756   :  { %v2773_v44 = vadd.f32 %v2772_v26, %v2731_v56  ;;  %v2774_v10 = vpop.f32.mrb[46].mxu0  ;;  %v2815_v9 = vpop.f32.mrb[46].mxu1  ;;  %v8782_v56 = vld [vmem:[#allocation7 + $0xac] ss:$16 sps:$4 sm:$0xff]  }
 0x757   :  { %v2812_v4 = vadd.f32 %v2811_v61, %v2771_v2  ;;  %v2775_v58 = vpop.f32.mrb[47].mxu0  ;;  %v2816_v28 = vpop.f32.mrb[47].mxu1  ;;  %v8786_v61 = vld [vmem:[#allocation7 + $0xc8] ss:$16 sps:$4 sm:$0xff]   ;;  %v8794_v26 = vld [vmem:[#allocation7 + $0xec] ss:$16 sps:$4 sm:$0xff]  }
 0x758   :  { %v2814_v12 = vadd.f32 %v2813_v8, %v2773_v44  ;;  %v8789_v2 = vld [vmem:[#allocation7 + $0x2c8] ss:$16 sps:$4 sm:$0xff]   ;;  %v8797_v8 = vld [vmem:[#allocation7 + $0x2ec] ss:$16 sps:$4 sm:$0xff]  }
 0x759   :  { %v8792_v44 = vld [vmem:[#allocation7 + $0xe8] ss:$16 sps:$4 sm:$0xff]   ;;  %v8800_v9 = vld [vmem:[#allocation7 + $0x10c] ss:$16 sps:$4 sm:$0xff]  }
 0x75a   :  { %v8795_v10 = vld [vmem:[#allocation7 + $0x2e8] ss:$16 sps:$4 sm:$0xff]  }
 0x75b   :  { %v8798_v58 = vld [vmem:[#allocation7 + $0x108] ss:$16 sps:$4 sm:$0xff]  }
 0x75c   :  { %v8801_v28 = vld [vmem:[#allocation7 + $0x308] ss:$16 sps:$4 sm:$0xff]  }
 0x7af   :  { %v3012_v7 = vpop.f32.mrb[48].mxu0  ;;  %v3053_v15 = vpop.f32.mrb[48].mxu1 }
 0x7b0   :  { %v3013_v21 = vadd.f32 %v3012_v7, %v2689_v1  ;;  %v3054_v23 = vadd.f32 %v3053_v15, %v2812_v4  ;;  %v3014_v25 = vpop.f32.mrb[49].mxu0  ;;  %v3055_v27 = vpop.f32.mrb[49].mxu1  ;;  %v8756_v1 = vld [vmem:[#allocation7 + $0x28] ss:$16 sps:$4 sm:$0xff]   ;;  %v8803_v4 = vld [vmem:[#allocation7 + $0x30c] ss:$16 sps:$4 sm:$0xff]  }
 0x7b1   :  { %v3015_v30 = vadd.f32 %v3014_v25, %v2691_v46  ;;  %v3056_v31 = vadd.f32 %v3055_v27, %v2814_v12  ;;  %v3016_v32 = vpop.f32.mrb[50].mxu0  ;;  %v3057_v33 = vpop.f32.mrb[50].mxu1  ;;  %v8764_v46 = vld [vmem:[#allocation7 + $0x4c] ss:$16 sps:$4 sm:$0xff]   ;;  %v8816_v25 = vld [vmem:[#allocation7 + $0x168] ss:$16 sps:$4 sm:$0xff]  }
 0x7b2   :  { %v10623_v35 = vadd.f32 %v3065_v24, %v3013_v21  ;;  %v10625_v36 = vadd.f32 %v3073_v14, %v3054_v23  ;;  %v3017_v37 = vpop.f32.mrb[51].mxu0  ;;  %v3058_v38 = vpop.f32.mrb[51].mxu1  ;;  %v8806_v12 = vld [vmem:[#allocation7 + $0x12c] ss:$16 sps:$4 sm:$0xff]   ;;  %v8804_v24 = vld [vmem:[#allocation7 + $0x128] ss:$16 sps:$4 sm:$0xff]  }
 0x7b3   :  { %v10627_v39 = vadd.f32 %v3069_v53, %v3015_v30  ;;  %v10629_v41 = vadd.f32 %v3077_v43, %v3056_v31  ;;  %v8807_v14 = vld [vmem:[#allocation7 + $0x328] ss:$16 sps:$4 sm:$0xff]   ;;  %v8812_v7 = vld [vmem:[#allocation7 + $0x14c] ss:$16 sps:$4 sm:$0xff]  }
 0x7b4   :  { %v10637_v62 = vpack.c.bf16 %v10623_v35, %v10623_v35  ;;  %v10641_v16 = vpack.c.bf16 %v10625_v36, %v10625_v36  ;;  %v8815_v15 = vld [vmem:[#allocation7 + $0x34c] ss:$16 sps:$4 sm:$0xff]   ;;  %v8810_v53 = vld [vmem:[#allocation7 + $0x148] ss:$16 sps:$4 sm:$0xff]  }
 0x7b5   :  { %v3087_v54 = vpack.c.bf16 %v10627_v39, %v10627_v39  ;;  %v3089_v55 = vpack.c.bf16 %v10629_v41, %v10629_v41  ;;  %v8813_v43 = vld [vmem:[#allocation7 + $0x348] ss:$16 sps:$4 sm:$0xff]   ;;  %v8818_v21 = vld [vmem:[#allocation7 + $0x16c] ss:$16 sps:$4 sm:$0xff]  }
 0x7b6   :  { %v8821_v23 = vld [vmem:[#allocation7 + $0x36c] ss:$16 sps:$4 sm:$0xff]   ;;  %v8819_v27 = vld [vmem:[#allocation7 + $0x368] ss:$16 sps:$4 sm:$0xff]  }
 0x7b7   :  { %3912 = vmatprep.mubr.bf16.mxu0 %v3087_v54  ;;  %3953 = vmatprep.mubr.bf16.mxu1 %v3089_v55  ;;  %v8824_v30 = vld [vmem:[#allocation7 + $0x18c] ss:$16 sps:$4 sm:$0xff]   ;;  %v8822_v32 = vld [vmem:[#allocation7 + $0x188] ss:$16 sps:$4 sm:$0xff]  }
 0x7b8   :  { %3913 = vmatmul.mubr.bf16.vlgmr.msra.gmra.mrb[52].mxu0 %v10637_v62  ;;  %3954 = vmatmul.mubr.bf16.vlgmr.msra.gmra.mrb[52].mxu1 %v10641_v16  ;;  %v8827_v31 = vld [vmem:[#allocation7 + $0x38c] ss:$16 sps:$4 sm:$0xff]   ;;  %v8825_v33 = vld [vmem:[#allocation7 + $0x388] ss:$16 sps:$4 sm:$0xff]  }
 0x7b9   :  { %3963 = vmatpush1.bf16.msra.mxu0 %v8750_v57  ;;  %4004 = vmatpush1.bf16.msra.mxu1 %v8753_v59  ;;  %v8830_v37 = vld [vmem:[#allocation7 + $0x1ac] ss:$16 sps:$4 sm:$0xff]  }
 0x7ba   :  { %3994 = vmatprep.mubr.bf16.mxu0 %v3087_v54  ;;  %4035 = vmatprep.mubr.bf16.mxu1 %v3089_v55  ;;  %v8833_v38 = vld [vmem:[#allocation7 + $0x3ac] ss:$16 sps:$4 sm:$0xff]   ;;  %v8828_v54 = vld [vmem:[#allocation7 + $0x1a8] ss:$16 sps:$4 sm:$0xff]  }
 0x7bb   :  { %3964 = vmatprep.subr.bf16.mxu0 %v8758_v63  ;;  %4005 = vmatprep.subr.bf16.mxu1 %v8761_v18  ;;  %v8831_v55 = vld [vmem:[#allocation7 + $0x3a8] ss:$16 sps:$4 sm:$0xff]   ;;  %v8836_v57 = vld [vmem:[#allocation7 + $0x1cc] ss:$16 sps:$4 sm:$0xff]  }
 0x7bc   :  { %v8839_v59 = vld [vmem:[#allocation7 + $0x3cc] ss:$16 sps:$4 sm:$0xff]   ;;  %v8834_v63 = vld [vmem:[#allocation7 + $0x1c8] ss:$16 sps:$4 sm:$0xff]  }
 0x7bd   :  { %3965 = vmatpush1.bf16.msra.mxu0 %v8756_v1  ;;  %4006 = vmatpush1.bf16.msra.mxu1 %v8759_v3  ;;  %v8837_v18 = vld [vmem:[#allocation7 + $0x3c8] ss:$16 sps:$4 sm:$0xff]   ;;  %v8842_v1 = vld [vmem:[#allocation7 + $0x1ec] ss:$16 sps:$4 sm:$0xff]  }
 0x7be   :  { %3966 = vmatprep.subr.bf16.mxu0 %v8764_v46  ;;  %4007 = vmatprep.subr.bf16.mxu1 %v8767_v49  ;;  %v8845_v3 = vld [vmem:[#allocation7 + $0x3ec] ss:$16 sps:$4 sm:$0xff]   ;;  %v8840_v46 = vld [vmem:[#allocation7 + $0x1e8] ss:$16 sps:$4 sm:$0xff]  }
 0x7bf   :  { %v8843_v49 = vld [vmem:[#allocation7 + $0x3e8] ss:$16 sps:$4 sm:$0xff]  }
 0x7c1   :  { %3967 = vmatpush1.bf16.msra.mxu0 %v8762_v47  ;;  %4008 = vmatpush1.bf16.msra.mxu1 %v8765_v48  ;;  %v8848_v47 = vld [vmem:[#allocation9 + $0x4] ss:$16 sps:$4 sm:$0xff]   ;;  %v8846_v48 = vld [vmem:[#allocation9] ss:$16 sps:$4 sm:$0xff]  }
 0x7c2   :  { %3968 = vmatprep.subr.bf16.mxu0 %v8770_v5  ;;  %4009 = vmatprep.subr.bf16.mxu1 %v8773_v40  ;;  %v8851_v5 = vld [vmem:[#allocation9 + $0x24] ss:$16 sps:$4 sm:$0xff]   ;;  %v8849_v40 = vld [vmem:[#allocation9 + $0x20] ss:$16 sps:$4 sm:$0xff]  }
 0x7c5   :  { %3969 = vmatpush1.bf16.msra.mxu0 %v8768_v50  ;;  %4010 = vmatpush1.bf16.msra.mxu1 %v8771_v51  ;;  %v8854_v50 = vld [vmem:[#allocation9 + $0x44] ss:$16 sps:$4 sm:$0xff]   ;;  %v8852_v51 = vld [vmem:[#allocation9 + $0x40] ss:$16 sps:$4 sm:$0xff]  }
 0x7c6   :  { %3970 = vmatprep.subr.bf16.mxu0 %v8776_v52  ;;  %4011 = vmatprep.subr.bf16.mxu1 %v8779_v0  ;;  %v8857_v52 = vld [vmem:[#allocation9 + $0x64] ss:$16 sps:$4 sm:$0xff]   ;;  %v8855_v0 = vld [vmem:[#allocation9 + $0x60] ss:$16 sps:$4 sm:$0xff]  }
 0x7c9   :  { %3971 = vmatpush1.bf16.msra.mxu0 %v8774_v22  ;;  %4012 = vmatpush1.bf16.msra.mxu1 %v8777_v20  ;;  %v8860_v22 = vld [vmem:[#allocation9 + $0x84] ss:$16 sps:$4 sm:$0xff]   ;;  %v8858_v20 = vld [vmem:[#allocation9 + $0x80] ss:$16 sps:$4 sm:$0xff]  }
 0x7ca   :  { %3972 = vmatprep.subr.bf16.mxu0 %v8782_v56  ;;  %4013 = vmatprep.subr.bf16.mxu1 %v8785_v11  ;;  %v8863_v56 = vld [vmem:[#allocation9 + $0xa4] ss:$16 sps:$4 sm:$0xff]   ;;  %v8864_v11 = vld [vmem:[#allocation9 + $0xc0] ss:$16 sps:$4 sm:$0xff]  }
 0x7cd   :  { %3973 = vmatpush1.bf16.msra.mxu0 %v8780_v60  ;;  %4014 = vmatpush1.bf16.msra.mxu1 %v8783_v17  ;;  %v8869_v60 = vld [vmem:[#allocation9 + $0xe4] ss:$16 sps:$4 sm:$0xff]   ;;  %v8867_v17 = vld [vmem:[#allocation9 + $0xe0] ss:$16 sps:$4 sm:$0xff]  }
 0x7ce   :  { %3974 = vmatprep.subr.bf16.mxu0 %v8788_v45  ;;  %4015 = vmatprep.subr.bf16.mxu1 %v8791_v34  ;;  %v8872_v45 = vld [vmem:[#allocation9 + $0x104] ss:$16 sps:$4 sm:$0xff]   ;;  %v8894_v34 = vld [vmem:[#allocation9 + $0x200] ss:$16 sps:$4 sm:$0xff]  }
 0x7d1   :  { %3975 = vmatpush1.bf16.msra.mxu0 %v8786_v61  ;;  %4016 = vmatpush1.bf16.msra.mxu1 %v8789_v2  ;;  %v8896_v61 = vld [vmem:[#allocation9 + $0x204] ss:$16 sps:$4 sm:$0xff]   ;;  %v8870_v2 = vld [vmem:[#allocation9 + $0x100] ss:$16 sps:$4 sm:$0xff]  }
 0x7d2   :  { %3976 = vmatprep.subr.bf16.mxu0 %v8794_v26  ;;  %4017 = vmatprep.subr.bf16.mxu1 %v8797_v8  ;;  %v8875_v26 = vld [vmem:[#allocation9 + $0x124] ss:$16 sps:$4 sm:$0xff]   ;;  %v8873_v8 = vld [vmem:[#allocation9 + $0x120] ss:$16 sps:$4 sm:$0xff]  }
 0x7d5   :  { %3977 = vmatpush1.bf16.msra.mxu0 %v8792_v44  ;;  %4018 = vmatpush1.bf16.msra.mxu1 %v8795_v10  ;;  %v8900_v44 = vld [vmem:[#allocation9 + $0x220] ss:$16 sps:$4 sm:$0xff]   ;;  %v8902_v10 = vld [vmem:[#allocation9 + $0x224] ss:$16 sps:$4 sm:$0xff]  }
 0x7d6   :  { %3978 = vmatprep.subr.bf16.mxu0 %v8800_v9  ;;  %4019 = vmatprep.subr.bf16.mxu1 %v8803_v4  ;;  %v8878_v9 = vld [vmem:[#allocation9 + $0x144] ss:$16 sps:$4 sm:$0xff]   ;;  %v8876_v4 = vld [vmem:[#allocation9 + $0x140] ss:$16 sps:$4 sm:$0xff]  }
 0x7d9   :  { %3979 = vmatpush1.bf16.msra.mxu0 %v8798_v58  ;;  %4020 = vmatpush1.bf16.msra.mxu1 %v8801_v28  ;;  %v8906_v58 = vld [vmem:[#allocation9 + $0x240] ss:$16 sps:$4 sm:$0xff]   ;;  %v8908_v28 = vld [vmem:[#allocation9 + $0x244] ss:$16 sps:$4 sm:$0xff]  }
 0x7da   :  { %3980 = vmatprep.subr.bf16.mxu0 %v8806_v12  ;;  %4021 = vmatprep.subr.bf16.mxu1 %v8809_v6  ;;  %v8881_v12 = vld [vmem:[#allocation9 + $0x164] ss:$16 sps:$4 sm:$0xff]   ;;  %v8879_v6 = vld [vmem:[#allocation9 + $0x160] ss:$16 sps:$4 sm:$0xff]  }
 0x7dd   :  { %3981 = vmatpush1.bf16.msra.mxu0 %v8804_v24  ;;  %4022 = vmatpush1.bf16.msra.mxu1 %v8807_v14  ;;  %v8912_v24 = vld [vmem:[#allocation9 + $0x260] ss:$16 sps:$4 sm:$0xff]   ;;  %v8914_v14 = vld [vmem:[#allocation9 + $0x264] ss:$16 sps:$4 sm:$0xff]  }
 0x7de   :  { %3982 = vmatprep.subr.bf16.mxu0 %v8812_v7  ;;  %4023 = vmatprep.subr.bf16.mxu1 %v8815_v15  ;;  %v8884_v7 = vld [vmem:[#allocation9 + $0x184] ss:$16 sps:$4 sm:$0xff]   ;;  %v8882_v15 = vld [vmem:[#allocation9 + $0x180] ss:$16 sps:$4 sm:$0xff]  }
 0x7e1   :  { %3983 = vmatpush1.bf16.msra.mxu0 %v8810_v53  ;;  %4024 = vmatpush1.bf16.msra.mxu1 %v8813_v43  ;;  %v8918_v53 = vld [vmem:[#allocation9 + $0x280] ss:$16 sps:$4 sm:$0xff]   ;;  %v8920_v43 = vld [vmem:[#allocation9 + $0x284] ss:$16 sps:$4 sm:$0xff]  }
 0x7e2   :  { %3984 = vmatprep.subr.bf16.mxu0 %v8818_v21  ;;  %4025 = vmatprep.subr.bf16.mxu1 %v8821_v23  ;;  %v8887_v21 = vld [vmem:[#allocation9 + $0x1a4] ss:$16 sps:$4 sm:$0xff]   ;;  %v8885_v23 = vld [vmem:[#allocation9 + $0x1a0] ss:$16 sps:$4 sm:$0xff]  }
 0x7e5   :  { %3985 = vmatpush1.bf16.msra.mxu0 %v8816_v25  ;;  %4026 = vmatpush1.bf16.msra.mxu1 %v8819_v27  ;;  %v8924_v25 = vld [vmem:[#allocation9 + $0x2a0] ss:$16 sps:$4 sm:$0xff]   ;;  %v8926_v27 = vld [vmem:[#allocation9 + $0x2a4] ss:$16 sps:$4 sm:$0xff]  }
 0x7e6   :  { %3986 = vmatprep.subr.bf16.mxu0 %v8824_v30  ;;  %4027 = vmatprep.subr.bf16.mxu1 %v8827_v31  ;;  %v8890_v30 = vld [vmem:[#allocation9 + $0x1c4] ss:$16 sps:$4 sm:$0xff]   ;;  %v8888_v31 = vld [vmem:[#allocation9 + $0x1c0] ss:$16 sps:$4 sm:$0xff]  }
 0x7e9   :  { %3987 = vmatpush1.bf16.msra.mxu0 %v8822_v32  ;;  %4028 = vmatpush1.bf16.msra.mxu1 %v8825_v33  ;;  %v8930_v32 = vld [vmem:[#allocation9 + $0x2c0] ss:$16 sps:$4 sm:$0xff]   ;;  %v8932_v33 = vld [vmem:[#allocation9 + $0x2c4] ss:$16 sps:$4 sm:$0xff]  }
 0x7ea   :  { %3988 = vmatprep.subr.bf16.mxu0 %v8830_v37  ;;  %4029 = vmatprep.subr.bf16.mxu1 %v8833_v38  ;;  %v8893_v37 = vld [vmem:[#allocation9 + $0x1e4] ss:$16 sps:$4 sm:$0xff]   ;;  %v8891_v38 = vld [vmem:[#allocation9 + $0x1e0] ss:$16 sps:$4 sm:$0xff]  }
 0x7ed   :  { %3989 = vmatpush1.bf16.msra.mxu0 %v8828_v54  ;;  %4030 = vmatpush1.bf16.msra.mxu1 %v8831_v55  ;;  %v8936_v54 = vld [vmem:[#allocation9 + $0x2e0] ss:$16 sps:$4 sm:$0xff]   ;;  %v8938_v55 = vld [vmem:[#allocation9 + $0x2e4] ss:$16 sps:$4 sm:$0xff]  }
 0x7ee   :  { %3990 = vmatprep.subr.bf16.mxu0 %v8836_v57  ;;  %4031 = vmatprep.subr.bf16.mxu1 %v8839_v59  ;;  %v8899_v57 = vld [vmem:[#allocation9 + $0xc] ss:$16 sps:$4 sm:$0xff]   ;;  %v8942_v59 = vld [vmem:[#allocation9 + $0x300] ss:$16 sps:$4 sm:$0xff]  }
 0x7f1   :  { %3991 = vmatpush1.bf16.msra.mxu0 %v8834_v63  ;;  %4032 = vmatpush1.bf16.msra.mxu1 %v8837_v18  ;;  %v8944_v63 = vld [vmem:[#allocation9 + $0x304] ss:$16 sps:$4 sm:$0xff]   ;;  %v8948_v18 = vld [vmem:[#allocation9 + $0x320] ss:$16 sps:$4 sm:$0xff]  }
 0x7f2   :  { %3992 = vmatprep.subr.bf16.mxu0 %v8842_v1  ;;  %4033 = vmatprep.subr.bf16.mxu1 %v8845_v3  ;;  %v8950_v1 = vld [vmem:[#allocation9 + $0x324] ss:$16 sps:$4 sm:$0xff]   ;;  %v8954_v3 = vld [vmem:[#allocation9 + $0x340] ss:$16 sps:$4 sm:$0xff]  }
 0x7f5   :  { %3993 = vmatpush1.bf16.msra.mxu0 %v8840_v46  ;;  %4034 = vmatpush1.bf16.msra.mxu1 %v8843_v49  ;;  %v8956_v46 = vld [vmem:[#allocation9 + $0x344] ss:$16 sps:$4 sm:$0xff]   ;;  %v8960_v49 = vld [vmem:[#allocation9 + $0x360] ss:$16 sps:$4 sm:$0xff]  }
 0x7f6   :  { %4846 = vmatprep.subr.bf16.mxu0 %v8848_v47  ;;  %4887 = vmatprep.subr.bf16.mxu1 %v8896_v61  ;;  %v8962_v47 = vld [vmem:[#allocation9 + $0x364] ss:$16 sps:$4 sm:$0xff]  }
 0x7f8   :  { %3995 = vmatmul.mubr.bf16.vlgmr.msra.gmra.mrb[56].mxu0 %v10637_v62  ;;  %4036 = vmatmul.mubr.bf16.vlgmr.msra.gmra.mrb[56].mxu1 %v10641_v16  ;;  %v8861_v62 = vld [vmem:[#allocation9 + $0xa0] ss:$16 sps:$4 sm:$0xff]   ;;  %v8866_v16 = vld [vmem:[#allocation9 + $0xc4] ss:$16 sps:$4 sm:$0xff]  }
 0x7f9   :  { %4847 = vmatpush1.bf16.msra.mxu0 %v8846_v48  ;;  %4888 = vmatpush1.bf16.msra.mxu1 %v8894_v34  ;;  %v8966_v48 = vld [vmem:[#allocation9 + $0x380] ss:$16 sps:$4 sm:$0xff]  }
 0x7fa   :  { %4848 = vmatprep.subr.bf16.mxu0 %v8851_v5  ;;  %4889 = vmatprep.subr.bf16.mxu1 %v8902_v10  ;;  %v8968_v5 = vld [vmem:[#allocation9 + $0x384] ss:$16 sps:$4 sm:$0xff]  }
 0x7fd   :  { %4849 = vmatpush1.bf16.msra.mxu0 %v8849_v40  ;;  %4890 = vmatpush1.bf16.msra.mxu1 %v8900_v44  ;;  %v8974_v40 = vld [vmem:[#allocation9 + $0x3a4] ss:$16 sps:$4 sm:$0xff]  }
 0x7fe   :  { %4850 = vmatprep.subr.bf16.mxu0 %v8854_v50  ;;  %4891 = vmatprep.subr.bf16.mxu1 %v8908_v28  ;;  %v8972_v50 = vld [vmem:[#allocation9 + $0x3a0] ss:$16 sps:$4 sm:$0xff]  }
 0x801   :  { %4851 = vmatpush1.bf16.msra.mxu0 %v8852_v51  ;;  %4892 = vmatpush1.bf16.msra.mxu1 %v8906_v58  ;;  %v8980_v51 = vld [vmem:[#allocation9 + $0x3c4] ss:$16 sps:$4 sm:$0xff]  }
 0x802   :  { %4852 = vmatprep.subr.bf16.mxu0 %v8857_v52  ;;  %4893 = vmatprep.subr.bf16.mxu1 %v8914_v14  ;;  %v8978_v52 = vld [vmem:[#allocation9 + $0x3c0] ss:$16 sps:$4 sm:$0xff]  }
 0x805   :  { %4853 = vmatpush1.bf16.msra.mxu0 %v8855_v0  ;;  %4894 = vmatpush1.bf16.msra.mxu1 %v8912_v24  ;;  %v8986_v0 = vld [vmem:[#allocation9 + $0x3e4] ss:$16 sps:$4 sm:$0xff]   ;;  %v8897_v24 = vld [vmem:[#allocation9 + $0x8] ss:$16 sps:$4 sm:$0xff]  }
 0x806   :  { %4854 = vmatprep.subr.bf16.mxu0 %v8860_v22  ;;  %4895 = vmatprep.subr.bf16.mxu1 %v8920_v43  ;;  %v8984_v22 = vld [vmem:[#allocation9 + $0x3e0] ss:$16 sps:$4 sm:$0xff]   ;;  %v8915_v43 = vld [vmem:[#allocation9 + $0x68] ss:$16 sps:$4 sm:$0xff]  }
 0x809   :  { %4855 = vmatpush1.bf16.msra.mxu0 %v8858_v20  ;;  %4896 = vmatpush1.bf16.msra.mxu1 %v8918_v53  ;;  %v8992_v20 = vld [vmem:[#allocation9 + $0x20c] ss:$16 sps:$4 sm:$0xff]  }
 0x80a   :  { %4856 = vmatprep.subr.bf16.mxu0 %v8863_v56  ;;  %4897 = vmatprep.subr.bf16.mxu1 %v8926_v27  ;;  %v10650_v56 = vld [vmem:[%s10808_s9] sm:$0xf]  ;;  %v8917_v53 = vld [vmem:[#allocation9 + $0x6c] ss:$16 sps:$4 sm:$0xff]   ;;  %v8927_v27 = vld [vmem:[#allocation9 + $0xa8] ss:$16 sps:$4 sm:$0xff]  }
 0x80d   :  { %4857 = vmatpush1.bf16.msra.mxu0 %v8861_v62  ;;  %4898 = vmatpush1.bf16.msra.mxu1 %v8924_v25  ;;  %v3223_v62 = vrot.slane %v10650_v56, %v10854_v13  ;;  %v8929_v25 = vld [vmem:[#allocation9 + $0xac] ss:$16 sps:$4 sm:$0xff]  }
 0x80e   :  { %4858 = vmatprep.subr.bf16.mxu0 %v8866_v16  ;;  %4899 = vmatprep.subr.bf16.mxu1 %v8932_v33  ;;  %v3227_v16 = vrot.slane %v10650_v56, %v10856_v19  ;;  %v8939_v33 = vld [vmem:[#allocation9 + $0xe8] ss:$16 sps:$4 sm:$0xff]  }
 0x811   :  { %4859 = vmatpush1.bf16.msra.mxu0 %v8864_v11  ;;  %4900 = vmatpush1.bf16.msra.mxu1 %v8930_v32  ;;  %v8941_v32 = vld [vmem:[#allocation9 + $0xec] ss:$16 sps:$4 sm:$0xff]  }
 0x812   :  { %4860 = vmatprep.subr.bf16.mxu0 %v8869_v60  ;;  %4901 = vmatprep.subr.bf16.mxu1 %v8938_v55  ;;  %v8951_v55 = vld [vmem:[#allocation9 + $0x128] ss:$16 sps:$4 sm:$0xff]  }
 0x815   :  { %4861 = vmatpush1.bf16.msra.mxu0 %v8867_v17  ;;  %4902 = vmatpush1.bf16.msra.mxu1 %v8936_v54  ;;  %v8953_v54 = vld [vmem:[#allocation9 + $0x12c] ss:$16 sps:$4 sm:$0xff]  }
 0x816   :  { %4862 = vmatprep.subr.bf16.mxu0 %v8872_v45  ;;  %4903 = vmatprep.subr.bf16.mxu1 %v8944_v63  ;;  %v8965_v63 = vld [vmem:[#allocation9 + $0x16c] ss:$16 sps:$4 sm:$0xff]  }
 0x819   :  { %4863 = vmatpush1.bf16.msra.mxu0 %v8870_v2  ;;  %4904 = vmatpush1.bf16.msra.mxu1 %v8942_v59  ;;  %v8957_v59 = vld [vmem:[#allocation9 + $0x148] ss:$16 sps:$4 sm:$0xff]  }
 0x81a   :  { %4864 = vmatprep.subr.bf16.mxu0 %v8875_v26  ;;  %4905 = vmatprep.subr.bf16.mxu1 %v8950_v1  ;;  %v8971_v1 = vld [vmem:[#allocation9 + $0x18c] ss:$16 sps:$4 sm:$0xff]  }
 0x81d   :  { %4865 = vmatpush1.bf16.msra.mxu0 %v8873_v8  ;;  %4906 = vmatpush1.bf16.msra.mxu1 %v8948_v18  ;;  %v8963_v18 = vld [vmem:[#allocation9 + $0x168] ss:$16 sps:$4 sm:$0xff]  }
 0x81e   :  { %4866 = vmatprep.subr.bf16.mxu0 %v8878_v9  ;;  %4907 = vmatprep.subr.bf16.mxu1 %v8956_v46  ;;  %v8977_v46 = vld [vmem:[#allocation9 + $0x1ac] ss:$16 sps:$4 sm:$0xff]  }
 0x821   :  { %4867 = vmatpush1.bf16.msra.mxu0 %v8876_v4  ;;  %4908 = vmatpush1.bf16.msra.mxu1 %v8954_v3  ;;  %v8969_v3 = vld [vmem:[#allocation9 + $0x188] ss:$16 sps:$4 sm:$0xff]  }
 0x822   :  { %4868 = vmatprep.subr.bf16.mxu0 %v8881_v12  ;;  %4909 = vmatprep.subr.bf16.mxu1 %v8962_v47  ;;  %v3235_v47 = vrot.slane %v10650_v56, %v10857_v42 }
 0x825   :  { %4869 = vmatpush1.bf16.msra.mxu0 %v8879_v6  ;;  %4910 = vmatpush1.bf16.msra.mxu1 %v8960_v49  ;;  %v3231_v49 = vrot.slane %v10650_v56, %v10855_v29 }
 0x826   :  { %4870 = vmatprep.subr.bf16.mxu0 %v8884_v7  ;;  %4911 = vmatprep.subr.bf16.mxu1 %v8968_v5  ;;  %v8905_v7 = vld [vmem:[#allocation9 + $0x2c] ss:$16 sps:$4 sm:$0xff]  }
 0x827   :  { %v8983_v5 = vld [vmem:[#allocation9 + $0x1cc] ss:$16 sps:$4 sm:$0xff]  }
 0x829   :  { %4871 = vmatpush1.bf16.msra.mxu0 %v8882_v15  ;;  %4912 = vmatpush1.bf16.msra.mxu1 %v8966_v48  ;;  %v8909_v15 = vld [vmem:[#allocation9 + $0x48] ss:$16 sps:$4 sm:$0xff]  }
 0x82a   :  { %4872 = vmatprep.subr.bf16.mxu0 %v8887_v21  ;;  %4913 = vmatprep.subr.bf16.mxu1 %v8974_v40  ;;  %v8923_v21 = vld [vmem:[#allocation9 + $0x8c] ss:$16 sps:$4 sm:$0xff]   ;;  %v8975_v48 = vld [vmem:[#allocation9 + $0x1a8] ss:$16 sps:$4 sm:$0xff]  }
 0x82d   :  { %4873 = vmatpush1.bf16.msra.mxu0 %v8885_v23  ;;  %4914 = vmatpush1.bf16.msra.mxu1 %v8972_v50  ;;  %v8921_v23 = vld [vmem:[#allocation9 + $0x88] ss:$16 sps:$4 sm:$0xff]  }
 0x82e   :  { %4874 = vmatprep.subr.bf16.mxu0 %v8890_v30  ;;  %4915 = vmatprep.subr.bf16.mxu1 %v8980_v51  ;;  %v8935_v30 = vld [vmem:[#allocation9 + $0xcc] ss:$16 sps:$4 sm:$0xff]  }
 0x831   :  { %4875 = vmatpush1.bf16.msra.mxu0 %v8888_v31  ;;  %4916 = vmatpush1.bf16.msra.mxu1 %v8978_v52  ;;  %v8933_v31 = vld [vmem:[#allocation9 + $0xc8] ss:$16 sps:$4 sm:$0xff]  }
 0x832   :  { %4876 = vmatprep.subr.bf16.mxu0 %v8893_v37  ;;  %4917 = vmatprep.subr.bf16.mxu1 %v8986_v0  ;;  %v8947_v37 = vld [vmem:[#allocation9 + $0x10c] ss:$16 sps:$4 sm:$0xff]  }
 0x835   :  { %4877 = vmatpush1.bf16.msra.mxu0 %v8891_v38  ;;  %4918 = vmatpush1.bf16.msra.mxu1 %v8984_v22  ;;  %v8945_v38 = vld [vmem:[#allocation9 + $0x108] ss:$16 sps:$4 sm:$0xff]  }
 0x836   :  { %4928 = vmatprep.subr.bf16.mxu0 %v8899_v57  ;;  %4969 = vmatprep.subr.bf16.mxu1 %v8992_v20  ;;  %v8959_v57 = vld [vmem:[#allocation9 + $0x14c] ss:$16 sps:$4 sm:$0xff]  }
 0x88b   :  { %v3914_v11 = vpop.f32.mrb[52].mxu0  ;;  %v3955_v60 = vpop.f32.mrb[52].mxu1 }
 0x88c   :  { %v3915_v17 = vadd.f32 %v3914_v11, %v3223_v62  ;;  %v3916_v45 = vpop.f32.mrb[53].mxu0  ;;  %v3957_v34 = vpop.f32.mrb[53].mxu1 }
 0x88d   :  { %v3917_v61 = vadd.f32 %v3916_v45, %v3227_v16  ;;  %v3918_v2 = vpop.f32.mrb[54].mxu0  ;;  %v3959_v26 = vpop.f32.mrb[54].mxu1  ;;  %v8981_v16 = vld [vmem:[#allocation9 + $0x1c8] ss:$16 sps:$4 sm:$0xff]   ;;  %v8989_v45 = vld [vmem:[#allocation9 + $0x1ec] ss:$16 sps:$4 sm:$0xff]  }
 0x88e   :  { %v3956_v8 = vadd.f32 %v3955_v60, %v3915_v17  ;;  %v3919_v44 = vpop.f32.mrb[55].mxu0  ;;  %v3960_v10 = vpop.f32.mrb[55].mxu1  ;;  %v8987_v2 = vld [vmem:[#allocation9 + $0x1e8] ss:$16 sps:$4 sm:$0xff]  }
 0x88f   :  { %v3958_v9 = vadd.f32 %v3957_v34, %v3917_v61  ;;  %v8990_v10 = vld [vmem:[#allocation9 + $0x208] ss:$16 sps:$4 sm:$0xff]  }
 0x890   :  { %v4044_v4 = vadd.f32 %v3956_v8, %v10623_v35  ;;  %v8903_v35 = vld [vmem:[#allocation9 + $0x28] ss:$16 sps:$4 sm:$0xff]  }
 0x891   :  { %v4045_v58 = vadd.f32 %v3958_v9, %v10627_v39  ;;  %v8911_v39 = vld [vmem:[#allocation9 + $0x4c] ss:$16 sps:$4 sm:$0xff]  }
 0x892   :  { %v10658_v28 = vmax.f32 %v4044_v4, 0.0  ;;  %v8995_v4 = vld [vmem:[#allocation9 + $0x22c] ss:$16 sps:$4 sm:$0xff]  }
 0x893   :  { %v10660_v12 = vmax.f32 %v4045_v58, 0.0  ;;  %v8996_v58 = vld [vmem:[#allocation9 + $0x248] ss:$16 sps:$4 sm:$0xff]  }
 0x894   :  { %v10666_v14 = vpack.c.bf16 %v10658_v28, %v10658_v28 }
 0x895   :  { %v4053_v6 = vpack.c.bf16 %v10660_v12, %v10660_v12 }
 0x897   :  { %4878 = vmatprep.mubr.bf16.mxu0 %v4053_v6 }
 0x898   :  { %4879 = vmatmul.mubr.bf16.vlgmr.msra.gmra.mrb[60].mxu0 %v10666_v14 }
 0x899   :  { %4929 = vmatpush1.bf16.msra.mxu0 %v8897_v24  ;;  %4960 = vmatprep.mubr.bf16.mxu0 %v4053_v6  ;;  %v9001_v6 = vld [vmem:[#allocation9 + $0x26c] ss:$16 sps:$4 sm:$0xff]   ;;  %v8999_v24 = vld [vmem:[#allocation9 + $0x268] ss:$16 sps:$4 sm:$0xff]  }
 0x89a   :  { %4930 = vmatprep.subr.bf16.mxu0 %v8905_v7  ;;  %v9004_v7 = vld [vmem:[#allocation9 + $0x28c] ss:$16 sps:$4 sm:$0xff]  }
 0x89d   :  { %4931 = vmatpush1.bf16.msra.mxu0 %v8903_v35  ;;  %v9002_v35 = vld [vmem:[#allocation9 + $0x288] ss:$16 sps:$4 sm:$0xff]  }
 0x89e   :  { %4932 = vmatprep.subr.bf16.mxu0 %v8911_v39  ;;  %v9007_v39 = vld [vmem:[#allocation9 + $0x2ac] ss:$16 sps:$4 sm:$0xff]  }
 0x8a1   :  { %4933 = vmatpush1.bf16.msra.mxu0 %v8909_v15  ;;  %v9005_v15 = vld [vmem:[#allocation9 + $0x2a8] ss:$16 sps:$4 sm:$0xff]  }
 0x8a2   :  { %4934 = vmatprep.subr.bf16.mxu0 %v8917_v53  ;;  %v9008_v53 = vld [vmem:[#allocation9 + $0x2c8] ss:$16 sps:$4 sm:$0xff]  }
 0x8a5   :  { %4935 = vmatpush1.bf16.msra.mxu0 %v8915_v43  ;;  %v9013_v43 = vld [vmem:[#allocation9 + $0x2ec] ss:$16 sps:$4 sm:$0xff]  }
 0x8a6   :  { %4936 = vmatprep.subr.bf16.mxu0 %v8923_v21  ;;  %v9038_v21 = vld [vmem:[#allocation10] ss:$16 sps:$4 sm:$0xff]  }
 0x8a9   :  { %4937 = vmatpush1.bf16.msra.mxu0 %v8921_v23  ;;  %v9040_v23 = vld [vmem:[#allocation10 + $0x4] ss:$16 sps:$4 sm:$0xff]  }
 0x8aa   :  { %4938 = vmatprep.subr.bf16.mxu0 %v8929_v25  ;;  %v9043_v25 = vld [vmem:[#allocation10 + $0x24] ss:$16 sps:$4 sm:$0xff]  }
 0x8ad   :  { %4939 = vmatpush1.bf16.msra.mxu0 %v8927_v27  ;;  %v9011_v27 = vld [vmem:[#allocation9 + $0x2e8] ss:$16 sps:$4 sm:$0xff]  }
 0x8ae   :  { %4940 = vmatprep.subr.bf16.mxu0 %v8935_v30  ;;  %v9041_v30 = vld [vmem:[#allocation10 + $0x20] ss:$16 sps:$4 sm:$0xff]  }
 0x8b1   :  { %4941 = vmatpush1.bf16.msra.mxu0 %v8933_v31  ;;  %v9016_v31 = vld [vmem:[#allocation9 + $0x30c] ss:$16 sps:$4 sm:$0xff]  }
 0x8b2   :  { %4942 = vmatprep.subr.bf16.mxu0 %v8941_v32  ;;  %v9046_v32 = vld [vmem:[#allocation10 + $0x44] ss:$16 sps:$4 sm:$0xff]  }
 0x8b5   :  { %4943 = vmatpush1.bf16.msra.mxu0 %v8939_v33  ;;  %v9014_v33 = vld [vmem:[#allocation9 + $0x308] ss:$16 sps:$4 sm:$0xff]  }
 0x8b6   :  { %4944 = vmatprep.subr.bf16.mxu0 %v8947_v37  ;;  %v9044_v37 = vld [vmem:[#allocation10 + $0x40] ss:$16 sps:$4 sm:$0xff]  }
 0x8b9   :  { %4945 = vmatpush1.bf16.msra.mxu0 %v8945_v38  ;;  %v9019_v38 = vld [vmem:[#allocation9 + $0x32c] ss:$16 sps:$4 sm:$0xff]  }
 0x8ba   :  { %4946 = vmatprep.subr.bf16.mxu0 %v8953_v54  ;;  %v9049_v54 = vld [vmem:[#allocation10 + $0x64] ss:$16 sps:$4 sm:$0xff]  }
 0x8bd   :  { %4947 = vmatpush1.bf16.msra.mxu0 %v8951_v55  ;;  %v9017_v55 = vld [vmem:[#allocation9 + $0x328] ss:$16 sps:$4 sm:$0xff]  }
 0x8be   :  { %4948 = vmatprep.subr.bf16.mxu0 %v8959_v57  ;;  %v9047_v57 = vld [vmem:[#allocation10 + $0x60] ss:$16 sps:$4 sm:$0xff]  }
 0x8c1   :  { %4949 = vmatpush1.bf16.msra.mxu0 %v8957_v59  ;;  %v9022_v59 = vld [vmem:[#allocation9 + $0x34c] ss:$16 sps:$4 sm:$0xff]  }
 0x8c2   :  { %4950 = vmatprep.subr.bf16.mxu0 %v8965_v63  ;;  %v9052_v63 = vld [vmem:[#allocation10 + $0x84] ss:$16 sps:$4 sm:$0xff]  }
 0x8c5   :  { %4951 = vmatpush1.bf16.msra.mxu0 %v8963_v18  ;;  %v9020_v18 = vld [vmem:[#allocation9 + $0x348] ss:$16 sps:$4 sm:$0xff]  }
 0x8c6   :  { %4952 = vmatprep.subr.bf16.mxu0 %v8971_v1  ;;  %v9050_v1 = vld [vmem:[#allocation10 + $0x80] ss:$16 sps:$4 sm:$0xff]  }
 0x8c9   :  { %4953 = vmatpush1.bf16.msra.mxu0 %v8969_v3  ;;  %v9025_v3 = vld [vmem:[#allocation9 + $0x36c] ss:$16 sps:$4 sm:$0xff]  }
 0x8ca   :  { %4954 = vmatprep.subr.bf16.mxu0 %v8977_v46  ;;  %v9055_v46 = vld [vmem:[#allocation10 + $0xa4] ss:$16 sps:$4 sm:$0xff]  }
 0x8cb   :  { %v3996_v40 = vpop.f32.mrb[56].mxu0  ;;  %v4037_v50 = vpop.f32.mrb[56].mxu1 }
 0x8cc   :  { %v3997_v51 = vadd.f32 %v3996_v40, %v3231_v49  ;;  %v3998_v52 = vpop.f32.mrb[57].mxu0  ;;  %v4039_v0 = vpop.f32.mrb[57].mxu1  ;;  %v9023_v49 = vld [vmem:[#allocation9 + $0x368] ss:$16 sps:$4 sm:$0xff]  }
 0x8cd   :  { %v3999_v22 = vadd.f32 %v3998_v52, %v3235_v47  ;;  %v4000_v20 = vpop.f32.mrb[58].mxu0  ;;  %v4041_v62 = vpop.f32.mrb[58].mxu1  ;;  %4955 = vmatpush1.bf16.msra.mxu0 %v8975_v48  ;;  %v9053_v47 = vld [vmem:[#allocation10 + $0xa0] ss:$16 sps:$4 sm:$0xff]   ;;  %v9028_v48 = vld [vmem:[#allocation9 + $0x38c] ss:$16 sps:$4 sm:$0xff]  }
 0x8ce   :  { %v4038_v11 = vadd.f32 %v4037_v50, %v3997_v51  ;;  %v4001_v60 = vpop.f32.mrb[59].mxu0  ;;  %v4042_v17 = vpop.f32.mrb[59].mxu1  ;;  %4956 = vmatprep.subr.bf16.mxu0 %v8983_v5  ;;  %v9058_v5 = vld [vmem:[#allocation10 + $0xc4] ss:$16 sps:$4 sm:$0xff]   ;;  %v9026_v40 = vld [vmem:[#allocation9 + $0x388] ss:$16 sps:$4 sm:$0xff]  }
 0x8cf   :  { %v4040_v34 = vadd.f32 %v4039_v0, %v3999_v22  ;;  %v9056_v50 = vld [vmem:[#allocation10 + $0xc0] ss:$16 sps:$4 sm:$0xff]   ;;  %v9031_v51 = vld [vmem:[#allocation9 + $0x3ac] ss:$16 sps:$4 sm:$0xff]   ;;  %v9061_v52 = vld [vmem:[#allocation10 + $0xe4] ss:$16 sps:$4 sm:$0xff]  }
 0x8d0   :  { %v4046_v56 = vadd.f32 %v4038_v11, %v10625_v36  ;;  %v8993_v36 = vld [vmem:[#allocation9 + $0x228] ss:$16 sps:$4 sm:$0xff]   ;;  %v9059_v22 = vld [vmem:[#allocation10 + $0xe0] ss:$16 sps:$4 sm:$0xff]   ;;  %v9034_v20 = vld [vmem:[#allocation9 + $0x3cc] ss:$16 sps:$4 sm:$0xff]  }
 0x8d1   :  { %v4047_v61 = vadd.f32 %v4040_v34, %v10629_v41  ;;  %4957 = vmatpush1.bf16.msra.mxu0 %v8981_v16  ;;  %v8998_v41 = vld [vmem:[#allocation9 + $0x24c] ss:$16 sps:$4 sm:$0xff]   ;;  %v9029_v0 = vld [vmem:[#allocation9 + $0x3a8] ss:$16 sps:$4 sm:$0xff]   ;;  %v9064_v62 = vld [vmem:[#allocation10 + $0x104] ss:$16 sps:$4 sm:$0xff]  }
 0x8d2   :  { %v10675_v26 = vmax.f32 %v4046_v56, 0.0  ;;  %4958 = vmatprep.subr.bf16.mxu0 %v8989_v45  ;;  %v9032_v16 = vld [vmem:[#allocation9 + $0x3c8] ss:$16 sps:$4 sm:$0xff]   ;;  %v9062_v11 = vld [vmem:[#allocation10 + $0x100] ss:$16 sps:$4 sm:$0xff]  }
 0x8d3   :  { %v10677_v8 = vmax.f32 %v4047_v61, 0.0  ;;  %v9037_v60 = vld [vmem:[#allocation9 + $0x3ec] ss:$16 sps:$4 sm:$0xff]   ;;  %v9067_v17 = vld [vmem:[#allocation10 + $0x124] ss:$16 sps:$4 sm:$0xff]  }
 0x8d4   :  { %v10683_v9 = vpack.c.bf16 %v10675_v26, %v10675_v26  ;;  %v9035_v45 = vld [vmem:[#allocation9 + $0x3e8] ss:$16 sps:$4 sm:$0xff]   ;;  %v9065_v34 = vld [vmem:[#allocation10 + $0x120] ss:$16 sps:$4 sm:$0xff]   ;;  %v9070_v56 = vld [vmem:[#allocation10 + $0x144] ss:$16 sps:$4 sm:$0xff]  }
 0x8d5   :  { %4959 = vmatpush1.bf16.msra.mxu0 %v8987_v2  ;;  %v4055_v44 = vpack.c.bf16 %v10677_v8, %v10677_v8  ;;  %v9068_v61 = vld [vmem:[#allocation10 + $0x140] ss:$16 sps:$4 sm:$0xff]   ;;  %v9073_v2 = vld [vmem:[#allocation10 + $0x164] ss:$16 sps:$4 sm:$0xff]  }
 0x8d6   :  { %5812 = vmatprep.subr.bf16.mxu0 %v9040_v23  ;;  %v9106_v23 = vld [vmem:[#allocation10 + $0x264] ss:$16 sps:$4 sm:$0xff]  }
 0x8d7   :  { %4919 = vmatprep.mubr.bf16.mxu1 %v4055_v44 }
 0x8d8   :  { %4920 = vmatmul.mubr.bf16.vlgmr.msra.gmra.mrb[60].mxu1 %v10683_v9  ;;  %4961 = vmatmul.mubr.bf16.vlgmr.msra.gmra.mrb[64].mxu0 %v10666_v14  ;;  %v9010_v14 = vld [vmem:[#allocation9 + $0x2cc] ss:$16 sps:$4 sm:$0xff]  }
 0x8d9   :  { %4970 = vmatpush1.bf16.msra.mxu1 %v8990_v10  ;;  %5001 = vmatprep.mubr.bf16.mxu1 %v4055_v44  ;;  %v9071_v44 = vld [vmem:[#allocation10 + $0x160] ss:$16 sps:$4 sm:$0xff]   ;;  %v9076_v10 = vld [vmem:[#allocation10 + $0x184] ss:$16 sps:$4 sm:$0xff]  }
 0x8da   :  { %4971 = vmatprep.subr.bf16.mxu1 %v8995_v4  ;;  %5813 = vmatpush1.bf16.msra.mxu0 %v9038_v21  ;;  %v9074_v4 = vld [vmem:[#allocation10 + $0x180] ss:$16 sps:$4 sm:$0xff]  }
 0x8db   :  { %5814 = vmatprep.subr.bf16.mxu0 %v9043_v25  ;;  %v9104_v21 = vld [vmem:[#allocation10 + $0x260] ss:$16 sps:$4 sm:$0xff]  }
 0x8dc   :  { %v9110_v25 = vld [vmem:[#allocation10 + $0x280] ss:$16 sps:$4 sm:$0xff]  }
 0x8dd   :  { %4972 = vmatpush1.bf16.msra.mxu1 %v8993_v36  ;;  %v9079_v36 = vld [vmem:[#allocation10 + $0x1a4] ss:$16 sps:$4 sm:$0xff]  }
 0x8de   :  { %4973 = vmatprep.subr.bf16.mxu1 %v8998_v41  ;;  %5815 = vmatpush1.bf16.msra.mxu0 %v9041_v30  ;;  %v9077_v41 = vld [vmem:[#allocation10 + $0x1a0] ss:$16 sps:$4 sm:$0xff]  }
 0x8df   :  { %5816 = vmatprep.subr.bf16.mxu0 %v9046_v32  ;;  %v9116_v30 = vld [vmem:[#allocation10 + $0x2a0] ss:$16 sps:$4 sm:$0xff]  }
 0x8e0   :  { %v9122_v32 = vld [vmem:[#allocation10 + $0x2c0] ss:$16 sps:$4 sm:$0xff]  }
 0x8e1   :  { %4974 = vmatpush1.bf16.msra.mxu1 %v8996_v58  ;;  %v9082_v58 = vld [vmem:[#allocation10 + $0x1c4] ss:$16 sps:$4 sm:$0xff]  }
 0x8e2   :  { %4975 = vmatprep.subr.bf16.mxu1 %v9001_v6  ;;  %5817 = vmatpush1.bf16.msra.mxu0 %v9044_v37  ;;  %v9080_v6 = vld [vmem:[#allocation10 + $0x1c0] ss:$16 sps:$4 sm:$0xff]  }
 0x8e3   :  { %5818 = vmatprep.subr.bf16.mxu0 %v9049_v54  ;;  %v9128_v37 = vld [vmem:[#allocation10 + $0x2e0] ss:$16 sps:$4 sm:$0xff]  }
 0x8e4   :  { %v9134_v54 = vld [vmem:[#allocation10 + $0x300] ss:$16 sps:$4 sm:$0xff]  }
 0x8e5   :  { %4976 = vmatpush1.bf16.msra.mxu1 %v8999_v24  ;;  %v9085_v24 = vld [vmem:[#allocation10 + $0x1e4] ss:$16 sps:$4 sm:$0xff]  }
 0x8e6   :  { %4977 = vmatprep.subr.bf16.mxu1 %v9004_v7  ;;  %5819 = vmatpush1.bf16.msra.mxu0 %v9047_v57  ;;  %v9083_v7 = vld [vmem:[#allocation10 + $0x1e0] ss:$16 sps:$4 sm:$0xff]  }
 0x8e7   :  { %5820 = vmatprep.subr.bf16.mxu0 %v9052_v63  ;;  %v9140_v57 = vld [vmem:[#allocation10 + $0x320] ss:$16 sps:$4 sm:$0xff]  }
 0x8e8   :  { %v9146_v63 = vld [vmem:[#allocation10 + $0x340] ss:$16 sps:$4 sm:$0xff]  }
 0x8e9   :  { %4978 = vmatpush1.bf16.msra.mxu1 %v9002_v35  ;;  %v9088_v35 = vld [vmem:[#allocation10 + $0x204] ss:$16 sps:$4 sm:$0xff]  }
 0x8ea   :  { %4979 = vmatprep.subr.bf16.mxu1 %v9007_v39  ;;  %5821 = vmatpush1.bf16.msra.mxu0 %v9050_v1  ;;  %v9091_v39 = vld [vmem:[#allocation10 + $0xc] ss:$16 sps:$4 sm:$0xff]   ;;  %v9152_v1 = vld [vmem:[#allocation10 + $0x360] ss:$16 sps:$4 sm:$0xff]  }
 0x8eb   :  { %5822 = vmatprep.subr.bf16.mxu0 %v9055_v46  ;;  %v9158_v46 = vld [vmem:[#allocation10 + $0x380] ss:$16 sps:$4 sm:$0xff]  }
 0x8ed   :  { %4980 = vmatpush1.bf16.msra.mxu1 %v9005_v15  ;;  %v9092_v15 = vld [vmem:[#allocation10 + $0x220] ss:$16 sps:$4 sm:$0xff]  }
 0x8ee   :  { %4981 = vmatprep.subr.bf16.mxu1 %v9010_v14  ;;  %5823 = vmatpush1.bf16.msra.mxu0 %v9053_v47  ;;  %v9094_v14 = vld [vmem:[#allocation10 + $0x224] ss:$16 sps:$4 sm:$0xff]   ;;  %v9164_v47 = vld [vmem:[#allocation10 + $0x3a0] ss:$16 sps:$4 sm:$0xff]  }
 0x8ef   :  { %5824 = vmatprep.subr.bf16.mxu0 %v9058_v5 }
 0x8f1   :  { %4982 = vmatpush1.bf16.msra.mxu1 %v9008_v53  ;;  %v9098_v53 = vld [vmem:[#allocation10 + $0x240] ss:$16 sps:$4 sm:$0xff]  }
 0x8f2   :  { %4983 = vmatprep.subr.bf16.mxu1 %v9013_v43  ;;  %5825 = vmatpush1.bf16.msra.mxu0 %v9056_v50  ;;  %v9100_v43 = vld [vmem:[#allocation10 + $0x244] ss:$16 sps:$4 sm:$0xff]  }
 0x8f3   :  { %5826 = vmatprep.subr.bf16.mxu0 %v9061_v52 }
 0x8f5   :  { %4984 = vmatpush1.bf16.msra.mxu1 %v9011_v27  ;;  %v9112_v27 = vld [vmem:[#allocation10 + $0x284] ss:$16 sps:$4 sm:$0xff]  }
 0x8f6   :  { %4985 = vmatprep.subr.bf16.mxu1 %v9016_v31  ;;  %5827 = vmatpush1.bf16.msra.mxu0 %v9059_v22  ;;  %v9118_v31 = vld [vmem:[#allocation10 + $0x2a4] ss:$16 sps:$4 sm:$0xff]  }
 0x8f7   :  { %5828 = vmatprep.subr.bf16.mxu0 %v9064_v62  ;;  %v9178_v22 = vld [vmem:[#allocation10 + $0x3e4] ss:$16 sps:$4 sm:$0xff]   ;;  %v9184_v62 = vld [vmem:[#allocation10 + $0x20c] ss:$16 sps:$4 sm:$0xff]  }
 0x8f9   :  { %4986 = vmatpush1.bf16.msra.mxu1 %v9014_v33  ;;  %v9124_v33 = vld [vmem:[#allocation10 + $0x2c4] ss:$16 sps:$4 sm:$0xff]  }
 0x8fa   :  { %4987 = vmatprep.subr.bf16.mxu1 %v9019_v38  ;;  %5829 = vmatpush1.bf16.msra.mxu0 %v9062_v11  ;;  %v9130_v38 = vld [vmem:[#allocation10 + $0x2e4] ss:$16 sps:$4 sm:$0xff]  }
 0x8fb   :  { %5830 = vmatprep.subr.bf16.mxu0 %v9067_v17 }
 0x8fd   :  { %4988 = vmatpush1.bf16.msra.mxu1 %v9017_v55  ;;  %v9136_v55 = vld [vmem:[#allocation10 + $0x304] ss:$16 sps:$4 sm:$0xff]  }
 0x8fe   :  { %4989 = vmatprep.subr.bf16.mxu1 %v9022_v59  ;;  %5831 = vmatpush1.bf16.msra.mxu0 %v9065_v34  ;;  %v9142_v59 = vld [vmem:[#allocation10 + $0x324] ss:$16 sps:$4 sm:$0xff]  }
 0x8ff   :  { %5832 = vmatprep.subr.bf16.mxu0 %v9070_v56 }
 0x901   :  { %4990 = vmatpush1.bf16.msra.mxu1 %v9020_v18  ;;  %v9148_v18 = vld [vmem:[#allocation10 + $0x344] ss:$16 sps:$4 sm:$0xff]  }
 0x902   :  { %4991 = vmatprep.subr.bf16.mxu1 %v9025_v3  ;;  %5833 = vmatpush1.bf16.msra.mxu0 %v9068_v61  ;;  %v9154_v3 = vld [vmem:[#allocation10 + $0x364] ss:$16 sps:$4 sm:$0xff]  }
 0x903   :  { %5834 = vmatprep.subr.bf16.mxu0 %v9073_v2 }
 0x905   :  { %4992 = vmatpush1.bf16.msra.mxu1 %v9023_v49  ;;  %v9160_v49 = vld [vmem:[#allocation10 + $0x384] ss:$16 sps:$4 sm:$0xff]  }
 0x906   :  { %4993 = vmatprep.subr.bf16.mxu1 %v9028_v48  ;;  %5835 = vmatpush1.bf16.msra.mxu0 %v9071_v44  ;;  %v9166_v48 = vld [vmem:[#allocation10 + $0x3a4] ss:$16 sps:$4 sm:$0xff]  }
 0x907   :  { %5836 = vmatprep.subr.bf16.mxu0 %v9076_v10 }
 0x909   :  { %4994 = vmatpush1.bf16.msra.mxu1 %v9026_v40  ;;  %v9172_v40 = vld [vmem:[#allocation10 + $0x3c4] ss:$16 sps:$4 sm:$0xff]  }
 0x90a   :  { %4995 = vmatprep.subr.bf16.mxu1 %v9031_v51  ;;  %5837 = vmatpush1.bf16.msra.mxu0 %v9074_v4  ;;  %v9170_v51 = vld [vmem:[#allocation10 + $0x3c0] ss:$16 sps:$4 sm:$0xff]  }
 0x90b   :  { %5838 = vmatprep.subr.bf16.mxu0 %v9079_v36 }
 0x90d   :  { %4996 = vmatpush1.bf16.msra.mxu1 %v9029_v0 }
 0x90e   :  { %4997 = vmatprep.subr.bf16.mxu1 %v9034_v20  ;;  %5839 = vmatpush1.bf16.msra.mxu0 %v9077_v41  ;;  %v9176_v20 = vld [vmem:[#allocation10 + $0x3e0] ss:$16 sps:$4 sm:$0xff]  }
 0x90f   :  { %5840 = vmatprep.subr.bf16.mxu0 %v9082_v58 }
 0x911   :  { %4998 = vmatpush1.bf16.msra.mxu1 %v9032_v16  ;;  %v10691_v16 = vld [vmem:[%s10810_s11] sm:$0xf] }
 0x912   :  { %4999 = vmatprep.subr.bf16.mxu1 %v9037_v60  ;;  %5841 = vmatpush1.bf16.msra.mxu0 %v9080_v6  ;;  %v4189_v11 = vrot.slane %v10691_v16, %v10854_v13  ;;  %v4193_v60 = vrot.slane %v10691_v16, %v10856_v19 }
 0x913   :  { %5842 = vmatprep.subr.bf16.mxu0 %v9085_v24 }
 0x915   :  { %5000 = vmatpush1.bf16.msra.mxu1 %v9035_v45 }
 0x916   :  { %5843 = vmatpush1.bf16.msra.mxu0 %v9083_v7  ;;  %5853 = vmatprep.subr.bf16.mxu1 %v9088_v35 }
 0x917   :  { %5894 = vmatprep.subr.bf16.mxu0 %v9091_v39  ;;  %v9089_v39 = vld [vmem:[#allocation10 + $0x8] ss:$16 sps:$4 sm:$0xff]  }
 0x918   :  { %5002 = vmatmul.mubr.bf16.vlgmr.msra.gmra.mrb[64].mxu1 %v10683_v9  ;;  %v9086_v9 = vld [vmem:[#allocation10 + $0x200] ss:$16 sps:$4 sm:$0xff]  }
 0x919   :  { %5854 = vmatpush1.bf16.msra.mxu1 %v9086_v9 }
 0x91a   :  { %5855 = vmatprep.subr.bf16.mxu1 %v9094_v14  ;;  %v9097_v14 = vld [vmem:[#allocation10 + $0x2c] ss:$16 sps:$4 sm:$0xff]  }
 0x91d   :  { %5856 = vmatpush1.bf16.msra.mxu1 %v9092_v15 }
 0x91e   :  { %5857 = vmatprep.subr.bf16.mxu1 %v9100_v43  ;;  %v9109_v43 = vld [vmem:[#allocation10 + $0x6c] ss:$16 sps:$4 sm:$0xff]  }
 0x921   :  { %5858 = vmatpush1.bf16.msra.mxu1 %v9098_v53  ;;  %v9101_v53 = vld [vmem:[#allocation10 + $0x48] ss:$16 sps:$4 sm:$0xff]  }
 0x922   :  { %5859 = vmatprep.subr.bf16.mxu1 %v9106_v23  ;;  %v9115_v23 = vld [vmem:[#allocation10 + $0x8c] ss:$16 sps:$4 sm:$0xff]  }
 0x925   :  { %5860 = vmatpush1.bf16.msra.mxu1 %v9104_v21  ;;  %v9107_v21 = vld [vmem:[#allocation10 + $0x68] ss:$16 sps:$4 sm:$0xff]  }
 0x926   :  { %5861 = vmatprep.subr.bf16.mxu1 %v9112_v27  ;;  %v9121_v27 = vld [vmem:[#allocation10 + $0xac] ss:$16 sps:$4 sm:$0xff]  }
 0x929   :  { %5862 = vmatpush1.bf16.msra.mxu1 %v9110_v25  ;;  %v9113_v25 = vld [vmem:[#allocation10 + $0x88] ss:$16 sps:$4 sm:$0xff]  }
 0x92a   :  { %5863 = vmatprep.subr.bf16.mxu1 %v9118_v31  ;;  %v9127_v31 = vld [vmem:[#allocation10 + $0xcc] ss:$16 sps:$4 sm:$0xff]  }
 0x92d   :  { %5864 = vmatpush1.bf16.msra.mxu1 %v9116_v30  ;;  %v9119_v30 = vld [vmem:[#allocation10 + $0xa8] ss:$16 sps:$4 sm:$0xff]  }
 0x92e   :  { %5865 = vmatprep.subr.bf16.mxu1 %v9124_v33  ;;  %v9133_v33 = vld [vmem:[#allocation10 + $0xec] ss:$16 sps:$4 sm:$0xff]  }
 0x931   :  { %5866 = vmatpush1.bf16.msra.mxu1 %v9122_v32  ;;  %v9125_v32 = vld [vmem:[#allocation10 + $0xc8] ss:$16 sps:$4 sm:$0xff]  }
 0x932   :  { %5867 = vmatprep.subr.bf16.mxu1 %v9130_v38  ;;  %v9139_v38 = vld [vmem:[#allocation10 + $0x10c] ss:$16 sps:$4 sm:$0xff]  }
 0x935   :  { %5868 = vmatpush1.bf16.msra.mxu1 %v9128_v37  ;;  %v9131_v37 = vld [vmem:[#allocation10 + $0xe8] ss:$16 sps:$4 sm:$0xff]  }
 0x936   :  { %5869 = vmatprep.subr.bf16.mxu1 %v9136_v55  ;;  %v9145_v55 = vld [vmem:[#allocation10 + $0x12c] ss:$16 sps:$4 sm:$0xff]  }
 0x939   :  { %5870 = vmatpush1.bf16.msra.mxu1 %v9134_v54  ;;  %v9137_v54 = vld [vmem:[#allocation10 + $0x108] ss:$16 sps:$4 sm:$0xff]  }
 0x93a   :  { %5871 = vmatprep.subr.bf16.mxu1 %v9142_v59  ;;  %v9151_v59 = vld [vmem:[#allocation10 + $0x14c] ss:$16 sps:$4 sm:$0xff]  }
 0x93d   :  { %5872 = vmatpush1.bf16.msra.mxu1 %v9140_v57  ;;  %v9143_v57 = vld [vmem:[#allocation10 + $0x128] ss:$16 sps:$4 sm:$0xff]  }
 0x93e   :  { %5873 = vmatprep.subr.bf16.mxu1 %v9148_v18  ;;  %v9157_v18 = vld [vmem:[#allocation10 + $0x16c] ss:$16 sps:$4 sm:$0xff]  }
 0x941   :  { %5874 = vmatpush1.bf16.msra.mxu1 %v9146_v63  ;;  %v9149_v63 = vld [vmem:[#allocation10 + $0x148] ss:$16 sps:$4 sm:$0xff]  }
 0x942   :  { %5875 = vmatprep.subr.bf16.mxu1 %v9154_v3  ;;  %v9163_v3 = vld [vmem:[#allocation10 + $0x18c] ss:$16 sps:$4 sm:$0xff]  }
 0x945   :  { %5876 = vmatpush1.bf16.msra.mxu1 %v9152_v1  ;;  %v9155_v1 = vld [vmem:[#allocation10 + $0x168] ss:$16 sps:$4 sm:$0xff]  }
 0x946   :  { %5877 = vmatprep.subr.bf16.mxu1 %v9160_v49  ;;  %v9169_v49 = vld [vmem:[#allocation10 + $0x1ac] ss:$16 sps:$4 sm:$0xff]  }
 0x949   :  { %5878 = vmatpush1.bf16.msra.mxu1 %v9158_v46  ;;  %v9161_v46 = vld [vmem:[#allocation10 + $0x188] ss:$16 sps:$4 sm:$0xff]  }
 0x94a   :  { %5879 = vmatprep.subr.bf16.mxu1 %v9166_v48  ;;  %v4201_v48 = vrot.slane %v10691_v16, %v10857_v42 }
 0x94d   :  { %5880 = vmatpush1.bf16.msra.mxu1 %v9164_v47  ;;  %v4197_v47 = vrot.slane %v10691_v16, %v10855_v29 }
 0x94e   :  { %5881 = vmatprep.subr.bf16.mxu1 %v9172_v40  ;;  %v9175_v40 = vld [vmem:[#allocation10 + $0x1cc] ss:$16 sps:$4 sm:$0xff]  }
 0x951   :  { %5882 = vmatpush1.bf16.msra.mxu1 %v9170_v51 }
 0x952   :  { %5883 = vmatprep.subr.bf16.mxu1 %v9178_v22 }
 0x955   :  { %5884 = vmatpush1.bf16.msra.mxu1 %v9176_v20 }
 0x956   :  { %5935 = vmatprep.subr.bf16.mxu1 %v9184_v62  ;;  %v9181_v62 = vld [vmem:[#allocation10 + $0x1ec] ss:$16 sps:$4 sm:$0xff]  }
 0x96b   :  { %v4880_v5 = vpop.f32.mrb[60].mxu0 }
 0x96c   :  { %v4882_v50 = vpop.f32.mrb[61].mxu0  ;;  %v4881_v17 = vadd.f32 %v4880_v5, %v4189_v11  ;;  %v9167_v5 = vld [vmem:[#allocation10 + $0x1a8] ss:$16 sps:$4 sm:$0xff]  }
 0x96d   :  { %v4884_v52 = vpop.f32.mrb[62].mxu0  ;;  %v4883_v45 = vadd.f32 %v4882_v50, %v4193_v60 }
 0x96e   :  { %v4885_v0 = vpop.f32.mrb[63].mxu0 }
 0x96f   :  { %v9173_v0 = vld [vmem:[#allocation10 + $0x1c8] ss:$16 sps:$4 sm:$0xff]  }
 0x9ab   :  { %v4921_v34 = vpop.f32.mrb[60].mxu1  ;;  %v10697_v56 = vpop.f32.mrb[64].mxu0 }
 0x9ac   :  { %v4922_v61 = vadd.f32 %v4921_v34, %v4881_v17  ;;  %v4923_v2 = vpop.f32.mrb[61].mxu1  ;;  %v10699_v44 = vpop.f32.mrb[65].mxu0  ;;  %v4963_v50 = vadd.f32 %v10697_v56, %v4197_v47  ;;  %v9179_v34 = vld [vmem:[#allocation10 + $0x1e8] ss:$16 sps:$4 sm:$0xff]  }
 0x9ad   :  { %v4924_v10 = vadd.f32 %v4923_v2, %v4883_v45  ;;  %v4925_v4 = vpop.f32.mrb[62].mxu1  ;;  %v4966_v36 = vpop.f32.mrb[66].mxu0  ;;  %v4965_v51 = vadd.f32 %v10699_v44, %v4201_v48  ;;  %v9182_v44 = vld [vmem:[#allocation10 + $0x208] ss:$16 sps:$4 sm:$0xff]   ;;  %v9248_v48 = vld [vmem:[#allocation12 + $0xc0] ss:$16 sps:$4 sm:$0xff]  }
 0x9ae   :  { %v5010_v41 = vadd.f32 %v4922_v61, %v10658_v28  ;;  %v4926_v58 = vpop.f32.mrb[63].mxu1  ;;  %v4967_v6 = vpop.f32.mrb[67].mxu0  ;;  %v9095_v28 = vld [vmem:[#allocation10 + $0x28] ss:$16 sps:$4 sm:$0xff]   ;;  %v9190_v4 = vld [vmem:[#allocation10 + $0x24c] ss:$16 sps:$4 sm:$0xff]  }
 0x9af   :  { %v5011_v24 = vadd.f32 %v4924_v10, %v10660_v12  ;;  %v9103_v12 = vld [vmem:[#allocation10 + $0x4c] ss:$16 sps:$4 sm:$0xff]   ;;  %v9188_v36 = vld [vmem:[#allocation10 + $0x248] ss:$16 sps:$4 sm:$0xff]  }
 0x9b0   :  { %v10703_v7 = vmax.f32 %v5010_v41, 0.0  ;;  %v9193_v41 = vld [vmem:[#allocation10 + $0x26c] ss:$16 sps:$4 sm:$0xff]   ;;  %v9191_v58 = vld [vmem:[#allocation10 + $0x268] ss:$16 sps:$4 sm:$0xff]  }
 0x9b1   :  { %v10705_v9 = vmax.f32 %v5011_v24, 0.0  ;;  %v9196_v6 = vld [vmem:[#allocation10 + $0x28c] ss:$16 sps:$4 sm:$0xff]   ;;  %v9194_v24 = vld [vmem:[#allocation10 + $0x288] ss:$16 sps:$4 sm:$0xff]  }
 0x9b2   :  { %v10711_v15 = vpack.c.bf16 %v10703_v7, %v10703_v7  ;;  %v9218_v47 = vld [vmem:[#allocation10 + $0x388] ss:$16 sps:$4 sm:$0xff]  }
 0x9b3   :  { %v5019_v35 = vpack.c.bf16 %v10705_v9, %v10705_v9 }
 0x9b5   :  { %5844 = vmatprep.mubr.bf16.mxu0 %v5019_v35 }
 0x9b6   :  { %5845 = vmatmul.mubr.bf16.vlgmr.msra.gmra.mrb[68].mxu0 %v10711_v15 }
 0x9b7   :  { %5895 = vmatpush1.bf16.msra.mxu0 %v9089_v39  ;;  %5926 = vmatprep.mubr.bf16.mxu0 %v5019_v35  ;;  %v9199_v35 = vld [vmem:[#allocation10 + $0x2ac] ss:$16 sps:$4 sm:$0xff]   ;;  %v9197_v39 = vld [vmem:[#allocation10 + $0x2a8] ss:$16 sps:$4 sm:$0xff]  }
 0x9b8   :  { %5896 = vmatprep.subr.bf16.mxu0 %v9097_v14  ;;  %v9200_v14 = vld [vmem:[#allocation10 + $0x2c8] ss:$16 sps:$4 sm:$0xff]  }
 0x9bb   :  { %5897 = vmatpush1.bf16.msra.mxu0 %v9095_v28  ;;  %v9205_v28 = vld [vmem:[#allocation10 + $0x2ec] ss:$16 sps:$4 sm:$0xff]  }
 0x9bc   :  { %5898 = vmatprep.subr.bf16.mxu0 %v9103_v12  ;;  %v9230_v12 = vld [vmem:[#allocation12] ss:$16 sps:$4 sm:$0xff]  }
 0x9bf   :  { %5899 = vmatpush1.bf16.msra.mxu0 %v9101_v53  ;;  %v9232_v53 = vld [vmem:[#allocation12 + $0x4] ss:$16 sps:$4 sm:$0xff]  }
 0x9c0   :  { %5900 = vmatprep.subr.bf16.mxu0 %v9109_v43  ;;  %v9235_v43 = vld [vmem:[#allocation12 + $0x24] ss:$16 sps:$4 sm:$0xff]  }
 0x9c3   :  { %5901 = vmatpush1.bf16.msra.mxu0 %v9107_v21  ;;  %v9203_v21 = vld [vmem:[#allocation10 + $0x2e8] ss:$16 sps:$4 sm:$0xff]  }
 0x9c4   :  { %5902 = vmatprep.subr.bf16.mxu0 %v9115_v23  ;;  %v9233_v23 = vld [vmem:[#allocation12 + $0x20] ss:$16 sps:$4 sm:$0xff]  }
 0x9c7   :  { %5903 = vmatpush1.bf16.msra.mxu0 %v9113_v25  ;;  %v9208_v25 = vld [vmem:[#allocation10 + $0x30c] ss:$16 sps:$4 sm:$0xff]  }
 0x9c8   :  { %5904 = vmatprep.subr.bf16.mxu0 %v9121_v27  ;;  %v9238_v27 = vld [vmem:[#allocation12 + $0x44] ss:$16 sps:$4 sm:$0xff]  }
 0x9cb   :  { %5905 = vmatpush1.bf16.msra.mxu0 %v9119_v30  ;;  %v9206_v30 = vld [vmem:[#allocation10 + $0x308] ss:$16 sps:$4 sm:$0xff]  }
 0x9cc   :  { %5906 = vmatprep.subr.bf16.mxu0 %v9127_v31  ;;  %v9236_v31 = vld [vmem:[#allocation12 + $0x40] ss:$16 sps:$4 sm:$0xff]  }
 0x9cf   :  { %5907 = vmatpush1.bf16.msra.mxu0 %v9125_v32  ;;  %v9211_v32 = vld [vmem:[#allocation10 + $0x32c] ss:$16 sps:$4 sm:$0xff]  }
 0x9d0   :  { %5908 = vmatprep.subr.bf16.mxu0 %v9133_v33  ;;  %v9241_v33 = vld [vmem:[#allocation12 + $0x64] ss:$16 sps:$4 sm:$0xff]  }
 0x9d3   :  { %5909 = vmatpush1.bf16.msra.mxu0 %v9131_v37  ;;  %v9209_v37 = vld [vmem:[#allocation10 + $0x328] ss:$16 sps:$4 sm:$0xff]  }
 0x9d4   :  { %5910 = vmatprep.subr.bf16.mxu0 %v9139_v38  ;;  %v9239_v38 = vld [vmem:[#allocation12 + $0x60] ss:$16 sps:$4 sm:$0xff]  }
 0x9d7   :  { %5911 = vmatpush1.bf16.msra.mxu0 %v9137_v54  ;;  %v9214_v54 = vld [vmem:[#allocation10 + $0x34c] ss:$16 sps:$4 sm:$0xff]  }
 0x9d8   :  { %5912 = vmatprep.subr.bf16.mxu0 %v9145_v55  ;;  %v9244_v55 = vld [vmem:[#allocation12 + $0x84] ss:$16 sps:$4 sm:$0xff]  }
 0x9db   :  { %5913 = vmatpush1.bf16.msra.mxu0 %v9143_v57  ;;  %v9212_v57 = vld [vmem:[#allocation10 + $0x348] ss:$16 sps:$4 sm:$0xff]  }
 0x9dc   :  { %5914 = vmatprep.subr.bf16.mxu0 %v9151_v59  ;;  %v9242_v59 = vld [vmem:[#allocation12 + $0x80] ss:$16 sps:$4 sm:$0xff]  }
 0x9df   :  { %5915 = vmatpush1.bf16.msra.mxu0 %v9149_v63  ;;  %v9217_v63 = vld [vmem:[#allocation10 + $0x36c] ss:$16 sps:$4 sm:$0xff]  }
 0x9e0   :  { %5916 = vmatprep.subr.bf16.mxu0 %v9157_v18  ;;  %v9247_v18 = vld [vmem:[#allocation12 + $0xa4] ss:$16 sps:$4 sm:$0xff]  }
 0x9e3   :  { %5917 = vmatpush1.bf16.msra.mxu0 %v9155_v1  ;;  %v9215_v1 = vld [vmem:[#allocation10 + $0x368] ss:$16 sps:$4 sm:$0xff]  }
 0x9e4   :  { %5918 = vmatprep.subr.bf16.mxu0 %v9163_v3  ;;  %v9245_v3 = vld [vmem:[#allocation12 + $0xa0] ss:$16 sps:$4 sm:$0xff]  }
 0x9e7   :  { %5919 = vmatpush1.bf16.msra.mxu0 %v9161_v46  ;;  %v9220_v46 = vld [vmem:[#allocation10 + $0x38c] ss:$16 sps:$4 sm:$0xff]  }
 0x9e8   :  { %5920 = vmatprep.subr.bf16.mxu0 %v9169_v49  ;;  %v9250_v49 = vld [vmem:[#allocation12 + $0xc4] ss:$16 sps:$4 sm:$0xff]  }
 0x9eb   :  { %v5003_v52 = vpop.f32.mrb[64].mxu1  ;;  %5921 = vmatpush1.bf16.msra.mxu0 %v9167_v5  ;;  %v9223_v5 = vld [vmem:[#allocation10 + $0x3ac] ss:$16 sps:$4 sm:$0xff]  }
 0x9ec   :  { %v5004_v22 = vadd.f32 %v5003_v52, %v4963_v50  ;;  %v5005_v20 = vpop.f32.mrb[65].mxu1  ;;  %5922 = vmatprep.subr.bf16.mxu0 %v9175_v40  ;;  %v9253_v40 = vld [vmem:[#allocation12 + $0xe4] ss:$16 sps:$4 sm:$0xff]   ;;  %v9221_v50 = vld [vmem:[#allocation10 + $0x3a8] ss:$16 sps:$4 sm:$0xff]  }
 0x9ed   :  { %v5006_v11 = vadd.f32 %v5005_v20, %v4965_v51  ;;  %v5007_v60 = vpop.f32.mrb[66].mxu1  ;;  %v9251_v51 = vld [vmem:[#allocation12 + $0xe0] ss:$16 sps:$4 sm:$0xff]   ;;  %v9226_v52 = vld [vmem:[#allocation10 + $0x3cc] ss:$16 sps:$4 sm:$0xff]  }
 0x9ee   :  { %v5012_v17 = vadd.f32 %v5004_v22, %v10675_v26  ;;  %v5008_v16 = vpop.f32.mrb[67].mxu1  ;;  %v9187_v26 = vld [vmem:[#allocation10 + $0x22c] ss:$16 sps:$4 sm:$0xff]   ;;  %v9224_v22 = vld [vmem:[#allocation10 + $0x3c8] ss:$16 sps:$4 sm:$0xff]  }
 0x9ef   :  { %v5013_v45 = vadd.f32 %v5006_v11, %v10677_v8  ;;  %5923 = vmatpush1.bf16.msra.mxu0 %v9173_v0  ;;  %v9185_v8 = vld [vmem:[#allocation10 + $0x228] ss:$16 sps:$4 sm:$0xff]   ;;  %v9256_v0 = vld [vmem:[#allocation12 + $0x104] ss:$16 sps:$4 sm:$0xff]   ;;  %v9254_v20 = vld [vmem:[#allocation12 + $0x100] ss:$16 sps:$4 sm:$0xff]  }
 0x9f0   :  { %v10722_v61 = vmax.f32 %v5012_v17, 0.0  ;;  %5924 = vmatprep.subr.bf16.mxu0 %v9181_v62  ;;  %v9229_v62 = vld [vmem:[#allocation10 + $0x3ec] ss:$16 sps:$4 sm:$0xff]   ;;  %v9259_v11 = vld [vmem:[#allocation12 + $0x124] ss:$16 sps:$4 sm:$0xff]  }
 0x9f1   :  { %v10724_v56 = vmax.f32 %v5013_v45, 0.0  ;;  %v9227_v60 = vld [vmem:[#allocation10 + $0x3e8] ss:$16 sps:$4 sm:$0xff]   ;;  %v9257_v17 = vld [vmem:[#allocation12 + $0x120] ss:$16 sps:$4 sm:$0xff]  }
 0x9f2   :  { %v10730_v10 = vpack.c.bf16 %v10722_v61, %v10722_v61  ;;  %v9262_v16 = vld [vmem:[#allocation12 + $0x144] ss:$16 sps:$4 sm:$0xff]   ;;  %v9260_v45 = vld [vmem:[#allocation12 + $0x140] ss:$16 sps:$4 sm:$0xff]  }
 0x9f3   :  { %5925 = vmatpush1.bf16.msra.mxu0 %v9179_v34  ;;  %v5021_v2 = vpack.c.bf16 %v10724_v56, %v10724_v56  ;;  %v9265_v34 = vld [vmem:[#allocation12 + $0x164] ss:$16 sps:$4 sm:$0xff]  }
 0x9f4   :  { %6778 = vmatprep.subr.bf16.mxu0 %v9232_v53  ;;  %v9298_v53 = vld [vmem:[#allocation12 + $0x264] ss:$16 sps:$4 sm:$0xff]  }
 0x9f5   :  { %5885 = vmatprep.mubr.bf16.mxu1 %v5021_v2 }
 0x9f6   :  { %5886 = vmatmul.mubr.bf16.vlgmr.msra.gmra.mrb[68].mxu1 %v10730_v10  ;;  %5927 = vmatmul.mubr.bf16.vlgmr.msra.gmra.mrb[72].mxu0 %v10711_v15  ;;  %v9202_v15 = vld [vmem:[#allocation10 + $0x2cc] ss:$16 sps:$4 sm:$0xff]  }
 0x9f7   :  { %5936 = vmatpush1.bf16.msra.mxu1 %v9182_v44  ;;  %5967 = vmatprep.mubr.bf16.mxu1 %v5021_v2  ;;  %v9263_v2 = vld [vmem:[#allocation12 + $0x160] ss:$16 sps:$4 sm:$0xff]   ;;  %v9268_v44 = vld [vmem:[#allocation12 + $0x184] ss:$16 sps:$4 sm:$0xff]  }
 0x9f8   :  { %5937 = vmatprep.subr.bf16.mxu1 %v9187_v26  ;;  %6779 = vmatpush1.bf16.msra.mxu0 %v9230_v12  ;;  %v9266_v26 = vld [vmem:[#allocation12 + $0x180] ss:$16 sps:$4 sm:$0xff]  }
 0x9f9   :  { %6780 = vmatprep.subr.bf16.mxu0 %v9235_v43  ;;  %v9296_v12 = vld [vmem:[#allocation12 + $0x260] ss:$16 sps:$4 sm:$0xff]  }
 0x9fa   :  { %v9302_v43 = vld [vmem:[#allocation12 + $0x280] ss:$16 sps:$4 sm:$0xff]  }
 0x9fb   :  { %5938 = vmatpush1.bf16.msra.mxu1 %v9185_v8  ;;  %v9271_v8 = vld [vmem:[#allocation12 + $0x1a4] ss:$16 sps:$4 sm:$0xff]  }
 0x9fc   :  { %5939 = vmatprep.subr.bf16.mxu1 %v9190_v4  ;;  %6781 = vmatpush1.bf16.msra.mxu0 %v9233_v23  ;;  %v9269_v4 = vld [vmem:[#allocation12 + $0x1a0] ss:$16 sps:$4 sm:$0xff]  }
 0x9fd   :  { %6782 = vmatprep.subr.bf16.mxu0 %v9238_v27  ;;  %v9308_v23 = vld [vmem:[#allocation12 + $0x2a0] ss:$16 sps:$4 sm:$0xff]  }
 0x9fe   :  { %v9314_v27 = vld [vmem:[#allocation12 + $0x2c0] ss:$16 sps:$4 sm:$0xff]  }
 0x9ff   :  { %5940 = vmatpush1.bf16.msra.mxu1 %v9188_v36  ;;  %v9274_v36 = vld [vmem:[#allocation12 + $0x1c4] ss:$16 sps:$4 sm:$0xff]  }
 0xa00   :  { %5941 = vmatprep.subr.bf16.mxu1 %v9193_v41  ;;  %6783 = vmatpush1.bf16.msra.mxu0 %v9236_v31  ;;  %v9272_v41 = vld [vmem:[#allocation12 + $0x1c0] ss:$16 sps:$4 sm:$0xff]  }
 0xa01   :  { %6784 = vmatprep.subr.bf16.mxu0 %v9241_v33  ;;  %v9320_v31 = vld [vmem:[#allocation12 + $0x2e0] ss:$16 sps:$4 sm:$0xff]  }
 0xa02   :  { %v9326_v33 = vld [vmem:[#allocation12 + $0x300] ss:$16 sps:$4 sm:$0xff]  }
 0xa03   :  { %5942 = vmatpush1.bf16.msra.mxu1 %v9191_v58  ;;  %v9277_v58 = vld [vmem:[#allocation12 + $0x1e4] ss:$16 sps:$4 sm:$0xff]  }
 0xa04   :  { %5943 = vmatprep.subr.bf16.mxu1 %v9196_v6  ;;  %6785 = vmatpush1.bf16.msra.mxu0 %v9239_v38  ;;  %v9275_v6 = vld [vmem:[#allocation12 + $0x1e0] ss:$16 sps:$4 sm:$0xff]  }
 0xa05   :  { %6786 = vmatprep.subr.bf16.mxu0 %v9244_v55  ;;  %v9332_v38 = vld [vmem:[#allocation12 + $0x320] ss:$16 sps:$4 sm:$0xff]  }
 0xa06   :  { %v9338_v55 = vld [vmem:[#allocation12 + $0x340] ss:$16 sps:$4 sm:$0xff]  }
 0xa07   :  { %5944 = vmatpush1.bf16.msra.mxu1 %v9194_v24  ;;  %v9280_v24 = vld [vmem:[#allocation12 + $0x204] ss:$16 sps:$4 sm:$0xff]  }
 0xa08   :  { %5945 = vmatprep.subr.bf16.mxu1 %v9199_v35  ;;  %6787 = vmatpush1.bf16.msra.mxu0 %v9242_v59  ;;  %v9283_v35 = vld [vmem:[#allocation12 + $0xc] ss:$16 sps:$4 sm:$0xff]   ;;  %v9344_v59 = vld [vmem:[#allocation12 + $0x360] ss:$16 sps:$4 sm:$0xff]  }
 0xa09   :  { %6788 = vmatprep.subr.bf16.mxu0 %v9247_v18  ;;  %v9350_v18 = vld [vmem:[#allocation12 + $0x380] ss:$16 sps:$4 sm:$0xff]  }
 0xa0b   :  { %5946 = vmatpush1.bf16.msra.mxu1 %v9197_v39  ;;  %v9284_v39 = vld [vmem:[#allocation12 + $0x220] ss:$16 sps:$4 sm:$0xff]  }
 0xa0c   :  { %5947 = vmatprep.subr.bf16.mxu1 %v9202_v15  ;;  %6789 = vmatpush1.bf16.msra.mxu0 %v9245_v3  ;;  %v9286_v15 = vld [vmem:[#allocation12 + $0x224] ss:$16 sps:$4 sm:$0xff]   ;;  %v9356_v3 = vld [vmem:[#allocation12 + $0x3a0] ss:$16 sps:$4 sm:$0xff]  }
 0xa0d   :  { %6790 = vmatprep.subr.bf16.mxu0 %v9250_v49 }
 0xa0f   :  { %5948 = vmatpush1.bf16.msra.mxu1 %v9200_v14  ;;  %v9290_v14 = vld [vmem:[#allocation12 + $0x240] ss:$16 sps:$4 sm:$0xff]  }
 0xa10   :  { %5949 = vmatprep.subr.bf16.mxu1 %v9205_v28  ;;  %6791 = vmatpush1.bf16.msra.mxu0 %v9248_v48  ;;  %v9292_v28 = vld [vmem:[#allocation12 + $0x244] ss:$16 sps:$4 sm:$0xff]  }
 0xa11   :  { %6792 = vmatprep.subr.bf16.mxu0 %v9253_v40 }
 0xa13   :  { %5950 = vmatpush1.bf16.msra.mxu1 %v9203_v21  ;;  %v9304_v21 = vld [vmem:[#allocation12 + $0x284] ss:$16 sps:$4 sm:$0xff]  }
 0xa14   :  { %5951 = vmatprep.subr.bf16.mxu1 %v9208_v25  ;;  %6793 = vmatpush1.bf16.msra.mxu0 %v9251_v51  ;;  %v9310_v25 = vld [vmem:[#allocation12 + $0x2a4] ss:$16 sps:$4 sm:$0xff]  }
 0xa15   :  { %6794 = vmatprep.subr.bf16.mxu0 %v9256_v0  ;;  %v9370_v51 = vld [vmem:[#allocation12 + $0x3e4] ss:$16 sps:$4 sm:$0xff]   ;;  %v9376_v0 = vld [vmem:[#allocation12 + $0x20c] ss:$16 sps:$4 sm:$0xff]  }
 0xa17   :  { %5952 = vmatpush1.bf16.msra.mxu1 %v9206_v30  ;;  %v9316_v30 = vld [vmem:[#allocation12 + $0x2c4] ss:$16 sps:$4 sm:$0xff]  }
 0xa18   :  { %5953 = vmatprep.subr.bf16.mxu1 %v9211_v32  ;;  %6795 = vmatpush1.bf16.msra.mxu0 %v9254_v20  ;;  %v9322_v32 = vld [vmem:[#allocation12 + $0x2e4] ss:$16 sps:$4 sm:$0xff]  }
 0xa19   :  { %6796 = vmatprep.subr.bf16.mxu0 %v9259_v11 }
 0xa1b   :  { %5954 = vmatpush1.bf16.msra.mxu1 %v9209_v37  ;;  %v9328_v37 = vld [vmem:[#allocation12 + $0x304] ss:$16 sps:$4 sm:$0xff]  }
 0xa1c   :  { %5955 = vmatprep.subr.bf16.mxu1 %v9214_v54  ;;  %6797 = vmatpush1.bf16.msra.mxu0 %v9257_v17  ;;  %v9334_v54 = vld [vmem:[#allocation12 + $0x324] ss:$16 sps:$4 sm:$0xff]  }
 0xa1d   :  { %6798 = vmatprep.subr.bf16.mxu0 %v9262_v16 }
 0xa1f   :  { %5956 = vmatpush1.bf16.msra.mxu1 %v9212_v57  ;;  %v9340_v57 = vld [vmem:[#allocation12 + $0x344] ss:$16 sps:$4 sm:$0xff]  }
 0xa20   :  { %5957 = vmatprep.subr.bf16.mxu1 %v9217_v63  ;;  %6799 = vmatpush1.bf16.msra.mxu0 %v9260_v45  ;;  %v9346_v63 = vld [vmem:[#allocation12 + $0x364] ss:$16 sps:$4 sm:$0xff]  }
 0xa21   :  { %6800 = vmatprep.subr.bf16.mxu0 %v9265_v34 }
 0xa23   :  { %5958 = vmatpush1.bf16.msra.mxu1 %v9215_v1  ;;  %v9352_v1 = vld [vmem:[#allocation12 + $0x384] ss:$16 sps:$4 sm:$0xff]  }
 0xa24   :  { %5959 = vmatprep.subr.bf16.mxu1 %v9220_v46  ;;  %6801 = vmatpush1.bf16.msra.mxu0 %v9263_v2  ;;  %v9358_v46 = vld [vmem:[#allocation12 + $0x3a4] ss:$16 sps:$4 sm:$0xff]  }
 0xa25   :  { %6802 = vmatprep.subr.bf16.mxu0 %v9268_v44 }
 0xa27   :  { %5960 = vmatpush1.bf16.msra.mxu1 %v9218_v47  ;;  %v9364_v47 = vld [vmem:[#allocation12 + $0x3c4] ss:$16 sps:$4 sm:$0xff]  }
 0xa28   :  { %5961 = vmatprep.subr.bf16.mxu1 %v9223_v5  ;;  %6803 = vmatpush1.bf16.msra.mxu0 %v9266_v26  ;;  %v9362_v5 = vld [vmem:[#allocation12 + $0x3c0] ss:$16 sps:$4 sm:$0xff]  }
 0xa29   :  { %6804 = vmatprep.subr.bf16.mxu0 %v9271_v8 }
 0xa2b   :  { %5962 = vmatpush1.bf16.msra.mxu1 %v9221_v50 }
 0xa2c   :  { %5963 = vmatprep.subr.bf16.mxu1 %v9226_v52  ;;  %6805 = vmatpush1.bf16.msra.mxu0 %v9269_v4  ;;  %v9368_v52 = vld [vmem:[#allocation12 + $0x3e0] ss:$16 sps:$4 sm:$0xff]  }
 0xa2d   :  { %6806 = vmatprep.subr.bf16.mxu0 %v9274_v36 }
 0xa2f   :  { %5964 = vmatpush1.bf16.msra.mxu1 %v9224_v22  ;;  %v10738_v22 = vld [vmem:[%s10812_s13] sm:$0xf] }
 0xa30   :  { %5965 = vmatprep.subr.bf16.mxu1 %v9229_v62  ;;  %6807 = vmatpush1.bf16.msra.mxu0 %v9272_v41  ;;  %v5155_v20 = vrot.slane %v10738_v22, %v10854_v13  ;;  %v5159_v62 = vrot.slane %v10738_v22, %v10856_v19 }
 0xa31   :  { %6808 = vmatprep.subr.bf16.mxu0 %v9277_v58 }
 0xa33   :  { %5966 = vmatpush1.bf16.msra.mxu1 %v9227_v60 }
 0xa34   :  { %6809 = vmatpush1.bf16.msra.mxu0 %v9275_v6  ;;  %6819 = vmatprep.subr.bf16.mxu1 %v9280_v24 }
 0xa35   :  { %6860 = vmatprep.subr.bf16.mxu0 %v9283_v35  ;;  %v9281_v35 = vld [vmem:[#allocation12 + $0x8] ss:$16 sps:$4 sm:$0xff]  }
 0xa36   :  { %5968 = vmatmul.mubr.bf16.vlgmr.msra.gmra.mrb[72].mxu1 %v10730_v10  ;;  %v9278_v10 = vld [vmem:[#allocation12 + $0x200] ss:$16 sps:$4 sm:$0xff]  }
 0xa37   :  { %6820 = vmatpush1.bf16.msra.mxu1 %v9278_v10 }
 0xa38   :  { %6821 = vmatprep.subr.bf16.mxu1 %v9286_v15  ;;  %v9289_v15 = vld [vmem:[#allocation12 + $0x2c] ss:$16 sps:$4 sm:$0xff]  }
 0xa3b   :  { %6822 = vmatpush1.bf16.msra.mxu1 %v9284_v39 }
 0xa3c   :  { %6823 = vmatprep.subr.bf16.mxu1 %v9292_v28  ;;  %v9301_v28 = vld [vmem:[#allocation12 + $0x6c] ss:$16 sps:$4 sm:$0xff]  }
 0xa3f   :  { %6824 = vmatpush1.bf16.msra.mxu1 %v9290_v14  ;;  %v9293_v14 = vld [vmem:[#allocation12 + $0x48] ss:$16 sps:$4 sm:$0xff]  }
 0xa40   :  { %6825 = vmatprep.subr.bf16.mxu1 %v9298_v53  ;;  %v9307_v53 = vld [vmem:[#allocation12 + $0x8c] ss:$16 sps:$4 sm:$0xff]  }
 0xa43   :  { %6826 = vmatpush1.bf16.msra.mxu1 %v9296_v12  ;;  %v9299_v12 = vld [vmem:[#allocation12 + $0x68] ss:$16 sps:$4 sm:$0xff]  }
 0xa44   :  { %6827 = vmatprep.subr.bf16.mxu1 %v9304_v21  ;;  %v9313_v21 = vld [vmem:[#allocation12 + $0xac] ss:$16 sps:$4 sm:$0xff]  }
 0xa47   :  { %6828 = vmatpush1.bf16.msra.mxu1 %v9302_v43  ;;  %v9305_v43 = vld [vmem:[#allocation12 + $0x88] ss:$16 sps:$4 sm:$0xff]  }
 0xa48   :  { %6829 = vmatprep.subr.bf16.mxu1 %v9310_v25  ;;  %v9319_v25 = vld [vmem:[#allocation12 + $0xcc] ss:$16 sps:$4 sm:$0xff]  }
 0xa4b   :  { %6830 = vmatpush1.bf16.msra.mxu1 %v9308_v23  ;;  %v9311_v23 = vld [vmem:[#allocation12 + $0xa8] ss:$16 sps:$4 sm:$0xff]  }
 0xa4c   :  { %6831 = vmatprep.subr.bf16.mxu1 %v9316_v30  ;;  %v9325_v30 = vld [vmem:[#allocation12 + $0xec] ss:$16 sps:$4 sm:$0xff]  }
 0xa4f   :  { %6832 = vmatpush1.bf16.msra.mxu1 %v9314_v27  ;;  %v9317_v27 = vld [vmem:[#allocation12 + $0xc8] ss:$16 sps:$4 sm:$0xff]  }
 0xa50   :  { %6833 = vmatprep.subr.bf16.mxu1 %v9322_v32  ;;  %v9331_v32 = vld [vmem:[#allocation12 + $0x10c] ss:$16 sps:$4 sm:$0xff]  }
 0xa53   :  { %6834 = vmatpush1.bf16.msra.mxu1 %v9320_v31  ;;  %v9323_v31 = vld [vmem:[#allocation12 + $0xe8] ss:$16 sps:$4 sm:$0xff]  }
 0xa54   :  { %6835 = vmatprep.subr.bf16.mxu1 %v9328_v37  ;;  %v9337_v37 = vld [vmem:[#allocation12 + $0x12c] ss:$16 sps:$4 sm:$0xff]  }
 0xa57   :  { %6836 = vmatpush1.bf16.msra.mxu1 %v9326_v33  ;;  %v9329_v33 = vld [vmem:[#allocation12 + $0x108] ss:$16 sps:$4 sm:$0xff]  }
 0xa58   :  { %6837 = vmatprep.subr.bf16.mxu1 %v9334_v54  ;;  %v9343_v54 = vld [vmem:[#allocation12 + $0x14c] ss:$16 sps:$4 sm:$0xff]  }
 0xa5b   :  { %6838 = vmatpush1.bf16.msra.mxu1 %v9332_v38  ;;  %v9335_v38 = vld [vmem:[#allocation12 + $0x128] ss:$16 sps:$4 sm:$0xff]  }
 0xa5c   :  { %6839 = vmatprep.subr.bf16.mxu1 %v9340_v57  ;;  %v9349_v57 = vld [vmem:[#allocation12 + $0x16c] ss:$16 sps:$4 sm:$0xff]  }
 0xa5f   :  { %6840 = vmatpush1.bf16.msra.mxu1 %v9338_v55  ;;  %v9341_v55 = vld [vmem:[#allocation12 + $0x148] ss:$16 sps:$4 sm:$0xff]  }
 0xa60   :  { %6841 = vmatprep.subr.bf16.mxu1 %v9346_v63  ;;  %v9355_v63 = vld [vmem:[#allocation12 + $0x18c] ss:$16 sps:$4 sm:$0xff]  }
 0xa63   :  { %6842 = vmatpush1.bf16.msra.mxu1 %v9344_v59  ;;  %v9347_v59 = vld [vmem:[#allocation12 + $0x168] ss:$16 sps:$4 sm:$0xff]  }
 0xa64   :  { %6843 = vmatprep.subr.bf16.mxu1 %v9352_v1  ;;  %v9361_v1 = vld [vmem:[#allocation12 + $0x1ac] ss:$16 sps:$4 sm:$0xff]  }
 0xa67   :  { %6844 = vmatpush1.bf16.msra.mxu1 %v9350_v18  ;;  %v9353_v18 = vld [vmem:[#allocation12 + $0x188] ss:$16 sps:$4 sm:$0xff]  }
 0xa68   :  { %6845 = vmatprep.subr.bf16.mxu1 %v9358_v46  ;;  %v5167_v46 = vrot.slane %v10738_v22, %v10857_v42 }
 0xa6b   :  { %6846 = vmatpush1.bf16.msra.mxu1 %v9356_v3  ;;  %v5163_v3 = vrot.slane %v10738_v22, %v10855_v29 }
 0xa6c   :  { %6847 = vmatprep.subr.bf16.mxu1 %v9364_v47  ;;  %v9367_v47 = vld [vmem:[#allocation12 + $0x1cc] ss:$16 sps:$4 sm:$0xff]  }
 0xa6f   :  { %6848 = vmatpush1.bf16.msra.mxu1 %v9362_v5 }
 0xa70   :  { %6849 = vmatprep.subr.bf16.mxu1 %v9370_v51 }
 0xa73   :  { %6850 = vmatpush1.bf16.msra.mxu1 %v9368_v52 }
 0xa74   :  { %6901 = vmatprep.subr.bf16.mxu1 %v9376_v0  ;;  %v9373_v0 = vld [vmem:[#allocation12 + $0x1ec] ss:$16 sps:$4 sm:$0xff]  }
 0xa89   :  { %v5846_v49 = vpop.f32.mrb[68].mxu0 }
 0xa8a   :  { %v5848_v48 = vpop.f32.mrb[69].mxu0  ;;  %v5847_v11 = vadd.f32 %v5846_v49, %v5155_v20  ;;  %v9359_v49 = vld [vmem:[#allocation12 + $0x1a8] ss:$16 sps:$4 sm:$0xff]  }
 0xa8b   :  { %v5850_v40 = vpop.f32.mrb[70].mxu0  ;;  %v5849_v60 = vadd.f32 %v5848_v48, %v5159_v62 }
 0xa8c   :  { %v5851_v50 = vpop.f32.mrb[71].mxu0 }
 0xa8d   :  { %v9365_v50 = vld [vmem:[#allocation12 + $0x1c8] ss:$16 sps:$4 sm:$0xff]  }
 0xac9   :  { %v5887_v17 = vpop.f32.mrb[68].mxu1  ;;  %v10744_v16 = vpop.f32.mrb[72].mxu0 }
 0xaca   :  { %v5888_v45 = vadd.f32 %v5887_v17, %v5847_v11  ;;  %v5889_v34 = vpop.f32.mrb[69].mxu1  ;;  %v10746_v2 = vpop.f32.mrb[73].mxu0  ;;  %v5929_v48 = vadd.f32 %v10744_v16, %v5163_v3  ;;  %v9371_v17 = vld [vmem:[#allocation12 + $0x1e8] ss:$16 sps:$4 sm:$0xff]  }
 0xacb   :  { %v5890_v44 = vadd.f32 %v5889_v34, %v5849_v60  ;;  %v5891_v26 = vpop.f32.mrb[70].mxu1  ;;  %v5932_v8 = vpop.f32.mrb[74].mxu0  ;;  %v5931_v5 = vadd.f32 %v10746_v2, %v5167_v46  ;;  %v9374_v2 = vld [vmem:[#allocation12 + $0x208] ss:$16 sps:$4 sm:$0xff]   ;;  %v9418_v46 = vld [vmem:[#allocation12 + $0x3cc] ss:$16 sps:$4 sm:$0xff]  }
 0xacc   :  { %v5976_v4 = vadd.f32 %v5888_v45, %v10703_v7  ;;  %v5892_v36 = vpop.f32.mrb[71].mxu1  ;;  %v5933_v41 = vpop.f32.mrb[75].mxu0  ;;  %v9287_v7 = vld [vmem:[#allocation12 + $0x28] ss:$16 sps:$4 sm:$0xff]   ;;  %v9382_v26 = vld [vmem:[#allocation12 + $0x24c] ss:$16 sps:$4 sm:$0xff]  }
 0xacd   :  { %v5977_v58 = vadd.f32 %v5890_v44, %v10705_v9  ;;  %v9295_v9 = vld [vmem:[#allocation12 + $0x4c] ss:$16 sps:$4 sm:$0xff]   ;;  %v9380_v8 = vld [vmem:[#allocation12 + $0x248] ss:$16 sps:$4 sm:$0xff]  }
 0xace   :  { %v10750_v6 = vmax.f32 %v5976_v4, 0.0  ;;  %v9385_v4 = vld [vmem:[#allocation12 + $0x26c] ss:$16 sps:$4 sm:$0xff]   ;;  %v9383_v36 = vld [vmem:[#allocation12 + $0x268] ss:$16 sps:$4 sm:$0xff]  }
 0xacf   :  { %v10752_v10 = vmax.f32 %v5977_v58, 0.0  ;;  %v9388_v41 = vld [vmem:[#allocation12 + $0x28c] ss:$16 sps:$4 sm:$0xff]   ;;  %v9386_v58 = vld [vmem:[#allocation12 + $0x288] ss:$16 sps:$4 sm:$0xff]  }
 0xad0   :  { %v10758_v39 = vpack.c.bf16 %v10750_v6, %v10750_v6  ;;  %v9413_v3 = vld [vmem:[#allocation12 + $0x3a8] ss:$16 sps:$4 sm:$0xff]  }
 0xad1   :  { %v5985_v24 = vpack.c.bf16 %v10752_v10, %v10752_v10 }
 0xad3   :  { %6810 = vmatprep.mubr.bf16.mxu0 %v5985_v24 }
 0xad4   :  { %6811 = vmatmul.mubr.bf16.vlgmr.msra.gmra.mrb[76].mxu0 %v10758_v39 }
 0xad5   :  { %6861 = vmatpush1.bf16.msra.mxu0 %v9281_v35  ;;  %6892 = vmatprep.mubr.bf16.mxu0 %v5985_v24  ;;  %v9391_v24 = vld [vmem:[#allocation12 + $0x2ac] ss:$16 sps:$4 sm:$0xff]   ;;  %v9389_v35 = vld [vmem:[#allocation12 + $0x2a8] ss:$16 sps:$4 sm:$0xff]  }
 0xad6   :  { %6862 = vmatprep.subr.bf16.mxu0 %v9289_v15  ;;  %v9392_v15 = vld [vmem:[#allocation12 + $0x2c8] ss:$16 sps:$4 sm:$0xff]  }
 0xad9   :  { %6863 = vmatpush1.bf16.msra.mxu0 %v9287_v7  ;;  %v9397_v7 = vld [vmem:[#allocation12 + $0x2ec] ss:$16 sps:$4 sm:$0xff]  }
 0xada   :  { %6864 = vmatprep.subr.bf16.mxu0 %v9295_v9  ;;  %v9422_v9 = vld [vmem:[#allocation13 + $0x40] sm:$0xff]  }
 0xadd   :  { %6865 = vmatpush1.bf16.msra.mxu0 %v9293_v14  ;;  %v9423_v14 = vld [vmem:[#allocation13] sm:$0xff]  }
 0xade   :  { %6866 = vmatprep.subr.bf16.mxu0 %v9301_v28  ;;  %v9424_v28 = vld [vmem:[#allocation13 + $0x48] sm:$0xff]  }
 0xae1   :  { %6867 = vmatpush1.bf16.msra.mxu0 %v9299_v12  ;;  %v9395_v12 = vld [vmem:[#allocation12 + $0x2e8] ss:$16 sps:$4 sm:$0xff]  }
 0xae2   :  { %6868 = vmatprep.subr.bf16.mxu0 %v9307_v53  ;;  %v9425_v53 = vld [vmem:[#allocation13 + $0x8] sm:$0xff]  }
 0xae5   :  { %6869 = vmatpush1.bf16.msra.mxu0 %v9305_v43  ;;  %v9400_v43 = vld [vmem:[#allocation12 + $0x30c] ss:$16 sps:$4 sm:$0xff]  }
 0xae6   :  { %6870 = vmatprep.subr.bf16.mxu0 %v9313_v21  ;;  %v9426_v21 = vld [vmem:[#allocation13 + $0x50] sm:$0xff]  }
 0xae9   :  { %6871 = vmatpush1.bf16.msra.mxu0 %v9311_v23  ;;  %v9398_v23 = vld [vmem:[#allocation12 + $0x308] ss:$16 sps:$4 sm:$0xff]  }
 0xaea   :  { %6872 = vmatprep.subr.bf16.mxu0 %v9319_v25  ;;  %v9427_v25 = vld [vmem:[#allocation13 + $0x10] sm:$0xff]  }
 0xaed   :  { %6873 = vmatpush1.bf16.msra.mxu0 %v9317_v27  ;;  %v9403_v27 = vld [vmem:[#allocation12 + $0x32c] ss:$16 sps:$4 sm:$0xff]  }
 0xaee   :  { %6874 = vmatprep.subr.bf16.mxu0 %v9325_v30  ;;  %v9428_v30 = vld [vmem:[#allocation13 + $0x58] sm:$0xff]  }
 0xaf1   :  { %6875 = vmatpush1.bf16.msra.mxu0 %v9323_v31  ;;  %v9401_v31 = vld [vmem:[#allocation12 + $0x328] ss:$16 sps:$4 sm:$0xff]  }
 0xaf2   :  { %6876 = vmatprep.subr.bf16.mxu0 %v9331_v32  ;;  %v9429_v32 = vld [vmem:[#allocation13 + $0x18] sm:$0xff]  }
 0xaf5   :  { %6877 = vmatpush1.bf16.msra.mxu0 %v9329_v33  ;;  %v9406_v33 = vld [vmem:[#allocation12 + $0x34c] ss:$16 sps:$4 sm:$0xff]  }
 0xaf6   :  { %6878 = vmatprep.subr.bf16.mxu0 %v9337_v37  ;;  %v9430_v37 = vld [vmem:[#allocation13 + $0x60] sm:$0xff]  }
 0xaf9   :  { %6879 = vmatpush1.bf16.msra.mxu0 %v9335_v38  ;;  %v9404_v38 = vld [vmem:[#allocation12 + $0x348] ss:$16 sps:$4 sm:$0xff]  }
 0xafa   :  { %6880 = vmatprep.subr.bf16.mxu0 %v9343_v54  ;;  %v9431_v54 = vld [vmem:[#allocation13 + $0x20] sm:$0xff]  }
 0xafd   :  { %6881 = vmatpush1.bf16.msra.mxu0 %v9341_v55  ;;  %v9409_v55 = vld [vmem:[#allocation12 + $0x36c] ss:$16 sps:$4 sm:$0xff]  }
 0xafe   :  { %6882 = vmatprep.subr.bf16.mxu0 %v9349_v57  ;;  %v9432_v57 = vld [vmem:[#allocation13 + $0x68] sm:$0xff]  }
 0xb01   :  { %6883 = vmatpush1.bf16.msra.mxu0 %v9347_v59  ;;  %v9407_v59 = vld [vmem:[#allocation12 + $0x368] ss:$16 sps:$4 sm:$0xff]  }
 0xb02   :  { %6884 = vmatprep.subr.bf16.mxu0 %v9355_v63  ;;  %v9412_v63 = vld [vmem:[#allocation12 + $0x38c] ss:$16 sps:$4 sm:$0xff]  }
 0xb05   :  { %6885 = vmatpush1.bf16.msra.mxu0 %v9353_v18  ;;  %v9410_v18 = vld [vmem:[#allocation12 + $0x388] ss:$16 sps:$4 sm:$0xff]  }
 0xb06   :  { %6886 = vmatprep.subr.bf16.mxu0 %v9361_v1  ;;  %v9415_v1 = vld [vmem:[#allocation12 + $0x3ac] ss:$16 sps:$4 sm:$0xff]  }
 0xb09   :  { %v5969_v40 = vpop.f32.mrb[72].mxu1  ;;  %6887 = vmatpush1.bf16.msra.mxu0 %v9359_v49  ;;  %v9416_v49 = vld [vmem:[#allocation12 + $0x3c8] ss:$16 sps:$4 sm:$0xff]  }
 0xb0a   :  { %v5970_v51 = vadd.f32 %v5969_v40, %v5929_v48  ;;  %v5971_v52 = vpop.f32.mrb[73].mxu1  ;;  %6888 = vmatprep.subr.bf16.mxu0 %v9367_v47  ;;  %v9421_v47 = vld [vmem:[#allocation12 + $0x3ec] ss:$16 sps:$4 sm:$0xff]   ;;  %v9419_v48 = vld [vmem:[#allocation12 + $0x3e8] ss:$16 sps:$4 sm:$0xff]   ;;  %v9434_v40 = vld [vmem:[#allocation13 + $0x70] sm:$0xff]  }
 0xb0b   :  { %v5972_v20 = vadd.f32 %v5971_v52, %v5931_v5  ;;  %v5973_v62 = vpop.f32.mrb[74].mxu1  ;;  %v9433_v5 = vld [vmem:[#allocation13 + $0x28] sm:$0xff]   ;;  %v9437_v52 = vld [vmem:[#allocation13 + $0x38] sm:$0xff]  }
 0xb0c   :  { %v5978_v11 = vadd.f32 %v5970_v51, %v10722_v61  ;;  %v5974_v22 = vpop.f32.mrb[75].mxu1  ;;  %v9379_v61 = vld [vmem:[#allocation12 + $0x22c] ss:$16 sps:$4 sm:$0xff]  }
 0xb0d   :  { %v5979_v60 = vadd.f32 %v5972_v20, %v10724_v56  ;;  %6889 = vmatpush1.bf16.msra.mxu0 %v9365_v50  ;;  %v9377_v56 = vld [vmem:[#allocation12 + $0x228] ss:$16 sps:$4 sm:$0xff]   ;;  %v9435_v50 = vld [vmem:[#allocation13 + $0x30] sm:$0xff]   ;;  %v9439_v20 = vld [vmem:[#allocation13 + $0x80] sm:$0xff]  }
 0xb0e   :  { %v10769_v45 = vmax.f32 %v5978_v11, 0.0  ;;  %6890 = vmatprep.subr.bf16.mxu0 %v9373_v0  ;;  %v9436_v51 = vld [vmem:[#allocation13 + $0x78] sm:$0xff]   ;;  %v9438_v0 = vld [vmem:[#allocation13 + $0xc0] sm:$0xff]   ;;  %v9440_v62 = vld [vmem:[#allocation13 + $0xc8] sm:$0xff]  }
 0xb0f   :  { %v10771_v16 = vmax.f32 %v5979_v60, 0.0  ;;  %v9441_v11 = vld [vmem:[#allocation13 + $0x88] sm:$0xff]   ;;  %v9442_v22 = vld [vmem:[#allocation13 + $0xd0] sm:$0xff]  }
 0xb10   :  { %v10777_v44 = vpack.c.bf16 %v10769_v45, %v10769_v45  ;;  %v9443_v60 = vld [vmem:[#allocation13 + $0x90] sm:$0xff]  }
 0xb11   :  { %6891 = vmatpush1.bf16.msra.mxu0 %v9371_v17  ;;  %v5987_v34 = vpack.c.bf16 %v10771_v16, %v10771_v16  ;;  %v9444_v17 = vld [vmem:[#allocation13 + $0xd8] sm:$0xff]  }
 0xb12   :  { %8151 = vmatprep.subr.bf16.mxu0 %v9422_v9 }
 0xb13   :  { %6851 = vmatprep.mubr.bf16.mxu1 %v5987_v34 }
 0xb14   :  { %6852 = vmatmul.mubr.bf16.vlgmr.msra.gmra.mrb[76].mxu1 %v10777_v44  ;;  %6893 = vmatmul.mubr.bf16.vlgmr.msra.gmra.mrb[80].mxu0 %v10758_v39  ;;  %v9394_v39 = vld [vmem:[#allocation12 + $0x2cc] ss:$16 sps:$4 sm:$0xff]  }
 0xb15   :  { %6902 = vmatpush1.bf16.msra.mxu1 %v9374_v2  ;;  %6933 = vmatprep.mubr.bf16.mxu1 %v5987_v34  ;;  %v9445_v34 = vld [vmem:[#allocation13 + $0x98] sm:$0xff]   ;;  %v9446_v2 = vld [vmem:[#allocation13 + $0xe0] sm:$0xff]  }
 0xb16   :  { %6903 = vmatprep.subr.bf16.mxu1 %v9379_v61  ;;  %8152 = vmatpush3.bf16.msra.mxu0 %v9423_v14  ;;  %v9448_v61 = vld [vmem:[#allocation13 + $0xe8] sm:$0xff]  }
 0xb17   :  { %8153 = vmatprep.subr.bf16.mxu0 %v9424_v28 }
 0xb19   :  { %6904 = vmatpush1.bf16.msra.mxu1 %v9377_v56  ;;  %v9449_v56 = vld [vmem:[#allocation13 + $0xa8] sm:$0xff]  }
 0xb1a   :  { %6905 = vmatprep.subr.bf16.mxu1 %v9382_v26  ;;  %8154 = vmatpush3.bf16.msra.mxu0 %v9425_v53 }
 0xb1b   :  { %8155 = vmatprep.subr.bf16.mxu0 %v9426_v21 }
 0xb1d   :  { %6906 = vmatpush1.bf16.msra.mxu1 %v9380_v8 }
 0xb1e   :  { %6907 = vmatprep.subr.bf16.mxu1 %v9385_v4  ;;  %8156 = vmatpush3.bf16.msra.mxu0 %v9427_v25  ;;  %v9450_v4 = vld [vmem:[#allocation13 + $0xf0] sm:$0xff]  }
 0xb1f   :  { %8157 = vmatprep.subr.bf16.mxu0 %v9428_v30 }
 0xb21   :  { %6908 = vmatpush1.bf16.msra.mxu1 %v9383_v36 }
 0xb22   :  { %6909 = vmatprep.subr.bf16.mxu1 %v9388_v41  ;;  %8158 = vmatpush3.bf16.msra.mxu0 %v9429_v32  ;;  %v9451_v41 = vld [vmem:[#allocation13 + $0xb0] sm:$0xff]  }
 0xb23   :  { %8159 = vmatprep.subr.bf16.mxu0 %v9430_v37 }
 0xb25   :  { %6910 = vmatpush1.bf16.msra.mxu1 %v9386_v58 }
 0xb26   :  { %6911 = vmatprep.subr.bf16.mxu1 %v9391_v24  ;;  %8160 = vmatpush3.bf16.msra.mxu0 %v9431_v54  ;;  %v9452_v24 = vld [vmem:[#allocation13 + $0xf8] sm:$0xff]  }
 0xb27   :  { %8161 = vmatprep.subr.bf16.mxu0 %v9432_v57 }
 0xb29   :  { %6912 = vmatpush1.bf16.msra.mxu1 %v9389_v35  ;;  %v9453_v35 = vld [vmem:[#allocation13 + $0xb8] sm:$0xff]  }
 0xb2a   :  { %6913 = vmatprep.subr.bf16.mxu1 %v9394_v39  ;;  %8162 = vmatpush3.bf16.msra.mxu0 %v9433_v5  ;;  %v6116_v39 = vld [vmem:[%s10814_s15] sm:$0xf] }
 0xb2b   :  { %8163 = vmatprep.subr.bf16.mxu0 %v9434_v40  ;;  %v6129_v54 = vrot.slane %v6116_v39, %v10855_v29 }
 0xb2d   :  { %6914 = vmatpush1.bf16.msra.mxu1 %v9392_v15  ;;  %v6121_v15 = vrot.slane %v6116_v39, %v10854_v13 }
 0xb2e   :  { %6915 = vmatprep.subr.bf16.mxu1 %v9397_v7  ;;  %8164 = vmatpush3.bf16.msra.mxu0 %v9435_v50  ;;  %v6125_v7 = vrot.slane %v6116_v39, %v10856_v19 }
 0xb2f   :  { %8165 = vmatprep.subr.bf16.mxu0 %v9436_v51 }
 0xb31   :  { %6916 = vmatpush1.bf16.msra.mxu1 %v9395_v12 }
 0xb32   :  { %6917 = vmatprep.subr.bf16.mxu1 %v9400_v43  ;;  %8166 = vmatpush3.bf16.msra.mxu0 %v9437_v52 }
 0xb35   :  { %6918 = vmatpush1.bf16.msra.mxu1 %v9398_v23 }
 0xb36   :  { %6919 = vmatprep.subr.bf16.mxu1 %v9403_v27 }
 0xb39   :  { %6920 = vmatpush1.bf16.msra.mxu1 %v9401_v31 }
 0xb3a   :  { %6921 = vmatprep.subr.bf16.mxu1 %v9406_v33 }
 0xb3d   :  { %6922 = vmatpush1.bf16.msra.mxu1 %v9404_v38 }
 0xb3e   :  { %6923 = vmatprep.subr.bf16.mxu1 %v9409_v55  ;;  %v6133_v55 = vrot.slane %v6116_v39, %v10857_v42 }
 0xb41   :  { %6924 = vmatpush1.bf16.msra.mxu1 %v9407_v59 }
 0xb42   :  { %6925 = vmatprep.subr.bf16.mxu1 %v9412_v63 }
 0xb45   :  { %6926 = vmatpush1.bf16.msra.mxu1 %v9410_v18 }
 0xb46   :  { %6927 = vmatprep.subr.bf16.mxu1 %v9415_v1 }
 0xb49   :  { %6928 = vmatpush1.bf16.msra.mxu1 %v9413_v3 }
 0xb4a   :  { %6929 = vmatprep.subr.bf16.mxu1 %v9418_v46 }
 0xb4d   :  { %6930 = vmatpush1.bf16.msra.mxu1 %v9416_v49 }
 0xb4e   :  { %6931 = vmatprep.subr.bf16.mxu1 %v9421_v47 }
 0xb51   :  { %6932 = vmatpush1.bf16.msra.mxu1 %v9419_v48 }
 0xb52   :  { %8173 = vmatprep.subr.bf16.mxu1 %v9438_v0  ;;  %v8118_v0 = vld [vmem:[%s10816_s17] ss:$0 sm:$0xff] }
 0xb54   :  { %6934 = vmatmul.mubr.bf16.vlgmr.msra.gmra.mrb[80].mxu1 %v10777_v44  ;;  %v9447_v44 = vld [vmem:[#allocation13 + $0xa0] sm:$0xff]  }
 0xb55   :  { %8174 = vmatpush3.bf16.msra.mxu1 %v9439_v20 }
 0xb56   :  { %8175 = vmatprep.subr.bf16.mxu1 %v9440_v62 }
 0xb59   :  { %8176 = vmatpush3.bf16.msra.mxu1 %v9441_v11 }
 0xb5a   :  { %8177 = vmatprep.subr.bf16.mxu1 %v9442_v22 }
 0xb5d   :  { %8178 = vmatpush3.bf16.msra.mxu1 %v9443_v60 }
 0xb5e   :  { %8179 = vmatprep.subr.bf16.mxu1 %v9444_v17 }
 0xb61   :  { %8180 = vmatpush3.bf16.msra.mxu1 %v9445_v34 }
 0xb62   :  { %8181 = vmatprep.subr.bf16.mxu1 %v9446_v2 }
 0xb65   :  { %8182 = vmatpush3.bf16.msra.mxu1 %v9447_v44 }
 0xb66   :  { %8183 = vmatprep.subr.bf16.mxu1 %v9448_v61 }
 0xb69   :  { %8184 = vmatpush3.bf16.msra.mxu1 %v9449_v56 }
 0xb6a   :  { %8185 = vmatprep.subr.bf16.mxu1 %v9450_v4 }
 0xb6d   :  { %8186 = vmatpush3.bf16.msra.mxu1 %v9451_v41 }
 0xb6e   :  { %8187 = vmatprep.subr.bf16.mxu1 %v9452_v24 }
 0xb71   :  { %8188 = vmatpush3.bf16.msra.mxu1 %v9453_v35 }
 0xba7   :  { %v6812_v26 = vpop.f32.mrb[76].mxu0 }
 0xba8   :  { %v6814_v8 = vpop.f32.mrb[77].mxu0  ;;  %v6813_v9 = vadd.f32 %v6812_v26, %v6121_v15 }
 0xba9   :  { %v6816_v36 = vpop.f32.mrb[78].mxu0  ;;  %v6815_v14 = vadd.f32 %v6814_v8, %v6125_v7 }
 0xbaa   :  { %v6817_v58 = vpop.f32.mrb[79].mxu0 }
 0xbe7   :  { %v6853_v28 = vpop.f32.mrb[76].mxu1  ;;  %v6894_v12 = vpop.f32.mrb[80].mxu0 }
 0xbe8   :  { %v6854_v53 = vadd.f32 %v6853_v28, %v6813_v9  ;;  %v6855_v43 = vpop.f32.mrb[77].mxu1  ;;  %v6896_v21 = vpop.f32.mrb[81].mxu0  ;;  %v6895_v57 = vadd.f32 %v6894_v12, %v6129_v54 }
 0xbe9   :  { %v6856_v23 = vadd.f32 %v6855_v43, %v6815_v14  ;;  %v6857_v25 = vpop.f32.mrb[78].mxu1  ;;  %v6898_v27 = vpop.f32.mrb[82].mxu0  ;;  %v6897_v59 = vadd.f32 %v6896_v21, %v6133_v55 }
 0xbea   :  { %v6942_v30 = vadd.f32 %v6854_v53, %v10750_v6  ;;  %v6858_v31 = vpop.f32.mrb[79].mxu1  ;;  %v6899_v32 = vpop.f32.mrb[83].mxu0 }
 0xbeb   :  { %v6943_v33 = vadd.f32 %v6856_v23, %v10752_v10 }
 0xbec   :  { %v6946_v37 = vmax.f32 %v6942_v30, 0.0 }
 0xbed   :  { %v6947_v13 = vmax.f32 %v6943_v33, 0.0 }
 0xbee   :  { %v6950_v19 = vpack.c.bf16 %v6946_v37, %v6946_v37 }
 0xbef   :  { %v6951_v38 = vpack.c.bf16 %v6947_v13, %v6947_v13 }
 0xbf1   :  { %7249 = vmatprep.mubr.bf16.mxu0 %v6951_v38 }
 0xbf2   :  { %7250 = vmatmul.mubr.bf16.vlgmr.msra.gmra.mrb[84].mxu0 %v6950_v19 }
 0xc27   :  { %v6935_v63 = vpop.f32.mrb[80].mxu1 }
 0xc28   :  { %v6936_v18 = vadd.f32 %v6935_v63, %v6895_v57  ;;  %v6937_v1 = vpop.f32.mrb[81].mxu1 }
 0xc29   :  { %v6938_v6 = vadd.f32 %v6937_v1, %v6897_v59  ;;  %v6939_v3 = vpop.f32.mrb[82].mxu1 }
 0xc2a   :  { %v6944_v46 = vadd.f32 %v6936_v18, %v10769_v45  ;;  %v6940_v10 = vpop.f32.mrb[83].mxu1 }
 0xc2b   :  { %v6945_v49 = vadd.f32 %v6938_v6, %v10771_v16 }
 0xc2c   :  { %v6948_v47 = vmax.f32 %v6944_v46, 0.0 }
 0xc2d   :  { %v6949_v48 = vmax.f32 %v6945_v49, 0.0 }
 0xc2e   :  { %v6952_v40 = vpack.c.bf16 %v6948_v47, %v6948_v47 }
 0xc2f   :  { %v6953_v5 = vpack.c.bf16 %v6949_v48, %v6949_v48 }
 0xc31   :  { %7289 = vmatprep.mubr.bf16.mxu1 %v6953_v5 }
 0xc32   :  { %7290 = vmatmul.mubr.bf16.vlgmr.msra.gmra.mrb[84].mxu1 %v6952_v40 }
 0xcc5   :  { %v8167_v29 = vpop.f32.mrb[84].mxu0 }
 0xcc6   :  { %v8168_v42 = vpop.f32.mrb[85].mxu0 }
 0xcc7   :  { %v8169_v50 = vadd.f32 %v8168_v42, %v8167_v29  ;;  %v8170_v51 = vpop.f32.mrb[86].mxu0 }
 0xcc8   :  { %v8171_v52 = vpop.f32.mrb[87].mxu0 }
 0xcc9   :  { %v7252_v62 = vadd.f32 %v8169_v50, %v8118_v0 }
 0xd05   :  { %v8189_v20 = vpop.f32.mrb[84].mxu1 }
 0xd06   :  { %v8190_v45 = vpop.f32.mrb[85].mxu1 }
 0xd07   :  { %v8191_v11 = vadd.f32 %v8190_v45, %v8189_v20  ;;  %v8192_v16 = vpop.f32.mrb[86].mxu1 }
 0xd08   :  { %v8193_v22 = vpop.f32.mrb[87].mxu1 }
 0xd09   :  { %v7292_v60 = vadd.f32 %v8191_v11, %v7252_v62 }
 0xd0b   :  { %7297 = vst [vmem:[%s10817_s18] sm:$0xff] %v7292_v60 }
 0xd0c   :  { %7302 = vsyncpa [#allocation3], 1 }
 0xd0d   :  { %7303 = vsyncpa [#allocation5], 1 }
 0xd0e   :  { %7304 = vsyncpa [#allocation8], 1 }
 0xd0f   :  { %7305 = vsyncpa [#allocation11], 1 }
 0xd10   :  { %7306 = vsyncpa [#allocation14], 1 }

</bundles_post_ra>
